<compile_context>
chip_gen: v5e
topology: v5e:2x2
jax: 0.10.0
libtpu: 0.0.40
codegen_flags: <defaults>
</compile_context>

<pallas_src>
import math
import functools

import numpy as np
import jax
import jax.numpy as jnp
from jax.experimental import pallas as pl
from jax.experimental.pallas import tpu as pltpu

BF16 = jnp.bfloat16
LN_EPS = 1e-12                      # espnet LayerNorm eps
NEG_BIG = -1e30
VMEM_LIMIT = 32 * 1024 * 1024       # safe on v5e/v6e (128 MiB) and v7x (64 MiB)
TM_DEFAULT = 512                    # row tile, clipped to padded M


def _round_up(x, m):
    return (x + m - 1) // m * m


def _compiler_params(n_parallel_axes=1):
    return pltpu.CompilerParams(
        dimension_semantics=("parallel",) * n_parallel_axes,
        vmem_limit_bytes=VMEM_LIMIT)


# ----------------------------- in-kernel helpers ----------------------------

def _ln(x, g, b, eps=LN_EPS):
    mean = jnp.mean(x, axis=-1, keepdims=True)
    var = jnp.mean(jnp.square(x - mean), axis=-1, keepdims=True)
    return (x - mean) * jax.lax.rsqrt(var + eps) * g + b


def _mm(x_f32, w_bf16):
    # bf16 x bf16 MXU matmul with f32 accumulation
    return jnp.dot(x_f32.astype(BF16), w_bf16, preferred_element_type=jnp.float32)


def _logsoftmax(logits):
    m = jnp.max(logits, axis=-1, keepdims=True)
    s = logits - m
    return s - jnp.log(jnp.sum(jnp.exp(s), axis=-1, keepdims=True))


# ----------------------------- row-tiled kernels ----------------------------

def _linear_kernel(x_ref, w_ref, b_ref, o_ref, *, relu):
    acc = _mm(x_ref[...], w_ref[...]) + b_ref[...]
    if relu:
        acc = jnp.maximum(acc, 0.0)
    o_ref[...] = acc


def _linear_residual_kernel(x_ref, r_ref, w_ref, b_ref, o_ref):
    o_ref[...] = r_ref[...] + _mm(x_ref[...], w_ref[...]) + b_ref[...]


def _ln_kernel(x_ref, g_ref, b_ref, o_ref):
    o_ref[...] = _ln(x_ref[...], g_ref[...], b_ref[...])


def _ln_linear_kernel(x_ref, g_ref, b_ref, w_ref, wb_ref, o_ref):
    xn = _ln(x_ref[...], g_ref[...], b_ref[...])
    o_ref[...] = _mm(xn, w_ref[...]) + wb_ref[...]


def _ln_ffn_kernel(x_ref, g_ref, b_ref, w1_ref, b1_ref, w2_ref, b2_ref, o_ref):
    x = x_ref[...]
    xn = _ln(x, g_ref[...], b_ref[...])
    h = jnp.maximum(_mm(xn, w1_ref[...]) + b1_ref[...], 0.0)
    o_ref[...] = x + _mm(h, w2_ref[...]) + b2_ref[...]


def _linear_logsoftmax_kernel(x_ref, w_ref, b_ref, o_ref):
    o_ref[...] = _logsoftmax(_mm(x_ref[...], w_ref[...]) + b_ref[...])


def _ln_linear_logsoftmax_kernel(x_ref, g_ref, b_ref, w_ref, wb_ref, o_ref):
    xn = _ln(x_ref[...], g_ref[...], b_ref[...])
    o_ref[...] = _logsoftmax(_mm(xn, w_ref[...]) + wb_ref[...])


def _row_call(kernel, row_inputs, const_inputs, out_dim,
              out_dtype=jnp.float32, tm=TM_DEFAULT):
    """Run `kernel` over row-tiles of the (M, D_i) `row_inputs`.

    const_inputs (weights / biases / LN params, all 2-D) are replicated to every
    grid step.  M is zero-padded to a multiple of the row tile (multiple of 8),
    giving real software pipelining and megacore-shardable grids.
    """
    M = row_inputs[0].shape[0]
    Mp = _round_up(M, 8)
    tm = min(_round_up(tm, 8), Mp)
    Mp = _round_up(Mp, tm)
    padded = [jnp.pad(a, ((0, Mp - a.shape[0]), (0, 0))) if a.shape[0] != Mp else a
              for a in row_inputs]
    in_specs = [pl.BlockSpec((tm, a.shape[1]), lambda i: (i, 0)) for a in padded]
    in_specs += [pl.BlockSpec(c.shape, lambda i: (0, 0)) for c in const_inputs]
    out = pl.pallas_call(
        kernel,
        grid=(Mp // tm,),
        in_specs=in_specs,
        out_specs=pl.BlockSpec((tm, out_dim), lambda i: (i, 0)),
        out_shape=jax.ShapeDtypeStruct((Mp, out_dim), out_dtype),
        compiler_params=_compiler_params(1),
    )(*padded, *const_inputs)
    return out[:M]


def _as2d(v):
    return v.reshape(1, -1)


def pallas_linear(x, w, b, relu=False):
    shp = x.shape
    out = _row_call(functools.partial(_linear_kernel, relu=relu),
                    [x.reshape(-1, shp[-1])], [w, _as2d(b)], w.shape[1])
    return out.reshape(shp[:-1] + (w.shape[1],))


def pallas_linear_residual(x, w, b, residual):
    shp = residual.shape
    out = _row_call(_linear_residual_kernel,
                    [x.reshape(-1, x.shape[-1]), residual.reshape(-1, shp[-1])],
                    [w, _as2d(b)], shp[-1])
    return out.reshape(shp)


def pallas_layernorm(x, g, b):
    shp = x.shape
    out = _row_call(_ln_kernel, [x.reshape(-1, shp[-1])],
                    [_as2d(g), _as2d(b)], shp[-1])
    return out.reshape(shp)


def pallas_ln_linear(x, g, b, w, wb):
    shp = x.shape
    out = _row_call(_ln_linear_kernel, [x.reshape(-1, shp[-1])],
                    [_as2d(g), _as2d(b), w, _as2d(wb)], w.shape[1])
    return out.reshape(shp[:-1] + (w.shape[1],))


def pallas_ln_ffn(x, g, b, w1, b1, w2, b2):
    shp = x.shape
    out = _row_call(_ln_ffn_kernel, [x.reshape(-1, shp[-1])],
                    [_as2d(g), _as2d(b), w1, _as2d(b1), w2, _as2d(b2)], shp[-1])
    return out.reshape(shp)


def pallas_linear_logsoftmax(x, w_pad, b_pad, odim):
    shp = x.shape
    out = _row_call(_linear_logsoftmax_kernel, [x.reshape(-1, shp[-1])],
                    [w_pad, _as2d(b_pad)], w_pad.shape[1])
    return out.reshape(shp[:-1] + (w_pad.shape[1],))[..., :odim]


def pallas_ln_linear_logsoftmax(x, g, b, w_pad, b_pad, odim):
    shp = x.shape
    out = _row_call(_ln_linear_logsoftmax_kernel, [x.reshape(-1, shp[-1])],
                    [_as2d(g), _as2d(b), w_pad, _as2d(b_pad)], w_pad.shape[1])
    return out.reshape(shp[:-1] + (w_pad.shape[1],))[..., :odim]


# ----------------------------- attention kernels ----------------------------

def _attn_core(q, k, v, m, n_heads, dk, scale):
    """q:(Tq,D) k/v:(Tk,D) f32, m:(1 or Tq, Tk) f32 {0,1}. Heads sliced in-kernel."""
    bias = (m - 1.0) * 1e9                 # additive mask: 0 keep / -1e9 drop
    outs = []
    for h in range(n_heads):
        sl = slice(h * dk, (h + 1) * dk)
        qh = q[:, sl].astype(BF16)
        kh = k[:, sl].astype(BF16)
        vh = v[:, sl].astype(BF16)
        # q @ k^T without a physical transpose (contract both on dim 1)
        s = jax.lax.dot_general(qh, kh, (((1,), (1,)), ((), ())),
                                preferred_element_type=jnp.float32)
        s = s * scale + bias
        p = jnp.exp(s - jnp.max(s, axis=-1, keepdims=True)) * m
        ctx = jnp.dot(p.astype(BF16), vh, preferred_element_type=jnp.float32)
        denom = jnp.sum(p, axis=-1, keepdims=True)
        outs.append(ctx * pl.reciprocal(denom + 1e-6, approx=True))
    return jnp.concatenate(outs, axis=-1)  # single lane-dense store of (Tq, D)


def _self_attn_kernel(qkv_ref, m_ref, o_ref, *, n_heads, dk, scale):
    D = n_heads * dk
    qkv = qkv_ref[0]
    o_ref[0] = _attn_core(qkv[:, :D], qkv[:, D:2 * D], qkv[:, 2 * D:],
                          m_ref[0], n_heads, dk, scale)


def _cross_attn_kernel(q_ref, kv_ref, m_ref, o_ref, *, n_heads, dk, scale):
    D = n_heads * dk
    kv = kv_ref[0]
    o_ref[0] = _attn_core(q_ref[0], kv[:, :D], kv[:, D:],
                          m_ref[0], n_heads, dk, scale)


def pallas_self_attention(qkv, mask_f, n_heads):
    """qkv: (B, T, 3D) from the fused LN+QKV projection; mask_f: (B, 1 or T, T)."""
    B, T, D3 = qkv.shape
    D = D3 // 3
    dk = D // n_heads
    Tm = mask_f.shape[1]
    return pl.pallas_call(
        functools.partial(_self_attn_kernel, n_heads=n_heads, dk=dk,
                          scale=1.0 / math.sqrt(dk)),
        grid=(B,),
        in_specs=[pl.BlockSpec((1, T, D3), lambda i: (i, 0, 0)),
                  pl.BlockSpec((1, Tm, T), lambda i: (i, 0, 0))],
        out_specs=pl.BlockSpec((1, T, D), lambda i: (i, 0, 0)),
        out_shape=jax.ShapeDtypeStruct((B, T, D), jnp.float32),
        compiler_params=_compiler_params(1),
    )(qkv, mask_f)


def pallas_cross_attention(q, kv, mask_f, n_heads):
    """q: (B, Tq, D); kv: (B, Tk, 2D) from the fused K|V projection; mask_f: (B, 1, Tk)."""
    B, Tq, D = q.shape
    Tk = kv.shape[1]
    dk = D // n_heads
    Tm = mask_f.shape[1]
    return pl.pallas_call(
        functools.partial(_cross_attn_kernel, n_heads=n_heads, dk=dk,
                          scale=1.0 / math.sqrt(dk)),
        grid=(B,),
        in_specs=[pl.BlockSpec((1, Tq, D), lambda i: (i, 0, 0)),
                  pl.BlockSpec((1, Tk, 2 * D), lambda i: (i, 0, 0)),
                  pl.BlockSpec((1, Tm, Tk), lambda i: (i, 0, 0))],
        out_specs=pl.BlockSpec((1, Tq, D), lambda i: (i, 0, 0)),
        out_shape=jax.ShapeDtypeStruct((B, Tq, D), jnp.float32),
        compiler_params=_compiler_params(1),
    )(q, kv, mask_f)


# ----------------------------- model pieces --------------------------------

def sinusoid_pe(T, d):
    pos = np.arange(T, dtype=np.float32)[:, None]
    div = np.exp(np.arange(0, d, 2, dtype=np.float32) * -(math.log(10000.0) / d))
    pe = np.zeros((T, d), dtype=np.float32)
    pe[:, 0::2] = np.sin(pos * div)
    pe[:, 1::2] = np.cos(pos * div)
    return jnp.asarray(pe)


# TODO(synk): im2col patches are still materialized in JAX; folding the 9-tap
# stride-2 accumulation directly into the conv matmul kernel would cut the conv
# input HBM traffic further (matters most on v5e).
def extract_patches_3x3_s2(x):
    """x: (B, T, F, C) -> (B, T2, F2, 9*C), kernel 3x3 stride 2 no padding."""
    B, T, F, C = x.shape
    T2 = (T - 3) // 2 + 1
    F2 = (F - 3) // 2 + 1
    cols = []
    for i in range(3):
        for j in range(3):
            cols.append(x[:, i:i + 2 * (T2 - 1) + 1:2, j:j + 2 * (F2 - 1) + 1:2, :])
    return jnp.concatenate(cols, axis=-1)


def encoder_layer(p, x, mask_f, n_heads):
    # normalize_before=True, concat_after=False.
    # Fused: LN1 + QKV projection | all-head attention | Wo + residual | LN2 + FFN + residual.
    qkv = pallas_ln_linear(x, p["ln1_g"], p["ln1_b"], p["w_qkv"], p["b_qkv"])
    ctx = pallas_self_attention(qkv, mask_f, n_heads)
    x = pallas_linear_residual(ctx, p["wo"], p["bo"], x)
    x = pallas_ln_ffn(x, p["ln2_g"], p["ln2_b"],
                      p["ff_w1"], p["ff_b1"], p["ff_w2"], p["ff_b2"])
    return x


def decoder_layer(p, x, tgt_mask_f, kv, mem_mask_f, n_heads):
    qkv = pallas_ln_linear(x, p["ln1_g"], p["ln1_b"], p["self_w_qkv"], p["self_b_qkv"])
    ctx = pallas_self_attention(qkv, tgt_mask_f, n_heads)
    x = pallas_linear_residual(ctx, p["self_wo"], p["self_bo"], x)
    q = pallas_ln_linear(x, p["ln2_g"], p["ln2_b"], p["src_wq"], p["src_bq"])
    ctx = pallas_cross_attention(q, kv, mem_mask_f, n_heads)
    x = pallas_linear_residual(ctx, p["src_wo"], p["src_bo"], x)
    x = pallas_ln_ffn(x, p["ln3_g"], p["ln3_b"],
                      p["ff_w1"], p["ff_b1"], p["ff_w2"], p["ff_b2"])
    return x


def encoder_forward(p, xs, src_mask, adim, n_heads):
    # Conv2dSubsampling (two 3x3 stride-2 convs + ReLU) via im2col + fused matmul kernels.
    x = xs[..., None].astype(jnp.float32)                        # (B, T, F, 1)
    x = pallas_linear(extract_patches_3x3_s2(x), p["conv1_w"], p["conv1_b"], relu=True)
    x = pallas_linear(extract_patches_3x3_s2(x), p["conv2_w"], p["conv2_b"], relu=True)
    B, T2, F2, C = x.shape
    x = x.transpose(0, 1, 3, 2).reshape(B, T2, C * F2)           # torch: transpose(1,2).view(b,t,c*f)
    x = pallas_linear(x, p["embed_w"], p["embed_b"])             # sqrt(adim) folded into weights
    x = x + sinusoid_pe(T2, adim)[None]
    mask = src_mask[:, :, :-2:2][:, :, :-2:2]                    # (B, 1, T')
    mask_f = mask.astype(jnp.float32)
    for lp in p["layers"]:
        x = encoder_layer(lp, x, mask_f, n_heads)
    x = pallas_layernorm(x, p["after_g"], p["after_b"])
    return x, mask


def decoder_forward(p, ys_in, tgt_mask, memory, memory_mask, adim, n_heads, odim):
    x = p["embed"][ys_in]                                        # sqrt(adim) folded into table
    L = ys_in.shape[1]
    x = x + sinusoid_pe(L, adim)[None]
    tgt_mask_f = tgt_mask.astype(jnp.float32)
    mem_mask_f = memory_mask.astype(jnp.float32)
    # Single fused K|V projection of the encoder memory for ALL decoder layers
    # (lane-dense 2*adim*dlayers output, one kernel launch), sliced per layer.
    kv_all = pallas_linear(memory, p["src_w_kv_all"], p["src_b_kv_all"])
    D2 = 2 * adim
    for li, lp in enumerate(p["layers"]):
        kv = kv_all[..., li * D2:(li + 1) * D2]
        x = decoder_layer(lp, x, tgt_mask_f, kv, mem_mask_f, n_heads)
    # fused after-norm + output projection (vocab padded to 128 lanes) + log-softmax
    return pallas_ln_linear_logsoftmax(x, p["after_g"], p["after_b"],
                                       p["out_w"], p["out_b"], odim)


# ----------------------------- losses ---------------------------------------

def label_smoothing_loss(logp, target, size, padding_idx, smoothing):
    # normalize_length=False -> denominator is the batch size.
    batch_size = logp.shape[0]
    x = logp.reshape(-1, size)
    t = target.reshape(-1)
    ignore = t == padding_idx
    t0 = jnp.where(ignore, 0, t)
    confidence = 1.0 - smoothing
    true_dist = jnp.full((x.shape[0], size), smoothing / (size - 1), jnp.float32)
    true_dist = true_dist.at[jnp.arange(x.shape[0]), t0].set(confidence)
    kl = jax.scipy.special.xlogy(true_dist, true_dist) - true_dist * x
    kl = jnp.where(ignore[:, None], 0.0, kl)
    return kl.sum() / batch_size


def th_accuracy(pred_logp, gold, ignore_label):
    pred_ids = jnp.argmax(pred_logp, axis=-1)
    mask = gold != ignore_label
    num = jnp.sum(jnp.where(mask, pred_ids == gold, False))
    return num / jnp.sum(mask)


def ctc_loss_batched(logp, hs_len, ext_labels, allow_mask, n_labels):
    """Batched CTC NLL (forward algorithm), vectorized over batch, lax.scan over time."""
    # TODO(synk): the CTC DP is inherently sequential over time; kept as lax.scan.
    B, T, _ = logp.shape
    S = ext_labels.shape[1]
    NEG = jnp.float32(NEG_BIG)
    idx = jnp.broadcast_to(ext_labels[:, None, :], (B, T, S))
    em = jnp.take_along_axis(logp, idx, axis=2)                  # (B, T, S)

    alpha0 = jnp.full((B, S), NEG)
    alpha0 = alpha0.at[:, 0].set(em[:, 0, 0])
    if S > 1:
        alpha0 = alpha0.at[:, 1].set(jnp.where(n_labels >= 1, em[:, 0, 1], NEG))
    allow = allow_mask > 0.5

    def step(alpha, inp):
        t, em_t = inp
        a1 = jnp.concatenate([jnp.full((B, 1), NEG), alpha[:, :-1]], axis=1)
        a2 = jnp.concatenate([jnp.full((B, 2), NEG), alpha[:, :-2]], axis=1)
        a2 = jnp.where(allow, a2, NEG)
        m = jnp.maximum(jnp.maximum(alpha, a1), a2)
        lse = m + jnp.log(jnp.exp(alpha - m) + jnp.exp(a1 - m) + jnp.exp(a2 - m))
        new = lse + em_t
        valid = (t < hs_len)[:, None]
        return jnp.where(valid, new, alpha), None

    ts = jnp.arange(1, T)
    em_rest = jnp.swapaxes(em[:, 1:, :], 0, 1)                   # (T-1, B, S)
    alpha, _ = jax.lax.scan(step, alpha0, (ts, em_rest))

    e1 = jnp.take_along_axis(alpha, (2 * n_labels)[:, None], axis=1)[:, 0]
    e2 = jnp.take_along_axis(alpha, jnp.maximum(2 * n_labels - 1, 0)[:, None], axis=1)[:, 0]
    e2 = jnp.where(n_labels >= 1, e2, NEG)
    nll = -jnp.logaddexp(e1, e2)
    return jnp.sum(nll) / B                                      # CTCLoss(reduction="sum") / batch


# ----------------------------- E2E forward (jittable) ------------------------

def e2e_forward(params, xs_pad, src_mask, ys_in, ys_out, ys_mask,
                ext_labels, allow_mask, n_labels, cfg):
    adim, odim, n_heads = cfg["adim"], cfg["odim"], cfg["aheads"]
    ignore_id = -1

    hs_pad, hs_mask = encoder_forward(params["encoder"], xs_pad, src_mask, adim, n_heads)

    # ---- attention branch ----
    pred_logp = decoder_forward(params["decoder"], ys_in, ys_mask, hs_pad, hs_mask,
                                adim, n_heads, odim)
    loss_att = label_smoothing_loss(pred_logp, ys_out, odim, ignore_id, cfg["lsm_weight"])
    acc = th_accuracy(pred_logp, ys_out, ignore_id)

    # ---- CTC branch (fused linear + log-softmax on the encoder output) ----
    hs_len = jnp.sum(hs_mask[:, 0, :].astype(jnp.int32), axis=-1)
    ctc_logp = pallas_linear_logsoftmax(hs_pad, params["ctc"]["w"], params["ctc"]["b"], odim)
    loss_ctc = ctc_loss_batched(ctc_logp, hs_len, ext_labels, allow_mask, n_labels)

    alpha = cfg["mtlalpha"]
    loss = alpha * loss_ctc + (1.0 - alpha) * loss_att
    return loss, {"loss_ctc": loss_ctc, "loss_att": loss_att, "acc": acc}


# ----------------------------- params ---------------------------------------

def init_params(key, idim, odim, adim, aheads, eunits, dunits, elayers, dlayers):
    """Raw (PyTorch-layout, f32) parameters."""
    keys = iter(jax.random.split(key, 512))

    def w(shape, scale=0.1):
        return (scale * jax.random.normal(next(keys), shape)).astype(jnp.float32)

    def zeros(shape):
        return jnp.zeros(shape, jnp.float32)

    def attn_params():
        return {"wq": w((adim, adim)), "bq": zeros((adim,)),
                "wk": w((adim, adim)), "bk": zeros((adim,)),
                "wv": w((adim, adim)), "bv": zeros((adim,)),
                "wo": w((adim, adim)), "bo": zeros((adim,))}

    def ff_params(units):
        return {"w1": w((adim, units)), "b1": zeros((units,)),
                "w2": w((units, adim)), "b2": zeros((adim,))}

    F2 = ((idim - 1) // 2 - 1) // 2
    enc = {
        "conv1_w": w((9 * 1, adim)), "conv1_b": zeros((adim,)),
        "conv2_w": w((9 * adim, adim)), "conv2_b": zeros((adim,)),
        "embed_w": w((adim * F2, adim)), "embed_b": zeros((adim,)),
        "layers": [],
        "after_g": jnp.ones((adim,), jnp.float32), "after_b": zeros((adim,)),
    }
    for _ in range(elayers):
        enc["layers"].append({
            "self_attn": attn_params(), "ff": ff_params(eunits),
            "ln1_g": jnp.ones((adim,), jnp.float32), "ln1_b": zeros((adim,)),
            "ln2_g": jnp.ones((adim,), jnp.float32), "ln2_b": zeros((adim,)),
        })

    dec = {
        "embed": w((odim, adim)),
        "layers": [],
        "after_g": jnp.ones((adim,), jnp.float32), "after_b": zeros((adim,)),
        "out_w": w((adim, odim)), "out_b": zeros((odim,)),
    }
    for _ in range(dlayers):
        dec["layers"].append({
            "self_attn": attn_params(), "src_attn": attn_params(), "ff": ff_params(dunits),
            "ln1_g": jnp.ones((adim,), jnp.float32), "ln1_b": zeros((adim,)),
            "ln2_g": jnp.ones((adim,), jnp.float32), "ln2_b": zeros((adim,)),
            "ln3_g": jnp.ones((adim,), jnp.float32), "ln3_b": zeros((adim,)),
        })

    ctc = {"w": w((adim, odim)), "b": zeros((odim,))}
    return {"encoder": enc, "decoder": dec, "ctc": ctc}


def _pad_vocab_linear(w, b, odim, v_pad):
    """Zero-pad weight columns to v_pad; pad bias with -1e30 so padded logits vanish."""
    wp = jnp.zeros((w.shape[0], v_pad), jnp.float32).at[:, :odim].set(w)
    bp = jnp.full((v_pad,), NEG_BIG, jnp.float32).at[:odim].set(b)
    return wp.astype(BF16), bp


def prepare_params(raw, cfg):
    """Fuse QKV / K|V weights, fold sqrt(adim) scales, cast matmul weights to bf16,
    and pad vocab-sized projections to a multiple of 128 lanes."""
    adim, odim = cfg["adim"], cfg["odim"]
    v_pad = _round_up(odim, 128)
    scale = math.sqrt(adim)

    enc_raw = raw["encoder"]
    enc = {"conv1_w": enc_raw["conv1_w"].astype(BF16), "conv1_b": enc_raw["conv1_b"],
           "conv2_w": enc_raw["conv2_w"].astype(BF16), "conv2_b": enc_raw["conv2_b"],
           "embed_w": (enc_raw["embed_w"] * scale).astype(BF16),
           "embed_b": enc_raw["embed_b"] * scale,
           "after_g": enc_raw["after_g"], "after_b": enc_raw["after_b"],
           "layers": []}
    for lr in enc_raw["layers"]:
        a = lr["self_attn"]
        enc["layers"].append({
            "w_qkv": jnp.concatenate([a["wq"], a["wk"], a["wv"]], axis=1).astype(BF16),
            "b_qkv": jnp.concatenate([a["bq"], a["bk"], a["bv"]]),
            "wo": a["wo"].astype(BF16), "bo": a["bo"],
            "ln1_g": lr["ln1_g"], "ln1_b": lr["ln1_b"],
            "ln2_g": lr["ln2_g"], "ln2_b": lr["ln2_b"],
            "ff_w1": lr["ff"]["w1"].astype(BF16), "ff_b1": lr["ff"]["b1"],
            "ff_w2": lr["ff"]["w2"].astype(BF16), "ff_b2": lr["ff"]["b2"],
        })

    dec_raw = raw["decoder"]
    out_w, out_b = _pad_vocab_linear(dec_raw["out_w"], dec_raw["out_b"], odim, v_pad)
    dec = {"embed": dec_raw["embed"] * scale,
           "after_g": dec_raw["after_g"], "after_b": dec_raw["after_b"],
           "out_w": out_w, "out_b": out_b, "layers": []}
    src_w_kv_all, src_b_kv_all = [], []
    for lr in dec_raw["layers"]:
        sa = lr["self_attn"]
        sr = lr["src_attn"]
        src_w_kv_all.append(jnp.concatenate([sr["wk"], sr["wv"]], axis=1))
        src_b_kv_all.append(jnp.concatenate([sr["bk"], sr["bv"]]))
        dec["layers"].append({
            "self_w_qkv": jnp.concatenate([sa["wq"], sa["wk"], sa["wv"]], axis=1).astype(BF16),
            "self_b_qkv": jnp.concatenate([sa["bq"], sa["bk"], sa["bv"]]),
            "self_wo": sa["wo"].astype(BF16), "self_bo": sa["bo"],
            "src_wq": sr["wq"].astype(BF16), "src_bq": sr["bq"],
            "src_wo": sr["wo"].astype(BF16), "src_bo": sr["bo"],
            "ln1_g": lr["ln1_g"], "ln1_b": lr["ln1_b"],
            "ln2_g": lr["ln2_g"], "ln2_b": lr["ln2_b"],
            "ln3_g": lr["ln3_g"], "ln3_b": lr["ln3_b"],
            "ff_w1": lr["ff"]["w1"].astype(BF16), "ff_b1": lr["ff"]["b1"],
            "ff_w2": lr["ff"]["w2"].astype(BF16), "ff_b2": lr["ff"]["b2"],
        })
    # one lane-dense K|V projection weight for all decoder layers
    dec["src_w_kv_all"] = jnp.concatenate(src_w_kv_all, axis=1).astype(BF16)
    dec["src_b_kv_all"] = jnp.concatenate(src_b_kv_all)

    ctc_w, ctc_b = _pad_vocab_linear(raw["ctc"]["w"], raw["ctc"]["b"], odim, v_pad)
    return {"encoder": enc, "decoder": dec, "ctc": {"w": ctc_w, "b": ctc_b}}


# ----------------------------- host-side batch prep --------------------------

def prepare_targets(ys_pad, odim, ignore_id=-1):
    sos = eos = odim - 1
    ys_list = [y[y != ignore_id].tolist() for y in np.asarray(ys_pad)]
    B = len(ys_list)
    Lmax = max(len(y) for y in ys_list)
    L = Lmax + 1
    ys_in = np.full((B, L), eos, np.int32)
    ys_out = np.full((B, L), ignore_id, np.int32)
    for b, y in enumerate(ys_list):
        ys_in[b, 0] = sos
        ys_in[b, 1:1 + len(y)] = y
        ys_out[b, :len(y)] = y
        ys_out[b, len(y)] = eos
    non_pad = (ys_in != ignore_id)[:, None, :]
    subseq = np.tril(np.ones((L, L), dtype=bool))[None]
    ys_mask = np.logical_and(non_pad, subseq)
    return jnp.asarray(ys_in), jnp.asarray(ys_out), jnp.asarray(ys_mask), ys_list


def prepare_ctc_labels(ys_list, blank=0):
    B = len(ys_list)
    U_max = max(len(y) for y in ys_list)
    S = 2 * U_max + 1
    ext = np.zeros((B, S), np.int32)            # blank-interleaved, blank-padded
    allow = np.zeros((B, S), np.float32)
    n_labels = np.zeros((B,), np.int32)
    for b, y in enumerate(ys_list):
        n_labels[b] = len(y)
        for i, lab in enumerate(y):
            ext[b, 2 * i + 1] = lab
        for s in range(2, 2 * len(y) + 1):
            if ext[b, s] != blank and ext[b, s] != ext[b, s - 2]:
                allow[b, s] = 1.0
    return jnp.asarray(ext), jnp.asarray(allow), jnp.asarray(n_labels)


# ----------------------------- main ------------------------------------------

if __name__ == "__main__":
    cfg = dict(idim=16, odim=11, adim=32, aheads=4, eunits=64, dunits=64,
               elayers=2, dlayers=2, mtlalpha=0.3, lsm_weight=0.1)

    key = jax.random.PRNGKey(0)
    k_par, k_x = jax.random.split(key)

    raw_params = init_params(k_par, cfg["idim"], cfg["odim"], cfg["adim"], cfg["aheads"],
                             cfg["eunits"], cfg["dunits"], cfg["elayers"], cfg["dlayers"])
    params = prepare_params(raw_params, cfg)

    B, Tmax = 2, 32
    xs_pad = jax.random.normal(k_x, (B, Tmax, cfg["idim"]), dtype=jnp.float32)
    ilens = np.array([32, 24], dtype=np.int32)
    ys_pad = np.array([[1, 2, 3, 4],
                       [5, 6, 7, -1]], dtype=np.int32)           # -1 = ignore_id padding

    # Host-side batch prep (masks / sos-eos targets / CTC label tables) done once,
    # so the jitted forward has no device->host syncs.
    xs_pad = xs_pad[:, :int(ilens.max())]
    Tcur = xs_pad.shape[1]
    src_mask = jnp.asarray((np.arange(Tcur)[None, :] < ilens[:, None])[:, None, :])
    ys_in, ys_out, ys_mask, ys_list = prepare_targets(ys_pad, cfg["odim"])
    ext_labels, allow_mask, n_labels = prepare_ctc_labels(ys_list)

    @jax.jit
    def fwd(params, xs_pad, src_mask, ys_in, ys_out, ys_mask,
            ext_labels, allow_mask, n_labels):
        return e2e_forward(params, xs_pad, src_mask, ys_in, ys_out, ys_mask,
                           ext_labels, allow_mask, n_labels, cfg)

    loss, aux = fwd(params, xs_pad, src_mask, ys_in, ys_out, ys_mask,
                    ext_labels, allow_mask, n_labels)
    loss = jax.block_until_ready(loss)
    assert np.isfinite(float(loss))
    print("KERNEL_OK")
</pallas_src>

<mosaic_0001>
module attributes {stable_mosaic.version = 11 : i64} {
  func.func @_linear_kernel(%arg0: i32, %arg1: memref<216x9xf32, #tpu.memory_space<vmem>>, %arg2: memref<9x32xbf16, #tpu.memory_space<vmem>>, %arg3: memref<1x32xf32, #tpu.memory_space<vmem>>, %arg4: memref<216x32xf32, #tpu.memory_space<vmem>>) attributes {dimension_semantics = [#tpu.dimension_semantics<parallel>], iteration_bounds = array<i64: 1>, scalar_prefetch = 0 : i64, scratch_operands = 0 : i64, tpu.core_type = #tpu.core_type<tc>, window_params = [{transform_indices = @transform_0, window_bounds = array<i64: 216, 9>}, {pipeline_mode = #tpu.pipeline_mode<synchronous>, transform_indices = @transform_1, window_bounds = array<i64: 9, 32>}, {pipeline_mode = #tpu.pipeline_mode<synchronous>, transform_indices = @transform_2, window_bounds = array<i64: 1, 32>}, {transform_indices = @transform_3, window_bounds = array<i64: 216, 32>}]} {
    %c0 = arith.constant 0 : index
    %c0_0 = arith.constant 0 : index
    %0 = vector.load %arg1[%c0, %c0_0] : memref<216x9xf32, #tpu.memory_space<vmem>>, vector<216x9xf32>
    %c0_1 = arith.constant 0 : index
    %c0_2 = arith.constant 0 : index
    %1 = vector.load %arg2[%c0_1, %c0_2] : memref<9x32xbf16, #tpu.memory_space<vmem>>, vector<9x32xbf16>
    %2 = arith.truncf %0 : vector<216x9xf32> to vector<216x9xbf16>
    %cst = arith.constant dense<0.000000e+00> : vector<216x32xf32>
    %3 = tpu.matmul %2, %1, %cst {dimension_numbers = #tpu.dot_dimension_numbers<[1], [0], [0], [1], [0, 0, 1, 1], [], []>} : vector<216x9xbf16>, vector<9x32xbf16>, vector<216x32xf32> -> vector<216x32xf32>
    %c0_3 = arith.constant 0 : index
    %c0_4 = arith.constant 0 : index
    %4 = vector.load %arg3[%c0_3, %c0_4] : memref<1x32xf32, #tpu.memory_space<vmem>>, vector<1x32xf32>
    %5 = vector.broadcast %4 : vector<1x32xf32> to vector<216x32xf32>
    %6 = arith.addf %3, %5 : vector<216x32xf32>
    %cst_5 = arith.constant 0.000000e+00 : f32
    %7 = vector.broadcast %cst_5 : f32 to vector<216x32xf32>
    %8 = arith.maximumf %6, %7 : vector<216x32xf32>
    %c0_6 = arith.constant 0 : index
    %c0_7 = arith.constant 0 : index
    %9 = vector.load %arg4[%c0_6, %c0_7] : memref<216x32xf32, #tpu.memory_space<vmem>>, vector<216x32xf32>
    tpu.vector_store %arg4[%c0_6, %c0_7], %8 {strides = array<i32>} : memref<216x32xf32, #tpu.memory_space<vmem>>, vector<216x32xf32>,
    return
  }
  func.func @transform_0(%arg0: i32) -> (i32, i32) {
    %c0_i32 = arith.constant 0 : i32
    %c0_i32_0 = arith.constant 0 : i32
    return %arg0, %c0_i32 : i32, i32
  }
  func.func @transform_1(%arg0: i32) -> (i32, i32) {
    %c0_i32 = arith.constant 0 : i32
    %c0_i32_0 = arith.constant 0 : i32
    %c0_i32_1 = arith.constant 0 : i32
    return %c0_i32, %c0_i32_0 : i32, i32
  }
  func.func @transform_2(%arg0: i32) -> (i32, i32) {
    %c0_i32 = arith.constant 0 : i32
    %c0_i32_0 = arith.constant 0 : i32
    %c0_i32_1 = arith.constant 0 : i32
    return %c0_i32, %c0_i32_0 : i32, i32
  }
  func.func @transform_3(%arg0: i32) -> (i32, i32) {
    %c0_i32 = arith.constant 0 : i32
    %c0_i32_0 = arith.constant 0 : i32
    return %arg0, %c0_i32 : i32, i32
  }
}

module attributes {stable_mosaic.version = 11 : i64} {
  func.func @_linear_kernel(%arg0: i32, %arg1: memref<48x288xf32, #tpu.memory_space<vmem>>, %arg2: memref<288x32xbf16, #tpu.memory_space<vmem>>, %arg3: memref<1x32xf32, #tpu.memory_space<vmem>>, %arg4: memref<48x32xf32, #tpu.memory_space<vmem>>) attributes {dimension_semantics = [#tpu.dimension_semantics<parallel>], iteration_bounds = array<i64: 1>, scalar_prefetch = 0 : i64, scratch_operands = 0 : i64, tpu.core_type = #tpu.core_type<tc>, window_params = [{transform_indices = @transform_0, window_bounds = array<i64: 48, 288>}, {pipeline_mode = #tpu.pipeline_mode<synchronous>, transform_indices = @transform_1, window_bounds = array<i64: 288, 32>}, {pipeline_mode = #tpu.pipeline_mode<synchronous>, transform_indices = @transform_2, window_bounds = array<i64: 1, 32>}, {transform_indices = @transform_3, window_bounds = array<i64: 48, 32>}]} {
    %c0 = arith.constant 0 : index
    %c0_0 = arith.constant 0 : index
    %0 = vector.load %arg1[%c0, %c0_0] : memref<48x288xf32, #tpu.memory_space<vmem>>, vector<48x288xf32>
    %c0_1 = arith.constant 0 : index
    %c0_2 = arith.constant 0 : index
    %1 = vector.load %arg2[%c0_1, %c0_2] : memref<288x32xbf16, #tpu.memory_space<vmem>>, vector<288x32xbf16>
    %2 = arith.truncf %0 : vector<48x288xf32> to vector<48x288xbf16>
    %cst = arith.constant dense<0.000000e+00> : vector<48x32xf32>
    %3 = tpu.matmul %2, %1, %cst {dimension_numbers = #tpu.dot_dimension_numbers<[1], [0], [0], [1], [0, 0, 1, 1], [], []>} : vector<48x288xbf16>, vector<288x32xbf16>, vector<48x32xf32> -> vector<48x32xf32>
    %c0_3 = arith.constant 0 : index
    %c0_4 = arith.constant 0 : index
    %4 = vector.load %arg3[%c0_3, %c0_4] : memref<1x32xf32, #tpu.memory_space<vmem>>, vector<1x32xf32>
    %5 = vector.broadcast %4 : vector<1x32xf32> to vector<48x32xf32>
    %6 = arith.addf %3, %5 : vector<48x32xf32>
    %cst_5 = arith.constant 0.000000e+00 : f32
    %7 = vector.broadcast %cst_5 : f32 to vector<48x32xf32>
    %8 = arith.maximumf %6, %7 : vector<48x32xf32>
    %c0_6 = arith.constant 0 : index
    %c0_7 = arith.constant 0 : index
    %9 = vector.load %arg4[%c0_6, %c0_7] : memref<48x32xf32, #tpu.memory_space<vmem>>, vector<48x32xf32>
    tpu.vector_store %arg4[%c0_6, %c0_7], %8 {strides = array<i32>} : memref<48x32xf32, #tpu.memory_space<vmem>>, vector<48x32xf32>,
    return
  }
  func.func @transform_0(%arg0: i32) -> (i32, i32) {
    %c0_i32 = arith.constant 0 : i32
    %c0_i32_0 = arith.constant 0 : i32
    return %arg0, %c0_i32 : i32, i32
  }
  func.func @transform_1(%arg0: i32) -> (i32, i32) {
    %c0_i32 = arith.constant 0 : i32
    %c0_i32_0 = arith.constant 0 : i32
    %c0_i32_1 = arith.constant 0 : i32
    return %c0_i32, %c0_i32_0 : i32, i32
  }
  func.func @transform_2(%arg0: i32) -> (i32, i32) {
    %c0_i32 = arith.constant 0 : i32
    %c0_i32_0 = arith.constant 0 : i32
    %c0_i32_1 = arith.constant 0 : i32
    return %c0_i32, %c0_i32_0 : i32, i32
  }
  func.func @transform_3(%arg0: i32) -> (i32, i32) {
    %c0_i32 = arith.constant 0 : i32
    %c0_i32_0 = arith.constant 0 : i32
    return %arg0, %c0_i32 : i32, i32
  }
}

module attributes {stable_mosaic.version = 11 : i64} {
  func.func @_linear_kernel(%arg0: i32, %arg1: memref<16x96xf32, #tpu.memory_space<vmem>>, %arg2: memref<96x32xbf16, #tpu.memory_space<vmem>>, %arg3: memref<1x32xf32, #tpu.memory_space<vmem>>, %arg4: memref<16x32xf32, #tpu.memory_space<vmem>>) attributes {dimension_semantics = [#tpu.dimension_semantics<parallel>], iteration_bounds = array<i64: 1>, scalar_prefetch = 0 : i64, scratch_operands = 0 : i64, tpu.core_type = #tpu.core_type<tc>, window_params = [{transform_indices = @transform_0, window_bounds = array<i64: 16, 96>}, {pipeline_mode = #tpu.pipeline_mode<synchronous>, transform_indices = @transform_1, window_bounds = array<i64: 96, 32>}, {pipeline_mode = #tpu.pipeline_mode<synchronous>, transform_indices = @transform_2, window_bounds = array<i64: 1, 32>}, {transform_indices = @transform_3, window_bounds = array<i64: 16, 32>}]} {
    %c0 = arith.constant 0 : index
    %c0_0 = arith.constant 0 : index
    %0 = vector.load %arg1[%c0, %c0_0] : memref<16x96xf32, #tpu.memory_space<vmem>>, vector<16x96xf32>
    %c0_1 = arith.constant 0 : index
    %c0_2 = arith.constant 0 : index
    %1 = vector.load %arg2[%c0_1, %c0_2] : memref<96x32xbf16, #tpu.memory_space<vmem>>, vector<96x32xbf16>
    %2 = arith.truncf %0 : vector<16x96xf32> to vector<16x96xbf16>
    %cst = arith.constant dense<0.000000e+00> : vector<16x32xf32>
    %3 = tpu.matmul %2, %1, %cst {dimension_numbers = #tpu.dot_dimension_numbers<[1], [0], [0], [1], [0, 0, 1, 1], [], []>} : vector<16x96xbf16>, vector<96x32xbf16>, vector<16x32xf32> -> vector<16x32xf32>
    %c0_3 = arith.constant 0 : index
    %c0_4 = arith.constant 0 : index
    %4 = vector.load %arg3[%c0_3, %c0_4] : memref<1x32xf32, #tpu.memory_space<vmem>>, vector<1x32xf32>
    %5 = vector.broadcast %4 : vector<1x32xf32> to vector<16x32xf32>
    %6 = arith.addf %3, %5 : vector<16x32xf32>
    %c0_5 = arith.constant 0 : index
    %c0_6 = arith.constant 0 : index
    %7 = vector.load %arg4[%c0_5, %c0_6] : memref<16x32xf32, #tpu.memory_space<vmem>>, vector<16x32xf32>
    tpu.vector_store %arg4[%c0_5, %c0_6], %6 {strides = array<i32>} : memref<16x32xf32, #tpu.memory_space<vmem>>, vector<16x32xf32>,
    return
  }
  func.func @transform_0(%arg0: i32) -> (i32, i32) {
    %c0_i32 = arith.constant 0 : i32
    %c0_i32_0 = arith.constant 0 : i32
    return %arg0, %c0_i32 : i32, i32
  }
  func.func @transform_1(%arg0: i32) -> (i32, i32) {
    %c0_i32 = arith.constant 0 : i32
    %c0_i32_0 = arith.constant 0 : i32
    %c0_i32_1 = arith.constant 0 : i32
    return %c0_i32, %c0_i32_0 : i32, i32
  }
  func.func @transform_2(%arg0: i32) -> (i32, i32) {
    %c0_i32 = arith.constant 0 : i32
    %c0_i32_0 = arith.constant 0 : i32
    %c0_i32_1 = arith.constant 0 : i32
    return %c0_i32, %c0_i32_0 : i32, i32
  }
  func.func @transform_3(%arg0: i32) -> (i32, i32) {
    %c0_i32 = arith.constant 0 : i32
    %c0_i32_0 = arith.constant 0 : i32
    return %arg0, %c0_i32 : i32, i32
  }
}

module attributes {stable_mosaic.version = 11 : i64} {
  func.func @_ln_linear_kernel(%arg0: i32, %arg1: memref<16x32xf32, #tpu.memory_space<vmem>>, %arg2: memref<1x32xf32, #tpu.memory_space<vmem>>, %arg3: memref<1x32xf32, #tpu.memory_space<vmem>>, %arg4: memref<32x96xbf16, #tpu.memory_space<vmem>>, %arg5: memref<1x96xf32, #tpu.memory_space<vmem>>, %arg6: memref<16x96xf32, #tpu.memory_space<vmem>>) attributes {dimension_semantics = [#tpu.dimension_semantics<parallel>], iteration_bounds = array<i64: 1>, scalar_prefetch = 0 : i64, scratch_operands = 0 : i64, tpu.core_type = #tpu.core_type<tc>, window_params = [{transform_indices = @transform_0, window_bounds = array<i64: 16, 32>}, {pipeline_mode = #tpu.pipeline_mode<synchronous>, transform_indices = @transform_1, window_bounds = array<i64: 1, 32>}, {pipeline_mode = #tpu.pipeline_mode<synchronous>, transform_indices = @transform_2, window_bounds = array<i64: 1, 32>}, {pipeline_mode = #tpu.pipeline_mode<synchronous>, transform_indices = @transform_3, window_bounds = array<i64: 32, 96>}, {pipeline_mode = #tpu.pipeline_mode<synchronous>, transform_indices = @transform_4, window_bounds = array<i64: 1, 96>}, {transform_indices = @transform_5, window_bounds = array<i64: 16, 96>}]} {
    %c0 = arith.constant 0 : index
    %c0_0 = arith.constant 0 : index
    %0 = vector.load %arg1[%c0, %c0_0] : memref<16x32xf32, #tpu.memory_space<vmem>>, vector<16x32xf32>
    %c0_1 = arith.constant 0 : index
    %c0_2 = arith.constant 0 : index
    %1 = vector.load %arg2[%c0_1, %c0_2] : memref<1x32xf32, #tpu.memory_space<vmem>>, vector<1x32xf32>
    %c0_3 = arith.constant 0 : index
    %c0_4 = arith.constant 0 : index
    %2 = vector.load %arg3[%c0_3, %c0_4] : memref<1x32xf32, #tpu.memory_space<vmem>>, vector<1x32xf32>
    %cst = arith.constant dense<0.000000e+00> : vector<16xf32>
    %3 = vector.multi_reduction <add>, %0, %cst [1] : vector<16x32xf32> to vector<16xf32>
    %4 = vector.shape_cast %3 : vector<16xf32> to vector<16x1xf32>
    %cst_5 = arith.constant 3.200000e+01 : f32
    %5 = vector.broadcast %cst_5 : f32 to vector<16x1xf32>
    %6 = arith.divf %4, %5 : vector<16x1xf32>
    %7 = vector.broadcast %6 : vector<16x1xf32> to vector<16x32xf32>
    %8 = arith.subf %0, %7 : vector<16x32xf32>
    %9 = arith.mulf %8, %8 : vector<16x32xf32>
    %cst_6 = arith.constant dense<0.000000e+00> : vector<16xf32>
    %10 = vector.multi_reduction <add>, %9, %cst_6 [1] : vector<16x32xf32> to vector<16xf32>
    %11 = vector.shape_cast %10 : vector<16xf32> to vector<16x1xf32>
    %cst_7 = arith.constant 3.200000e+01 : f32
    %12 = vector.broadcast %cst_7 : f32 to vector<16x1xf32>
    %13 = arith.divf %11, %12 : vector<16x1xf32>
    %14 = vector.broadcast %6 : vector<16x1xf32> to vector<16x32xf32>
    %15 = arith.subf %0, %14 : vector<16x32xf32>
    %cst_8 = arith.constant 9.99999996E-13 : f32
    %16 = vector.broadcast %cst_8 : f32 to vector<16x1xf32>
    %17 = arith.addf %13, %16 : vector<16x1xf32>
    %18 = math.rsqrt %17 : vector<16x1xf32>
    %19 = vector.broadcast %18 : vector<16x1xf32> to vector<16x32xf32>
    %20 = arith.mulf %15, %19 : vector<16x32xf32>
    %21 = vector.broadcast %1 : vector<1x32xf32> to vector<16x32xf32>
    %22 = arith.mulf %20, %21 : vector<16x32xf32>
    %23 = vector.broadcast %2 : vector<1x32xf32> to vector<16x32xf32>
    %24 = arith.addf %22, %23 : vector<16x32xf32>
    %c0_9 = arith.constant 0 : index
    %c0_10 = arith.constant 0 : index
    %25 = vector.load %arg4[%c0_9, %c0_10] : memref<32x96xbf16, #tpu.memory_space<vmem>>, vector<32x96xbf16>
    %26 = arith.truncf %24 : vector<16x32xf32> to vector<16x32xbf16>
    %cst_11 = arith.constant dense<0.000000e+00> : vector<16x96xf32>
    %27 = tpu.matmul %26, %25, %cst_11 {dimension_numbers = #tpu.dot_dimension_numbers<[1], [0], [0], [1], [0, 0, 1, 1], [], []>} : vector<16x32xbf16>, vector<32x96xbf16>, vector<16x96xf32> -> vector<16x96xf32>
    %c0_12 = arith.constant 0 : index
    %c0_13 = arith.constant 0 : index
    %28 = vector.load %arg5[%c0_12, %c0_13] : memref<1x96xf32, #tpu.memory_space<vmem>>, vector<1x96xf32>
    %29 = vector.broadcast %28 : vector<1x96xf32> to vector<16x96xf32>
    %30 = arith.addf %27, %29 : vector<16x96xf32>
    %c0_14 = arith.constant 0 : index
    %c0_15 = arith.constant 0 : index
    %31 = vector.load %arg6[%c0_14, %c0_15] : memref<16x96xf32, #tpu.memory_space<vmem>>, vector<16x96xf32>
    tpu.vector_store %arg6[%c0_14, %c0_15], %30 {strides = array<i32>} : memref<16x96xf32, #tpu.memory_space<vmem>>, vector<16x96xf32>,
    return
  }
  func.func @transform_0(%arg0: i32) -> (i32, i32) {
    %c0_i32 = arith.constant 0 : i32
    %c0_i32_0 = arith.constant 0 : i32
    return %arg0, %c0_i32 : i32, i32
  }
  func.func @transform_1(%arg0: i32) -> (i32, i32) {
    %c0_i32 = arith.constant 0 : i32
    %c0_i32_0 = arith.constant 0 : i32
    %c0_i32_1 = arith.constant 0 : i32
    return %c0_i32, %c0_i32_0 : i32, i32
  }
  func.func @transform_2(%arg0: i32) -> (i32, i32) {
    %c0_i32 = arith.constant 0 : i32
    %c0_i32_0 = arith.constant 0 : i32
    %c0_i32_1 = arith.constant 0 : i32
    return %c0_i32, %c0_i32_0 : i32, i32
  }
  func.func @transform_3(%arg0: i32) -> (i32, i32) {
    %c0_i32 = arith.constant 0 : i32
    %c0_i32_0 = arith.constant 0 : i32
    %c0_i32_1 = arith.constant 0 : i32
    return %c0_i32, %c0_i32_0 : i32, i32
  }
  func.func @transform_4(%arg0: i32) -> (i32, i32) {
    %c0_i32 = arith.constant 0 : i32
    %c0_i32_0 = arith.constant 0 : i32
    %c0_i32_1 = arith.constant 0 : i32
    return %c0_i32, %c0_i32_0 : i32, i32
  }
  func.func @transform_5(%arg0: i32) -> (i32, i32) {
    %c0_i32 = arith.constant 0 : i32
    %c0_i32_0 = arith.constant 0 : i32
    return %arg0, %c0_i32 : i32, i32
  }
}

module attributes {stable_mosaic.version = 11 : i64} {
  func.func @_self_attn_kernel(%arg0: i32, %arg1: memref<1x7x96xf32, #tpu.memory_space<vmem>>, %arg2: memref<1x1x7xf32, #tpu.memory_space<vmem>>, %arg3: memref<1x7x32xf32, #tpu.memory_space<vmem>>) attributes {dimension_semantics = [#tpu.dimension_semantics<parallel>], iteration_bounds = array<i64: 2>, scalar_prefetch = 0 : i64, scratch_operands = 0 : i64, tpu.core_type = #tpu.core_type<tc>, window_params = [{transform_indices = @transform_0, window_bounds = array<i64: 1, 7, 96>}, {transform_indices = @transform_1, window_bounds = array<i64: 1, 1, 7>}, {transform_indices = @transform_2, window_bounds = array<i64: 1, 7, 32>}]} {
    %c0 = arith.constant 0 : index
    %c0_0 = arith.constant 0 : index
    %c0_1 = arith.constant 0 : index
    %0 = vector.load %arg1[%c0, %c0_0, %c0_1] : memref<1x7x96xf32, #tpu.memory_space<vmem>>, vector<1x7x96xf32>
    %1 = vector.shape_cast %0 : vector<1x7x96xf32> to vector<7x96xf32>
    %2 = vector.extract_strided_slice %1 {offsets = [0, 0], sizes = [7, 32], strides = [1, 1]} : vector<7x96xf32> to vector<7x32xf32>
    %3 = vector.extract_strided_slice %1 {offsets = [0, 32], sizes = [7, 32], strides = [1, 1]} : vector<7x96xf32> to vector<7x32xf32>
    %4 = vector.extract_strided_slice %1 {offsets = [0, 64], sizes = [7, 32], strides = [1, 1]} : vector<7x96xf32> to vector<7x32xf32>
    %c0_2 = arith.constant 0 : index
    %c0_3 = arith.constant 0 : index
    %c0_4 = arith.constant 0 : index
    %5 = vector.load %arg2[%c0_2, %c0_3, %c0_4] : memref<1x1x7xf32, #tpu.memory_space<vmem>>, vector<1x1x7xf32>
    %6 = vector.shape_cast %5 : vector<1x1x7xf32> to vector<1x7xf32>
    %cst = arith.constant 1.000000e+00 : f32
    %7 = vector.broadcast %cst : f32 to vector<1x7xf32>
    %8 = arith.subf %6, %7 : vector<1x7xf32>
    %cst_5 = arith.constant 1.000000e+09 : f32
    %9 = vector.broadcast %cst_5 : f32 to vector<1x7xf32>
    %10 = arith.mulf %8, %9 : vector<1x7xf32>
    %11 = vector.extract_strided_slice %2 {offsets = [0, 0], sizes = [7, 8], strides = [1, 1]} : vector<7x32xf32> to vector<7x8xf32>
    %12 = arith.truncf %11 : vector<7x8xf32> to vector<7x8xbf16>
    %13 = vector.extract_strided_slice %3 {offsets = [0, 0], sizes = [7, 8], strides = [1, 1]} : vector<7x32xf32> to vector<7x8xf32>
    %14 = arith.truncf %13 : vector<7x8xf32> to vector<7x8xbf16>
    %15 = vector.extract_strided_slice %4 {offsets = [0, 0], sizes = [7, 8], strides = [1, 1]} : vector<7x32xf32> to vector<7x8xf32>
    %16 = arith.truncf %15 : vector<7x8xf32> to vector<7x8xbf16>
    %cst_6 = arith.constant dense<0.000000e+00> : vector<7x7xf32>
    %17 = tpu.matmul %12, %14, %cst_6 {dimension_numbers = #tpu.dot_dimension_numbers<[1], [1], [0], [0], [0, 0, 1, 0], [], []>} : vector<7x8xbf16>, vector<7x8xbf16>, vector<7x7xf32> -> vector<7x7xf32>
    %cst_7 = arith.constant 0.353553385 : f32
    %18 = vector.broadcast %cst_7 : f32 to vector<7x7xf32>
    %19 = arith.mulf %17, %18 : vector<7x7xf32>
    %20 = vector.broadcast %10 : vector<1x7xf32> to vector<7x7xf32>
    %21 = arith.addf %19, %20 : vector<7x7xf32>
    %cst_8 = arith.constant dense<0xFF800000> : vector<7xf32>
    %22 = vector.multi_reduction <maximumf>, %21, %cst_8 [1] : vector<7x7xf32> to vector<7xf32>
    %23 = vector.shape_cast %22 : vector<7xf32> to vector<7x1xf32>
    %24 = vector.broadcast %23 : vector<7x1xf32> to vector<7x7xf32>
    %25 = arith.subf %21, %24 : vector<7x7xf32>
    %26 = math.exp %25 : vector<7x7xf32>
    %27 = vector.broadcast %6 : vector<1x7xf32> to vector<7x7xf32>
    %28 = arith.mulf %26, %27 : vector<7x7xf32>
    %29 = arith.truncf %28 : vector<7x7xf32> to vector<7x7xbf16>
    %cst_9 = arith.constant dense<0.000000e+00> : vector<7x8xf32>
    %30 = tpu.matmul %29, %16, %cst_9 {dimension_numbers = #tpu.dot_dimension_numbers<[1], [0], [0], [1], [0, 0, 1, 1], [], []>} : vector<7x7xbf16>, vector<7x8xbf16>, vector<7x8xf32> -> vector<7x8xf32>
    %cst_10 = arith.constant dense<0.000000e+00> : vector<7xf32>
    %31 = vector.multi_reduction <add>, %28, %cst_10 [1] : vector<7x7xf32> to vector<7xf32>
    %32 = vector.shape_cast %31 : vector<7xf32> to vector<7x1xf32>
    %cst_11 = arith.constant 9.99999997E-7 : f32
    %33 = vector.broadcast %cst_11 : f32 to vector<7x1xf32>
    %34 = arith.addf %32, %33 : vector<7x1xf32>
    %35 = tpu.reciprocal %34 {approx = true} : vector<7x1xf32> -> vector<7x1xf32>
    %36 = vector.broadcast %35 : vector<7x1xf32> to vector<7x8xf32>
    %37 = arith.mulf %30, %36 : vector<7x8xf32>
    %38 = vector.extract_strided_slice %2 {offsets = [0, 8], sizes = [7, 8], strides = [1, 1]} : vector<7x32xf32> to vector<7x8xf32>
    %39 = arith.truncf %38 : vector<7x8xf32> to vector<7x8xbf16>
    %40 = vector.extract_strided_slice %3 {offsets = [0, 8], sizes = [7, 8], strides = [1, 1]} : vector<7x32xf32> to vector<7x8xf32>
    %41 = arith.truncf %40 : vector<7x8xf32> to vector<7x8xbf16>
    %42 = vector.extract_strided_slice %4 {offsets = [0, 8], sizes = [7, 8], strides = [1, 1]} : vector<7x32xf32> to vector<7x8xf32>
    %43 = arith.truncf %42 : vector<7x8xf32> to vector<7x8xbf16>
    %cst_12 = arith.constant dense<0.000000e+00> : vector<7x7xf32>
    %44 = tpu.matmul %39, %41, %cst_12 {dimension_numbers = #tpu.dot_dimension_numbers<[1], [1], [0], [0], [0, 0, 1, 0], [], []>} : vector<7x8xbf16>, vector<7x8xbf16>, vector<7x7xf32> -> vector<7x7xf32>
    %cst_13 = arith.constant 0.353553385 : f32
    %45 = vector.broadcast %cst_13 : f32 to vector<7x7xf32>
    %46 = arith.mulf %44, %45 : vector<7x7xf32>
    %47 = vector.broadcast %10 : vector<1x7xf32> to vector<7x7xf32>
    %48 = arith.addf %46, %47 : vector<7x7xf32>
    %cst_14 = arith.constant dense<0xFF800000> : vector<7xf32>
    %49 = vector.multi_reduction <maximumf>, %48, %cst_14 [1] : vector<7x7xf32> to vector<7xf32>
    %50 = vector.shape_cast %49 : vector<7xf32> to vector<7x1xf32>
    %51 = vector.broadcast %50 : vector<7x1xf32> to vector<7x7xf32>
    %52 = arith.subf %48, %51 : vector<7x7xf32>
    %53 = math.exp %52 : vector<7x7xf32>
    %54 = vector.broadcast %6 : vector<1x7xf32> to vector<7x7xf32>
    %55 = arith.mulf %53, %54 : vector<7x7xf32>
    %56 = arith.truncf %55 : vector<7x7xf32> to vector<7x7xbf16>
    %cst_15 = arith.constant dense<0.000000e+00> : vector<7x8xf32>
    %57 = tpu.matmul %56, %43, %cst_15 {dimension_numbers = #tpu.dot_dimension_numbers<[1], [0], [0], [1], [0, 0, 1, 1], [], []>} : vector<7x7xbf16>, vector<7x8xbf16>, vector<7x8xf32> -> vector<7x8xf32>
    %cst_16 = arith.constant dense<0.000000e+00> : vector<7xf32>
    %58 = vector.multi_reduction <add>, %55, %cst_16 [1] : vector<7x7xf32> to vector<7xf32>
    %59 = vector.shape_cast %58 : vector<7xf32> to vector<7x1xf32>
    %cst_17 = arith.constant 9.99999997E-7 : f32
    %60 = vector.broadcast %cst_17 : f32 to vector<7x1xf32>
    %61 = arith.addf %59, %60 : vector<7x1xf32>
    %62 = tpu.reciprocal %61 {approx = true} : vector<7x1xf32> -> vector<7x1xf32>
    %63 = vector.broadcast %62 : vector<7x1xf32> to vector<7x8xf32>
    %64 = arith.mulf %57, %63 : vector<7x8xf32>
    %65 = vector.extract_strided_slice %2 {offsets = [0, 16], sizes = [7, 8], strides = [1, 1]} : vector<7x32xf32> to vector<7x8xf32>
    %66 = arith.truncf %65 : vector<7x8xf32> to vector<7x8xbf16>
    %67 = vector.extract_strided_slice %3 {offsets = [0, 16], sizes = [7, 8], strides = [1, 1]} : vector<7x32xf32> to vector<7x8xf32>
    %68 = arith.truncf %67 : vector<7x8xf32> to vector<7x8xbf16>
    %69 = vector.extract_strided_slice %4 {offsets = [0, 16], sizes = [7, 8], strides = [1, 1]} : vector<7x32xf32> to vector<7x8xf32>
    %70 = arith.truncf %69 : vector<7x8xf32> to vector<7x8xbf16>
    %cst_18 = arith.constant dense<0.000000e+00> : vector<7x7xf32>
    %71 = tpu.matmul %66, %68, %cst_18 {dimension_numbers = #tpu.dot_dimension_numbers<[1], [1], [0], [0], [0, 0, 1, 0], [], []>} : vector<7x8xbf16>, vector<7x8xbf16>, vector<7x7xf32> -> vector<7x7xf32>
    %cst_19 = arith.constant 0.353553385 : f32
    %72 = vector.broadcast %cst_19 : f32 to vector<7x7xf32>
    %73 = arith.mulf %71, %72 : vector<7x7xf32>
    %74 = vector.broadcast %10 : vector<1x7xf32> to vector<7x7xf32>
    %75 = arith.addf %73, %74 : vector<7x7xf32>
    %cst_20 = arith.constant dense<0xFF800000> : vector<7xf32>
    %76 = vector.multi_reduction <maximumf>, %75, %cst_20 [1] : vector<7x7xf32> to vector<7xf32>
    %77 = vector.shape_cast %76 : vector<7xf32> to vector<7x1xf32>
    %78 = vector.broadcast %77 : vector<7x1xf32> to vector<7x7xf32>
    %79 = arith.subf %75, %78 : vector<7x7xf32>
    %80 = math.exp %79 : vector<7x7xf32>
    %81 = vector.broadcast %6 : vector<1x7xf32> to vector<7x7xf32>
    %82 = arith.mulf %80, %81 : vector<7x7xf32>
    %83 = arith.truncf %82 : vector<7x7xf32> to vector<7x7xbf16>
    %cst_21 = arith.constant dense<0.000000e+00> : vector<7x8xf32>
    %84 = tpu.matmul %83, %70, %cst_21 {dimension_numbers = #tpu.dot_dimension_numbers<[1], [0], [0], [1], [0, 0, 1, 1], [], []>} : vector<7x7xbf16>, vector<7x8xbf16>, vector<7x8xf32> -> vector<7x8xf32>
    %cst_22 = arith.constant dense<0.000000e+00> : vector<7xf32>
    %85 = vector.multi_reduction <add>, %82, %cst_22 [1] : vector<7x7xf32> to vector<7xf32>
    %86 = vector.shape_cast %85 : vector<7xf32> to vector<7x1xf32>
    %cst_23 = arith.constant 9.99999997E-7 : f32
    %87 = vector.broadcast %cst_23 : f32 to vector<7x1xf32>
    %88 = arith.addf %86, %87 : vector<7x1xf32>
    %89 = tpu.reciprocal %88 {approx = true} : vector<7x1xf32> -> vector<7x1xf32>
    %90 = vector.broadcast %89 : vector<7x1xf32> to vector<7x8xf32>
    %91 = arith.mulf %84, %90 : vector<7x8xf32>
    %92 = vector.extract_strided_slice %2 {offsets = [0, 24], sizes = [7, 8], strides = [1, 1]} : vector<7x32xf32> to vector<7x8xf32>
    %93 = arith.truncf %92 : vector<7x8xf32> to vector<7x8xbf16>
    %94 = vector.extract_strided_slice %3 {offsets = [0, 24], sizes = [7, 8], strides = [1, 1]} : vector<7x32xf32> to vector<7x8xf32>
    %95 = arith.truncf %94 : vector<7x8xf32> to vector<7x8xbf16>
    %96 = vector.extract_strided_slice %4 {offsets = [0, 24], sizes = [7, 8], strides = [1, 1]} : vector<7x32xf32> to vector<7x8xf32>
    %97 = arith.truncf %96 : vector<7x8xf32> to vector<7x8xbf16>
    %cst_24 = arith.constant dense<0.000000e+00> : vector<7x7xf32>
    %98 = tpu.matmul %93, %95, %cst_24 {dimension_numbers = #tpu.dot_dimension_numbers<[1], [1], [0], [0], [0, 0, 1, 0], [], []>} : vector<7x8xbf16>, vector<7x8xbf16>, vector<7x7xf32> -> vector<7x7xf32>
    %cst_25 = arith.constant 0.353553385 : f32
    %99 = vector.broadcast %cst_25 : f32 to vector<7x7xf32>
    %100 = arith.mulf %98, %99 : vector<7x7xf32>
    %101 = vector.broadcast %10 : vector<1x7xf32> to vector<7x7xf32>
    %102 = arith.addf %100, %101 : vector<7x7xf32>
    %cst_26 = arith.constant dense<0xFF800000> : vector<7xf32>
    %103 = vector.multi_reduction <maximumf>, %102, %cst_26 [1] : vector<7x7xf32> to vector<7xf32>
    %104 = vector.shape_cast %103 : vector<7xf32> to vector<7x1xf32>
    %105 = vector.broadcast %104 : vector<7x1xf32> to vector<7x7xf32>
    %106 = arith.subf %102, %105 : vector<7x7xf32>
    %107 = math.exp %106 : vector<7x7xf32>
    %108 = vector.broadcast %6 : vector<1x7xf32> to vector<7x7xf32>
    %109 = arith.mulf %107, %108 : vector<7x7xf32>
    %110 = arith.truncf %109 : vector<7x7xf32> to vector<7x7xbf16>
    %cst_27 = arith.constant dense<0.000000e+00> : vector<7x8xf32>
    %111 = tpu.matmul %110, %97, %cst_27 {dimension_numbers = #tpu.dot_dimension_numbers<[1], [0], [0], [1], [0, 0, 1, 1], [], []>} : vector<7x7xbf16>, vector<7x8xbf16>, vector<7x8xf32> -> vector<7x8xf32>
    %cst_28 = arith.constant dense<0.000000e+00> : vector<7xf32>
    %112 = vector.multi_reduction <add>, %109, %cst_28 [1] : vector<7x7xf32> to vector<7xf32>
    %113 = vector.shape_cast %112 : vector<7xf32> to vector<7x1xf32>
    %cst_29 = arith.constant 9.99999997E-7 : f32
    %114 = vector.broadcast %cst_29 : f32 to vector<7x1xf32>
    %115 = arith.addf %113, %114 : vector<7x1xf32>
    %116 = tpu.reciprocal %115 {approx = true} : vector<7x1xf32> -> vector<7x1xf32>
    %117 = vector.broadcast %116 : vector<7x1xf32> to vector<7x8xf32>
    %118 = arith.mulf %111, %117 : vector<7x8xf32>
    %119 = tpu.concatenate %37, %64, %91, %118 in 1 : vector<7x8xf32>, vector<7x8xf32>, vector<7x8xf32>, vector<7x8xf32> -> vector<7x32xf32>
    %c0_30 = arith.constant 0 : index
    %c0_31 = arith.constant 0 : index
    %c0_32 = arith.constant 0 : index
    %120 = vector.load %arg3[%c0_30, %c0_31, %c0_32] : memref<1x7x32xf32, #tpu.memory_space<vmem>>, vector<1x7x32xf32>
    %121 = vector.shape_cast %120 : vector<1x7x32xf32> to vector<7x32xf32>
    %122 = vector.shape_cast %119 : vector<7x32xf32> to vector<1x7x32xf32>
    tpu.vector_store %arg3[%c0_30, %c0_31, %c0_32], %122 {strides = array<i32>} : memref<1x7x32xf32, #tpu.memory_space<vmem>>, vector<1x7x32xf32>,
    return
  }
  func.func @transform_0(%arg0: i32) -> (i32, i32, i32) {
    %c0_i32 = arith.constant 0 : i32
    %c0_i32_0 = arith.constant 0 : i32
    %c0_i32_1 = arith.constant 0 : i32
    return %arg0, %c0_i32, %c0_i32_0 : i32, i32, i32
  }
  func.func @transform_1(%arg0: i32) -> (i32, i32, i32) {
    %c0_i32 = arith.constant 0 : i32
    %c0_i32_0 = arith.constant 0 : i32
    %c0_i32_1 = arith.constant 0 : i32
    return %arg0, %c0_i32, %c0_i32_0 : i32, i32, i32
  }
  func.func @transform_2(%arg0: i32) -> (i32, i32, i32) {
    %c0_i32 = arith.constant 0 : i32
    %c0_i32_0 = arith.constant 0 : i32
    %c0_i32_1 = arith.constant 0 : i32
    return %arg0, %c0_i32, %c0_i32_0 : i32, i32, i32
  }
}

module attributes {stable_mosaic.version = 11 : i64} {
  func.func @_linear_residual_kernel(%arg0: i32, %arg1: memref<16x32xf32, #tpu.memory_space<vmem>>, %arg2: memref<16x32xf32, #tpu.memory_space<vmem>>, %arg3: memref<32x32xbf16, #tpu.memory_space<vmem>>, %arg4: memref<1x32xf32, #tpu.memory_space<vmem>>, %arg5: memref<16x32xf32, #tpu.memory_space<vmem>>) attributes {dimension_semantics = [#tpu.dimension_semantics<parallel>], iteration_bounds = array<i64: 1>, scalar_prefetch = 0 : i64, scratch_operands = 0 : i64, tpu.core_type = #tpu.core_type<tc>, window_params = [{transform_indices = @transform_0, window_bounds = array<i64: 16, 32>}, {transform_indices = @transform_1, window_bounds = array<i64: 16, 32>}, {pipeline_mode = #tpu.pipeline_mode<synchronous>, transform_indices = @transform_2, window_bounds = array<i64: 32, 32>}, {pipeline_mode = #tpu.pipeline_mode<synchronous>, transform_indices = @transform_3, window_bounds = array<i64: 1, 32>}, {transform_indices = @transform_4, window_bounds = array<i64: 16, 32>}]} {
    %c0 = arith.constant 0 : index
    %c0_0 = arith.constant 0 : index
    %0 = vector.load %arg2[%c0, %c0_0] : memref<16x32xf32, #tpu.memory_space<vmem>>, vector<16x32xf32>
    %c0_1 = arith.constant 0 : index
    %c0_2 = arith.constant 0 : index
    %1 = vector.load %arg1[%c0_1, %c0_2] : memref<16x32xf32, #tpu.memory_space<vmem>>, vector<16x32xf32>
    %c0_3 = arith.constant 0 : index
    %c0_4 = arith.constant 0 : index
    %2 = vector.load %arg3[%c0_3, %c0_4] : memref<32x32xbf16, #tpu.memory_space<vmem>>, vector<32x32xbf16>
    %3 = arith.truncf %1 : vector<16x32xf32> to vector<16x32xbf16>
    %cst = arith.constant dense<0.000000e+00> : vector<16x32xf32>
    %4 = tpu.matmul %3, %2, %cst {dimension_numbers = #tpu.dot_dimension_numbers<[1], [0], [0], [1], [0, 0, 1, 1], [], []>} : vector<16x32xbf16>, vector<32x32xbf16>, vector<16x32xf32> -> vector<16x32xf32>
    %5 = arith.addf %0, %4 : vector<16x32xf32>
    %c0_5 = arith.constant 0 : index
    %c0_6 = arith.constant 0 : index
    %6 = vector.load %arg4[%c0_5, %c0_6] : memref<1x32xf32, #tpu.memory_space<vmem>>, vector<1x32xf32>
    %7 = vector.broadcast %6 : vector<1x32xf32> to vector<16x32xf32>
    %8 = arith.addf %5, %7 : vector<16x32xf32>
    %c0_7 = arith.constant 0 : index
    %c0_8 = arith.constant 0 : index
    %9 = vector.load %arg5[%c0_7, %c0_8] : memref<16x32xf32, #tpu.memory_space<vmem>>, vector<16x32xf32>
    tpu.vector_store %arg5[%c0_7, %c0_8], %8 {strides = array<i32>} : memref<16x32xf32, #tpu.memory_space<vmem>>, vector<16x32xf32>,
    return
  }
  func.func @transform_0(%arg0: i32) -> (i32, i32) {
    %c0_i32 = arith.constant 0 : i32
    %c0_i32_0 = arith.constant 0 : i32
    return %arg0, %c0_i32 : i32, i32
  }
  func.func @transform_1(%arg0: i32) -> (i32, i32) {
    %c0_i32 = arith.constant 0 : i32
    %c0_i32_0 = arith.constant 0 : i32
    return %arg0, %c0_i32 : i32, i32
  }
  func.func @transform_2(%arg0: i32) -> (i32, i32) {
    %c0_i32 = arith.constant 0 : i32
    %c0_i32_0 = arith.constant 0 : i32
    %c0_i32_1 = arith.constant 0 : i32
    return %c0_i32, %c0_i32_0 : i32, i32
  }
  func.func @transform_3(%arg0: i32) -> (i32, i32) {
    %c0_i32 = arith.constant 0 : i32
    %c0_i32_0 = arith.constant 0 : i32
    %c0_i32_1 = arith.constant 0 : i32
    return %c0_i32, %c0_i32_0 : i32, i32
  }
  func.func @transform_4(%arg0: i32) -> (i32, i32) {
    %c0_i32 = arith.constant 0 : i32
    %c0_i32_0 = arith.constant 0 : i32
    return %arg0, %c0_i32 : i32, i32
  }
}

module attributes {stable_mosaic.version = 11 : i64} {
  func.func @_ln_ffn_kernel(%arg0: i32, %arg1: memref<16x32xf32, #tpu.memory_space<vmem>>, %arg2: memref<1x32xf32, #tpu.memory_space<vmem>>, %arg3: memref<1x32xf32, #tpu.memory_space<vmem>>, %arg4: memref<32x64xbf16, #tpu.memory_space<vmem>>, %arg5: memref<1x64xf32, #tpu.memory_space<vmem>>, %arg6: memref<64x32xbf16, #tpu.memory_space<vmem>>, %arg7: memref<1x32xf32, #tpu.memory_space<vmem>>, %arg8: memref<16x32xf32, #tpu.memory_space<vmem>>) attributes {dimension_semantics = [#tpu.dimension_semantics<parallel>], iteration_bounds = array<i64: 1>, scalar_prefetch = 0 : i64, scratch_operands = 0 : i64, tpu.core_type = #tpu.core_type<tc>, window_params = [{transform_indices = @transform_0, window_bounds = array<i64: 16, 32>}, {pipeline_mode = #tpu.pipeline_mode<synchronous>, transform_indices = @transform_1, window_bounds = array<i64: 1, 32>}, {pipeline_mode = #tpu.pipeline_mode<synchronous>, transform_indices = @transform_2, window_bounds = array<i64: 1, 32>}, {pipeline_mode = #tpu.pipeline_mode<synchronous>, transform_indices = @transform_3, window_bounds = array<i64: 32, 64>}, {pipeline_mode = #tpu.pipeline_mode<synchronous>, transform_indices = @transform_4, window_bounds = array<i64: 1, 64>}, {pipeline_mode = #tpu.pipeline_mode<synchronous>, transform_indices = @transform_5, window_bounds = array<i64: 64, 32>}, {pipeline_mode = #tpu.pipeline_mode<synchronous>, transform_indices = @transform_6, window_bounds = array<i64: 1, 32>}, {transform_indices = @transform_7, window_bounds = array<i64: 16, 32>}]} {
    %c0 = arith.constant 0 : index
    %c0_0 = arith.constant 0 : index
    %0 = vector.load %arg1[%c0, %c0_0] : memref<16x32xf32, #tpu.memory_space<vmem>>, vector<16x32xf32>
    %c0_1 = arith.constant 0 : index
    %c0_2 = arith.constant 0 : index
    %1 = vector.load %arg2[%c0_1, %c0_2] : memref<1x32xf32, #tpu.memory_space<vmem>>, vector<1x32xf32>
    %c0_3 = arith.constant 0 : index
    %c0_4 = arith.constant 0 : index
    %2 = vector.load %arg3[%c0_3, %c0_4] : memref<1x32xf32, #tpu.memory_space<vmem>>, vector<1x32xf32>
    %cst = arith.constant dense<0.000000e+00> : vector<16xf32>
    %3 = vector.multi_reduction <add>, %0, %cst [1] : vector<16x32xf32> to vector<16xf32>
    %4 = vector.shape_cast %3 : vector<16xf32> to vector<16x1xf32>
    %cst_5 = arith.constant 3.200000e+01 : f32
    %5 = vector.broadcast %cst_5 : f32 to vector<16x1xf32>
    %6 = arith.divf %4, %5 : vector<16x1xf32>
    %7 = vector.broadcast %6 : vector<16x1xf32> to vector<16x32xf32>
    %8 = arith.subf %0, %7 : vector<16x32xf32>
    %9 = arith.mulf %8, %8 : vector<16x32xf32>
    %cst_6 = arith.constant dense<0.000000e+00> : vector<16xf32>
    %10 = vector.multi_reduction <add>, %9, %cst_6 [1] : vector<16x32xf32> to vector<16xf32>
    %11 = vector.shape_cast %10 : vector<16xf32> to vector<16x1xf32>
    %cst_7 = arith.constant 3.200000e+01 : f32
    %12 = vector.broadcast %cst_7 : f32 to vector<16x1xf32>
    %13 = arith.divf %11, %12 : vector<16x1xf32>
    %14 = vector.broadcast %6 : vector<16x1xf32> to vector<16x32xf32>
    %15 = arith.subf %0, %14 : vector<16x32xf32>
    %cst_8 = arith.constant 9.99999996E-13 : f32
    %16 = vector.broadcast %cst_8 : f32 to vector<16x1xf32>
    %17 = arith.addf %13, %16 : vector<16x1xf32>
    %18 = math.rsqrt %17 : vector<16x1xf32>
    %19 = vector.broadcast %18 : vector<16x1xf32> to vector<16x32xf32>
    %20 = arith.mulf %15, %19 : vector<16x32xf32>
    %21 = vector.broadcast %1 : vector<1x32xf32> to vector<16x32xf32>
    %22 = arith.mulf %20, %21 : vector<16x32xf32>
    %23 = vector.broadcast %2 : vector<1x32xf32> to vector<16x32xf32>
    %24 = arith.addf %22, %23 : vector<16x32xf32>
    %c0_9 = arith.constant 0 : index
    %c0_10 = arith.constant 0 : index
    %25 = vector.load %arg4[%c0_9, %c0_10] : memref<32x64xbf16, #tpu.memory_space<vmem>>, vector<32x64xbf16>
    %26 = arith.truncf %24 : vector<16x32xf32> to vector<16x32xbf16>
    %cst_11 = arith.constant dense<0.000000e+00> : vector<16x64xf32>
    %27 = tpu.matmul %26, %25, %cst_11 {dimension_numbers = #tpu.dot_dimension_numbers<[1], [0], [0], [1], [0, 0, 1, 1], [], []>} : vector<16x32xbf16>, vector<32x64xbf16>, vector<16x64xf32> -> vector<16x64xf32>
    %c0_12 = arith.constant 0 : index
    %c0_13 = arith.constant 0 : index
    %28 = vector.load %arg5[%c0_12, %c0_13] : memref<1x64xf32, #tpu.memory_space<vmem>>, vector<1x64xf32>
    %29 = vector.broadcast %28 : vector<1x64xf32> to vector<16x64xf32>
    %30 = arith.addf %27, %29 : vector<16x64xf32>
    %cst_14 = arith.constant 0.000000e+00 : f32
    %31 = vector.broadcast %cst_14 : f32 to vector<16x64xf32>
    %32 = arith.maximumf %30, %31 : vector<16x64xf32>
    %c0_15 = arith.constant 0 : index
    %c0_16 = arith.constant 0 : index
    %33 = vector.load %arg6[%c0_15, %c0_16] : memref<64x32xbf16, #tpu.memory_space<vmem>>, vector<64x32xbf16>
    %34 = arith.truncf %32 : vector<16x64xf32> to vector<16x64xbf16>
    %cst_17 = arith.constant dense<0.000000e+00> : vector<16x32xf32>
    %35 = tpu.matmul %34, %33, %cst_17 {dimension_numbers = #tpu.dot_dimension_numbers<[1], [0], [0], [1], [0, 0, 1, 1], [], []>} : vector<16x64xbf16>, vector<64x32xbf16>, vector<16x32xf32> -> vector<16x32xf32>
    %36 = arith.addf %0, %35 : vector<16x32xf32>
    %c0_18 = arith.constant 0 : index
    %c0_19 = arith.constant 0 : index
    %37 = vector.load %arg7[%c0_18, %c0_19] : memref<1x32xf32, #tpu.memory_space<vmem>>, vector<1x32xf32>
    %38 = vector.broadcast %37 : vector<1x32xf32> to vector<16x32xf32>
    %39 = arith.addf %36, %38 : vector<16x32xf32>
    %c0_20 = arith.constant 0 : index
    %c0_21 = arith.constant 0 : index
    %40 = vector.load %arg8[%c0_20, %c0_21] : memref<16x32xf32, #tpu.memory_space<vmem>>, vector<16x32xf32>
    tpu.vector_store %arg8[%c0_20, %c0_21], %39 {strides = array<i32>} : memref<16x32xf32, #tpu.memory_space<vmem>>, vector<16x32xf32>,
    return
  }
  func.func @transform_0(%arg0: i32) -> (i32, i32) {
    %c0_i32 = arith.constant 0 : i32
    %c0_i32_0 = arith.constant 0 : i32
    return %arg0, %c0_i32 : i32, i32
  }
  func.func @transform_1(%arg0: i32) -> (i32, i32) {
    %c0_i32 = arith.constant 0 : i32
    %c0_i32_0 = arith.constant 0 : i32
    %c0_i32_1 = arith.constant 0 : i32
    return %c0_i32, %c0_i32_0 : i32, i32
  }
  func.func @transform_2(%arg0: i32) -> (i32, i32) {
    %c0_i32 = arith.constant 0 : i32
    %c0_i32_0 = arith.constant 0 : i32
    %c0_i32_1 = arith.constant 0 : i32
    return %c0_i32, %c0_i32_0 : i32, i32
  }
  func.func @transform_3(%arg0: i32) -> (i32, i32) {
    %c0_i32 = arith.constant 0 : i32
    %c0_i32_0 = arith.constant 0 : i32
    %c0_i32_1 = arith.constant 0 : i32
    return %c0_i32, %c0_i32_0 : i32, i32
  }
  func.func @transform_4(%arg0: i32) -> (i32, i32) {
    %c0_i32 = arith.constant 0 : i32
    %c0_i32_0 = arith.constant 0 : i32
    %c0_i32_1 = arith.constant 0 : i32
    return %c0_i32, %c0_i32_0 : i32, i32
  }
  func.func @transform_5(%arg0: i32) -> (i32, i32) {
    %c0_i32 = arith.constant 0 : i32
    %c0_i32_0 = arith.constant 0 : i32
    %c0_i32_1 = arith.constant 0 : i32
    return %c0_i32, %c0_i32_0 : i32, i32
  }
  func.func @transform_6(%arg0: i32) -> (i32, i32) {
    %c0_i32 = arith.constant 0 : i32
    %c0_i32_0 = arith.constant 0 : i32
    %c0_i32_1 = arith.constant 0 : i32
    return %c0_i32, %c0_i32_0 : i32, i32
  }
  func.func @transform_7(%arg0: i32) -> (i32, i32) {
    %c0_i32 = arith.constant 0 : i32
    %c0_i32_0 = arith.constant 0 : i32
    return %arg0, %c0_i32 : i32, i32
  }
}

module attributes {stable_mosaic.version = 11 : i64} {
  func.func @_ln_kernel(%arg0: i32, %arg1: memref<16x32xf32, #tpu.memory_space<vmem>>, %arg2: memref<1x32xf32, #tpu.memory_space<vmem>>, %arg3: memref<1x32xf32, #tpu.memory_space<vmem>>, %arg4: memref<16x32xf32, #tpu.memory_space<vmem>>) attributes {dimension_semantics = [#tpu.dimension_semantics<parallel>], iteration_bounds = array<i64: 1>, scalar_prefetch = 0 : i64, scratch_operands = 0 : i64, tpu.core_type = #tpu.core_type<tc>, window_params = [{transform_indices = @transform_0, window_bounds = array<i64: 16, 32>}, {pipeline_mode = #tpu.pipeline_mode<synchronous>, transform_indices = @transform_1, window_bounds = array<i64: 1, 32>}, {pipeline_mode = #tpu.pipeline_mode<synchronous>, transform_indices = @transform_2, window_bounds = array<i64: 1, 32>}, {transform_indices = @transform_3, window_bounds = array<i64: 16, 32>}]} {
    %c0 = arith.constant 0 : index
    %c0_0 = arith.constant 0 : index
    %0 = vector.load %arg1[%c0, %c0_0] : memref<16x32xf32, #tpu.memory_space<vmem>>, vector<16x32xf32>
    %c0_1 = arith.constant 0 : index
    %c0_2 = arith.constant 0 : index
    %1 = vector.load %arg2[%c0_1, %c0_2] : memref<1x32xf32, #tpu.memory_space<vmem>>, vector<1x32xf32>
    %c0_3 = arith.constant 0 : index
    %c0_4 = arith.constant 0 : index
    %2 = vector.load %arg3[%c0_3, %c0_4] : memref<1x32xf32, #tpu.memory_space<vmem>>, vector<1x32xf32>
    %cst = arith.constant dense<0.000000e+00> : vector<16xf32>
    %3 = vector.multi_reduction <add>, %0, %cst [1] : vector<16x32xf32> to vector<16xf32>
    %4 = vector.shape_cast %3 : vector<16xf32> to vector<16x1xf32>
    %cst_5 = arith.constant 3.200000e+01 : f32
    %5 = vector.broadcast %cst_5 : f32 to vector<16x1xf32>
    %6 = arith.divf %4, %5 : vector<16x1xf32>
    %7 = vector.broadcast %6 : vector<16x1xf32> to vector<16x32xf32>
    %8 = arith.subf %0, %7 : vector<16x32xf32>
    %9 = arith.mulf %8, %8 : vector<16x32xf32>
    %cst_6 = arith.constant dense<0.000000e+00> : vector<16xf32>
    %10 = vector.multi_reduction <add>, %9, %cst_6 [1] : vector<16x32xf32> to vector<16xf32>
    %11 = vector.shape_cast %10 : vector<16xf32> to vector<16x1xf32>
    %cst_7 = arith.constant 3.200000e+01 : f32
    %12 = vector.broadcast %cst_7 : f32 to vector<16x1xf32>
    %13 = arith.divf %11, %12 : vector<16x1xf32>
    %14 = vector.broadcast %6 : vector<16x1xf32> to vector<16x32xf32>
    %15 = arith.subf %0, %14 : vector<16x32xf32>
    %cst_8 = arith.constant 9.99999996E-13 : f32
    %16 = vector.broadcast %cst_8 : f32 to vector<16x1xf32>
    %17 = arith.addf %13, %16 : vector<16x1xf32>
    %18 = math.rsqrt %17 : vector<16x1xf32>
    %19 = vector.broadcast %18 : vector<16x1xf32> to vector<16x32xf32>
    %20 = arith.mulf %15, %19 : vector<16x32xf32>
    %21 = vector.broadcast %1 : vector<1x32xf32> to vector<16x32xf32>
    %22 = arith.mulf %20, %21 : vector<16x32xf32>
    %23 = vector.broadcast %2 : vector<1x32xf32> to vector<16x32xf32>
    %24 = arith.addf %22, %23 : vector<16x32xf32>
    %c0_9 = arith.constant 0 : index
    %c0_10 = arith.constant 0 : index
    %25 = vector.load %arg4[%c0_9, %c0_10] : memref<16x32xf32, #tpu.memory_space<vmem>>, vector<16x32xf32>
    tpu.vector_store %arg4[%c0_9, %c0_10], %24 {strides = array<i32>} : memref<16x32xf32, #tpu.memory_space<vmem>>, vector<16x32xf32>,
    return
  }
  func.func @transform_0(%arg0: i32) -> (i32, i32) {
    %c0_i32 = arith.constant 0 : i32
    %c0_i32_0 = arith.constant 0 : i32
    return %arg0, %c0_i32 : i32, i32
  }
  func.func @transform_1(%arg0: i32) -> (i32, i32) {
    %c0_i32 = arith.constant 0 : i32
    %c0_i32_0 = arith.constant 0 : i32
    %c0_i32_1 = arith.constant 0 : i32
    return %c0_i32, %c0_i32_0 : i32, i32
  }
  func.func @transform_2(%arg0: i32) -> (i32, i32) {
    %c0_i32 = arith.constant 0 : i32
    %c0_i32_0 = arith.constant 0 : i32
    %c0_i32_1 = arith.constant 0 : i32
    return %c0_i32, %c0_i32_0 : i32, i32
  }
  func.func @transform_3(%arg0: i32) -> (i32, i32) {
    %c0_i32 = arith.constant 0 : i32
    %c0_i32_0 = arith.constant 0 : i32
    return %arg0, %c0_i32 : i32, i32
  }
}

module attributes {stable_mosaic.version = 11 : i64} {
  func.func @_linear_kernel(%arg0: i32, %arg1: memref<16x32xf32, #tpu.memory_space<vmem>>, %arg2: memref<32x128xbf16, #tpu.memory_space<vmem>>, %arg3: memref<1x128xf32, #tpu.memory_space<vmem>>, %arg4: memref<16x128xf32, #tpu.memory_space<vmem>>) attributes {dimension_semantics = [#tpu.dimension_semantics<parallel>], iteration_bounds = array<i64: 1>, scalar_prefetch = 0 : i64, scratch_operands = 0 : i64, tpu.core_type = #tpu.core_type<tc>, window_params = [{transform_indices = @transform_0, window_bounds = array<i64: 16, 32>}, {pipeline_mode = #tpu.pipeline_mode<synchronous>, transform_indices = @transform_1, window_bounds = array<i64: 32, 128>}, {pipeline_mode = #tpu.pipeline_mode<synchronous>, transform_indices = @transform_2, window_bounds = array<i64: 1, 128>}, {transform_indices = @transform_3, window_bounds = array<i64: 16, 128>}]} {
    %c0 = arith.constant 0 : index
    %c0_0 = arith.constant 0 : index
    %0 = vector.load %arg1[%c0, %c0_0] : memref<16x32xf32, #tpu.memory_space<vmem>>, vector<16x32xf32>
    %c0_1 = arith.constant 0 : index
    %c0_2 = arith.constant 0 : index
    %1 = vector.load %arg2[%c0_1, %c0_2] : memref<32x128xbf16, #tpu.memory_space<vmem>>, vector<32x128xbf16>
    %2 = arith.truncf %0 : vector<16x32xf32> to vector<16x32xbf16>
    %cst = arith.constant dense<0.000000e+00> : vector<16x128xf32>
    %3 = tpu.matmul %2, %1, %cst {dimension_numbers = #tpu.dot_dimension_numbers<[1], [0], [0], [1], [0, 0, 1, 1], [], []>} : vector<16x32xbf16>, vector<32x128xbf16>, vector<16x128xf32> -> vector<16x128xf32>
    %c0_3 = arith.constant 0 : index
    %c0_4 = arith.constant 0 : index
    %4 = vector.load %arg3[%c0_3, %c0_4] : memref<1x128xf32, #tpu.memory_space<vmem>>, vector<1x128xf32>
    %5 = vector.broadcast %4 : vector<1x128xf32> to vector<16x128xf32>
    %6 = arith.addf %3, %5 : vector<16x128xf32>
    %c0_5 = arith.constant 0 : index
    %c0_6 = arith.constant 0 : index
    %7 = vector.load %arg4[%c0_5, %c0_6] : memref<16x128xf32, #tpu.memory_space<vmem>>, vector<16x128xf32>
    tpu.vector_store %arg4[%c0_5, %c0_6], %6 {strides = array<i32>} : memref<16x128xf32, #tpu.memory_space<vmem>>, vector<16x128xf32>,
    return
  }
  func.func @transform_0(%arg0: i32) -> (i32, i32) {
    %c0_i32 = arith.constant 0 : i32
    %c0_i32_0 = arith.constant 0 : i32
    return %arg0, %c0_i32 : i32, i32
  }
  func.func @transform_1(%arg0: i32) -> (i32, i32) {
    %c0_i32 = arith.constant 0 : i32
    %c0_i32_0 = arith.constant 0 : i32
    %c0_i32_1 = arith.constant 0 : i32
    return %c0_i32, %c0_i32_0 : i32, i32
  }
  func.func @transform_2(%arg0: i32) -> (i32, i32) {
    %c0_i32 = arith.constant 0 : i32
    %c0_i32_0 = arith.constant 0 : i32
    %c0_i32_1 = arith.constant 0 : i32
    return %c0_i32, %c0_i32_0 : i32, i32
  }
  func.func @transform_3(%arg0: i32) -> (i32, i32) {
    %c0_i32 = arith.constant 0 : i32
    %c0_i32_0 = arith.constant 0 : i32
    return %arg0, %c0_i32 : i32, i32
  }
}

module attributes {stable_mosaic.version = 11 : i64} {
  func.func @_ln_linear_kernel(%arg0: i32, %arg1: memref<16x32xf32, #tpu.memory_space<vmem>>, %arg2: memref<1x32xf32, #tpu.memory_space<vmem>>, %arg3: memref<1x32xf32, #tpu.memory_space<vmem>>, %arg4: memref<32x32xbf16, #tpu.memory_space<vmem>>, %arg5: memref<1x32xf32, #tpu.memory_space<vmem>>, %arg6: memref<16x32xf32, #tpu.memory_space<vmem>>) attributes {dimension_semantics = [#tpu.dimension_semantics<parallel>], iteration_bounds = array<i64: 1>, scalar_prefetch = 0 : i64, scratch_operands = 0 : i64, tpu.core_type = #tpu.core_type<tc>, window_params = [{transform_indices = @transform_0, window_bounds = array<i64: 16, 32>}, {pipeline_mode = #tpu.pipeline_mode<synchronous>, transform_indices = @transform_1, window_bounds = array<i64: 1, 32>}, {pipeline_mode = #tpu.pipeline_mode<synchronous>, transform_indices = @transform_2, window_bounds = array<i64: 1, 32>}, {pipeline_mode = #tpu.pipeline_mode<synchronous>, transform_indices = @transform_3, window_bounds = array<i64: 32, 32>}, {pipeline_mode = #tpu.pipeline_mode<synchronous>, transform_indices = @transform_4, window_bounds = array<i64: 1, 32>}, {transform_indices = @transform_5, window_bounds = array<i64: 16, 32>}]} {
    %c0 = arith.constant 0 : index
    %c0_0 = arith.constant 0 : index
    %0 = vector.load %arg1[%c0, %c0_0] : memref<16x32xf32, #tpu.memory_space<vmem>>, vector<16x32xf32>
    %c0_1 = arith.constant 0 : index
    %c0_2 = arith.constant 0 : index
    %1 = vector.load %arg2[%c0_1, %c0_2] : memref<1x32xf32, #tpu.memory_space<vmem>>, vector<1x32xf32>
    %c0_3 = arith.constant 0 : index
    %c0_4 = arith.constant 0 : index
    %2 = vector.load %arg3[%c0_3, %c0_4] : memref<1x32xf32, #tpu.memory_space<vmem>>, vector<1x32xf32>
    %cst = arith.constant dense<0.000000e+00> : vector<16xf32>
    %3 = vector.multi_reduction <add>, %0, %cst [1] : vector<16x32xf32> to vector<16xf32>
    %4 = vector.shape_cast %3 : vector<16xf32> to vector<16x1xf32>
    %cst_5 = arith.constant 3.200000e+01 : f32
    %5 = vector.broadcast %cst_5 : f32 to vector<16x1xf32>
    %6 = arith.divf %4, %5 : vector<16x1xf32>
    %7 = vector.broadcast %6 : vector<16x1xf32> to vector<16x32xf32>
    %8 = arith.subf %0, %7 : vector<16x32xf32>
    %9 = arith.mulf %8, %8 : vector<16x32xf32>
    %cst_6 = arith.constant dense<0.000000e+00> : vector<16xf32>
    %10 = vector.multi_reduction <add>, %9, %cst_6 [1] : vector<16x32xf32> to vector<16xf32>
    %11 = vector.shape_cast %10 : vector<16xf32> to vector<16x1xf32>
    %cst_7 = arith.constant 3.200000e+01 : f32
    %12 = vector.broadcast %cst_7 : f32 to vector<16x1xf32>
    %13 = arith.divf %11, %12 : vector<16x1xf32>
    %14 = vector.broadcast %6 : vector<16x1xf32> to vector<16x32xf32>
    %15 = arith.subf %0, %14 : vector<16x32xf32>
    %cst_8 = arith.constant 9.99999996E-13 : f32
    %16 = vector.broadcast %cst_8 : f32 to vector<16x1xf32>
    %17 = arith.addf %13, %16 : vector<16x1xf32>
    %18 = math.rsqrt %17 : vector<16x1xf32>
    %19 = vector.broadcast %18 : vector<16x1xf32> to vector<16x32xf32>
    %20 = arith.mulf %15, %19 : vector<16x32xf32>
    %21 = vector.broadcast %1 : vector<1x32xf32> to vector<16x32xf32>
    %22 = arith.mulf %20, %21 : vector<16x32xf32>
    %23 = vector.broadcast %2 : vector<1x32xf32> to vector<16x32xf32>
    %24 = arith.addf %22, %23 : vector<16x32xf32>
    %c0_9 = arith.constant 0 : index
    %c0_10 = arith.constant 0 : index
    %25 = vector.load %arg4[%c0_9, %c0_10] : memref<32x32xbf16, #tpu.memory_space<vmem>>, vector<32x32xbf16>
    %26 = arith.truncf %24 : vector<16x32xf32> to vector<16x32xbf16>
    %cst_11 = arith.constant dense<0.000000e+00> : vector<16x32xf32>
    %27 = tpu.matmul %26, %25, %cst_11 {dimension_numbers = #tpu.dot_dimension_numbers<[1], [0], [0], [1], [0, 0, 1, 1], [], []>} : vector<16x32xbf16>, vector<32x32xbf16>, vector<16x32xf32> -> vector<16x32xf32>
    %c0_12 = arith.constant 0 : index
    %c0_13 = arith.constant 0 : index
    %28 = vector.load %arg5[%c0_12, %c0_13] : memref<1x32xf32, #tpu.memory_space<vmem>>, vector<1x32xf32>
    %29 = vector.broadcast %28 : vector<1x32xf32> to vector<16x32xf32>
    %30 = arith.addf %27, %29 : vector<16x32xf32>
    %c0_14 = arith.constant 0 : index
    %c0_15 = arith.constant 0 : index
    %31 = vector.load %arg6[%c0_14, %c0_15] : memref<16x32xf32, #tpu.memory_space<vmem>>, vector<16x32xf32>
    tpu.vector_store %arg6[%c0_14, %c0_15], %30 {strides = array<i32>} : memref<16x32xf32, #tpu.memory_space<vmem>>, vector<16x32xf32>,
    return
  }
  func.func @transform_0(%arg0: i32) -> (i32, i32) {
    %c0_i32 = arith.constant 0 : i32
    %c0_i32_0 = arith.constant 0 : i32
    return %arg0, %c0_i32 : i32, i32
  }
  func.func @transform_1(%arg0: i32) -> (i32, i32) {
    %c0_i32 = arith.constant 0 : i32
    %c0_i32_0 = arith.constant 0 : i32
    %c0_i32_1 = arith.constant 0 : i32
    return %c0_i32, %c0_i32_0 : i32, i32
  }
  func.func @transform_2(%arg0: i32) -> (i32, i32) {
    %c0_i32 = arith.constant 0 : i32
    %c0_i32_0 = arith.constant 0 : i32
    %c0_i32_1 = arith.constant 0 : i32
    return %c0_i32, %c0_i32_0 : i32, i32
  }
  func.func @transform_3(%arg0: i32) -> (i32, i32) {
    %c0_i32 = arith.constant 0 : i32
    %c0_i32_0 = arith.constant 0 : i32
    %c0_i32_1 = arith.constant 0 : i32
    return %c0_i32, %c0_i32_0 : i32, i32
  }
  func.func @transform_4(%arg0: i32) -> (i32, i32) {
    %c0_i32 = arith.constant 0 : i32
    %c0_i32_0 = arith.constant 0 : i32
    %c0_i32_1 = arith.constant 0 : i32
    return %c0_i32, %c0_i32_0 : i32, i32
  }
  func.func @transform_5(%arg0: i32) -> (i32, i32) {
    %c0_i32 = arith.constant 0 : i32
    %c0_i32_0 = arith.constant 0 : i32
    return %arg0, %c0_i32 : i32, i32
  }
}

module attributes {stable_mosaic.version = 11 : i64} {
  func.func @_cross_attn_kernel(%arg0: i32, %arg1: memref<1x5x32xf32, #tpu.memory_space<vmem>>, %arg2: memref<1x7x64xf32, #tpu.memory_space<vmem>>, %arg3: memref<1x1x7xf32, #tpu.memory_space<vmem>>, %arg4: memref<1x5x32xf32, #tpu.memory_space<vmem>>) attributes {dimension_semantics = [#tpu.dimension_semantics<parallel>], iteration_bounds = array<i64: 2>, scalar_prefetch = 0 : i64, scratch_operands = 0 : i64, tpu.core_type = #tpu.core_type<tc>, window_params = [{transform_indices = @transform_0, window_bounds = array<i64: 1, 5, 32>}, {transform_indices = @transform_1, window_bounds = array<i64: 1, 7, 64>}, {transform_indices = @transform_2, window_bounds = array<i64: 1, 1, 7>}, {transform_indices = @transform_3, window_bounds = array<i64: 1, 5, 32>}]} {
    %c0 = arith.constant 0 : index
    %c0_0 = arith.constant 0 : index
    %c0_1 = arith.constant 0 : index
    %0 = vector.load %arg2[%c0, %c0_0, %c0_1] : memref<1x7x64xf32, #tpu.memory_space<vmem>>, vector<1x7x64xf32>
    %1 = vector.shape_cast %0 : vector<1x7x64xf32> to vector<7x64xf32>
    %c0_2 = arith.constant 0 : index
    %c0_3 = arith.constant 0 : index
    %c0_4 = arith.constant 0 : index
    %2 = vector.load %arg1[%c0_2, %c0_3, %c0_4] : memref<1x5x32xf32, #tpu.memory_space<vmem>>, vector<1x5x32xf32>
    %3 = vector.shape_cast %2 : vector<1x5x32xf32> to vector<5x32xf32>
    %4 = vector.extract_strided_slice %1 {offsets = [0, 0], sizes = [7, 32], strides = [1, 1]} : vector<7x64xf32> to vector<7x32xf32>
    %5 = vector.extract_strided_slice %1 {offsets = [0, 32], sizes = [7, 32], strides = [1, 1]} : vector<7x64xf32> to vector<7x32xf32>
    %c0_5 = arith.constant 0 : index
    %c0_6 = arith.constant 0 : index
    %c0_7 = arith.constant 0 : index
    %6 = vector.load %arg3[%c0_5, %c0_6, %c0_7] : memref<1x1x7xf32, #tpu.memory_space<vmem>>, vector<1x1x7xf32>
    %7 = vector.shape_cast %6 : vector<1x1x7xf32> to vector<1x7xf32>
    %cst = arith.constant 1.000000e+00 : f32
    %8 = vector.broadcast %cst : f32 to vector<1x7xf32>
    %9 = arith.subf %7, %8 : vector<1x7xf32>
    %cst_8 = arith.constant 1.000000e+09 : f32
    %10 = vector.broadcast %cst_8 : f32 to vector<1x7xf32>
    %11 = arith.mulf %9, %10 : vector<1x7xf32>
    %12 = vector.extract_strided_slice %3 {offsets = [0, 0], sizes = [5, 8], strides = [1, 1]} : vector<5x32xf32> to vector<5x8xf32>
    %13 = arith.truncf %12 : vector<5x8xf32> to vector<5x8xbf16>
    %14 = vector.extract_strided_slice %4 {offsets = [0, 0], sizes = [7, 8], strides = [1, 1]} : vector<7x32xf32> to vector<7x8xf32>
    %15 = arith.truncf %14 : vector<7x8xf32> to vector<7x8xbf16>
    %16 = vector.extract_strided_slice %5 {offsets = [0, 0], sizes = [7, 8], strides = [1, 1]} : vector<7x32xf32> to vector<7x8xf32>
    %17 = arith.truncf %16 : vector<7x8xf32> to vector<7x8xbf16>
    %cst_9 = arith.constant dense<0.000000e+00> : vector<5x7xf32>
    %18 = tpu.matmul %13, %15, %cst_9 {dimension_numbers = #tpu.dot_dimension_numbers<[1], [1], [0], [0], [0, 0, 1, 0], [], []>} : vector<5x8xbf16>, vector<7x8xbf16>, vector<5x7xf32> -> vector<5x7xf32>
    %cst_10 = arith.constant 0.353553385 : f32
    %19 = vector.broadcast %cst_10 : f32 to vector<5x7xf32>
    %20 = arith.mulf %18, %19 : vector<5x7xf32>
    %21 = vector.broadcast %11 : vector<1x7xf32> to vector<5x7xf32>
    %22 = arith.addf %20, %21 : vector<5x7xf32>
    %cst_11 = arith.constant dense<0xFF800000> : vector<5xf32>
    %23 = vector.multi_reduction <maximumf>, %22, %cst_11 [1] : vector<5x7xf32> to vector<5xf32>
    %24 = vector.shape_cast %23 : vector<5xf32> to vector<5x1xf32>
    %25 = vector.broadcast %24 : vector<5x1xf32> to vector<5x7xf32>
    %26 = arith.subf %22, %25 : vector<5x7xf32>
    %27 = math.exp %26 : vector<5x7xf32>
    %28 = vector.broadcast %7 : vector<1x7xf32> to vector<5x7xf32>
    %29 = arith.mulf %27, %28 : vector<5x7xf32>
    %30 = arith.truncf %29 : vector<5x7xf32> to vector<5x7xbf16>
    %cst_12 = arith.constant dense<0.000000e+00> : vector<5x8xf32>
    %31 = tpu.matmul %30, %17, %cst_12 {dimension_numbers = #tpu.dot_dimension_numbers<[1], [0], [0], [1], [0, 0, 1, 1], [], []>} : vector<5x7xbf16>, vector<7x8xbf16>, vector<5x8xf32> -> vector<5x8xf32>
    %cst_13 = arith.constant dense<0.000000e+00> : vector<5xf32>
    %32 = vector.multi_reduction <add>, %29, %cst_13 [1] : vector<5x7xf32> to vector<5xf32>
    %33 = vector.shape_cast %32 : vector<5xf32> to vector<5x1xf32>
    %cst_14 = arith.constant 9.99999997E-7 : f32
    %34 = vector.broadcast %cst_14 : f32 to vector<5x1xf32>
    %35 = arith.addf %33, %34 : vector<5x1xf32>
    %36 = tpu.reciprocal %35 {approx = true} : vector<5x1xf32> -> vector<5x1xf32>
    %37 = vector.broadcast %36 : vector<5x1xf32> to vector<5x8xf32>
    %38 = arith.mulf %31, %37 : vector<5x8xf32>
    %39 = vector.extract_strided_slice %3 {offsets = [0, 8], sizes = [5, 8], strides = [1, 1]} : vector<5x32xf32> to vector<5x8xf32>
    %40 = arith.truncf %39 : vector<5x8xf32> to vector<5x8xbf16>
    %41 = vector.extract_strided_slice %4 {offsets = [0, 8], sizes = [7, 8], strides = [1, 1]} : vector<7x32xf32> to vector<7x8xf32>
    %42 = arith.truncf %41 : vector<7x8xf32> to vector<7x8xbf16>
    %43 = vector.extract_strided_slice %5 {offsets = [0, 8], sizes = [7, 8], strides = [1, 1]} : vector<7x32xf32> to vector<7x8xf32>
    %44 = arith.truncf %43 : vector<7x8xf32> to vector<7x8xbf16>
    %cst_15 = arith.constant dense<0.000000e+00> : vector<5x7xf32>
    %45 = tpu.matmul %40, %42, %cst_15 {dimension_numbers = #tpu.dot_dimension_numbers<[1], [1], [0], [0], [0, 0, 1, 0], [], []>} : vector<5x8xbf16>, vector<7x8xbf16>, vector<5x7xf32> -> vector<5x7xf32>
    %cst_16 = arith.constant 0.353553385 : f32
    %46 = vector.broadcast %cst_16 : f32 to vector<5x7xf32>
    %47 = arith.mulf %45, %46 : vector<5x7xf32>
    %48 = vector.broadcast %11 : vector<1x7xf32> to vector<5x7xf32>
    %49 = arith.addf %47, %48 : vector<5x7xf32>
    %cst_17 = arith.constant dense<0xFF800000> : vector<5xf32>
    %50 = vector.multi_reduction <maximumf>, %49, %cst_17 [1] : vector<5x7xf32> to vector<5xf32>
    %51 = vector.shape_cast %50 : vector<5xf32> to vector<5x1xf32>
    %52 = vector.broadcast %51 : vector<5x1xf32> to vector<5x7xf32>
    %53 = arith.subf %49, %52 : vector<5x7xf32>
    %54 = math.exp %53 : vector<5x7xf32>
    %55 = vector.broadcast %7 : vector<1x7xf32> to vector<5x7xf32>
    %56 = arith.mulf %54, %55 : vector<5x7xf32>
    %57 = arith.truncf %56 : vector<5x7xf32> to vector<5x7xbf16>
    %cst_18 = arith.constant dense<0.000000e+00> : vector<5x8xf32>
    %58 = tpu.matmul %57, %44, %cst_18 {dimension_numbers = #tpu.dot_dimension_numbers<[1], [0], [0], [1], [0, 0, 1, 1], [], []>} : vector<5x7xbf16>, vector<7x8xbf16>, vector<5x8xf32> -> vector<5x8xf32>
    %cst_19 = arith.constant dense<0.000000e+00> : vector<5xf32>
    %59 = vector.multi_reduction <add>, %56, %cst_19 [1] : vector<5x7xf32> to vector<5xf32>
    %60 = vector.shape_cast %59 : vector<5xf32> to vector<5x1xf32>
    %cst_20 = arith.constant 9.99999997E-7 : f32
    %61 = vector.broadcast %cst_20 : f32 to vector<5x1xf32>
    %62 = arith.addf %60, %61 : vector<5x1xf32>
    %63 = tpu.reciprocal %62 {approx = true} : vector<5x1xf32> -> vector<5x1xf32>
    %64 = vector.broadcast %63 : vector<5x1xf32> to vector<5x8xf32>
    %65 = arith.mulf %58, %64 : vector<5x8xf32>
    %66 = vector.extract_strided_slice %3 {offsets = [0, 16], sizes = [5, 8], strides = [1, 1]} : vector<5x32xf32> to vector<5x8xf32>
    %67 = arith.truncf %66 : vector<5x8xf32> to vector<5x8xbf16>
    %68 = vector.extract_strided_slice %4 {offsets = [0, 16], sizes = [7, 8], strides = [1, 1]} : vector<7x32xf32> to vector<7x8xf32>
    %69 = arith.truncf %68 : vector<7x8xf32> to vector<7x8xbf16>
    %70 = vector.extract_strided_slice %5 {offsets = [0, 16], sizes = [7, 8], strides = [1, 1]} : vector<7x32xf32> to vector<7x8xf32>
    %71 = arith.truncf %70 : vector<7x8xf32> to vector<7x8xbf16>
    %cst_21 = arith.constant dense<0.000000e+00> : vector<5x7xf32>
    %72 = tpu.matmul %67, %69, %cst_21 {dimension_numbers = #tpu.dot_dimension_numbers<[1], [1], [0], [0], [0, 0, 1, 0], [], []>} : vector<5x8xbf16>, vector<7x8xbf16>, vector<5x7xf32> -> vector<5x7xf32>
    %cst_22 = arith.constant 0.353553385 : f32
    %73 = vector.broadcast %cst_22 : f32 to vector<5x7xf32>
    %74 = arith.mulf %72, %73 : vector<5x7xf32>
    %75 = vector.broadcast %11 : vector<1x7xf32> to vector<5x7xf32>
    %76 = arith.addf %74, %75 : vector<5x7xf32>
    %cst_23 = arith.constant dense<0xFF800000> : vector<5xf32>
    %77 = vector.multi_reduction <maximumf>, %76, %cst_23 [1] : vector<5x7xf32> to vector<5xf32>
    %78 = vector.shape_cast %77 : vector<5xf32> to vector<5x1xf32>
    %79 = vector.broadcast %78 : vector<5x1xf32> to vector<5x7xf32>
    %80 = arith.subf %76, %79 : vector<5x7xf32>
    %81 = math.exp %80 : vector<5x7xf32>
    %82 = vector.broadcast %7 : vector<1x7xf32> to vector<5x7xf32>
    %83 = arith.mulf %81, %82 : vector<5x7xf32>
    %84 = arith.truncf %83 : vector<5x7xf32> to vector<5x7xbf16>
    %cst_24 = arith.constant dense<0.000000e+00> : vector<5x8xf32>
    %85 = tpu.matmul %84, %71, %cst_24 {dimension_numbers = #tpu.dot_dimension_numbers<[1], [0], [0], [1], [0, 0, 1, 1], [], []>} : vector<5x7xbf16>, vector<7x8xbf16>, vector<5x8xf32> -> vector<5x8xf32>
    %cst_25 = arith.constant dense<0.000000e+00> : vector<5xf32>
    %86 = vector.multi_reduction <add>, %83, %cst_25 [1] : vector<5x7xf32> to vector<5xf32>
    %87 = vector.shape_cast %86 : vector<5xf32> to vector<5x1xf32>
    %cst_26 = arith.constant 9.99999997E-7 : f32
    %88 = vector.broadcast %cst_26 : f32 to vector<5x1xf32>
    %89 = arith.addf %87, %88 : vector<5x1xf32>
    %90 = tpu.reciprocal %89 {approx = true} : vector<5x1xf32> -> vector<5x1xf32>
    %91 = vector.broadcast %90 : vector<5x1xf32> to vector<5x8xf32>
    %92 = arith.mulf %85, %91 : vector<5x8xf32>
    %93 = vector.extract_strided_slice %3 {offsets = [0, 24], sizes = [5, 8], strides = [1, 1]} : vector<5x32xf32> to vector<5x8xf32>
    %94 = arith.truncf %93 : vector<5x8xf32> to vector<5x8xbf16>
    %95 = vector.extract_strided_slice %4 {offsets = [0, 24], sizes = [7, 8], strides = [1, 1]} : vector<7x32xf32> to vector<7x8xf32>
    %96 = arith.truncf %95 : vector<7x8xf32> to vector<7x8xbf16>
    %97 = vector.extract_strided_slice %5 {offsets = [0, 24], sizes = [7, 8], strides = [1, 1]} : vector<7x32xf32> to vector<7x8xf32>
    %98 = arith.truncf %97 : vector<7x8xf32> to vector<7x8xbf16>
    %cst_27 = arith.constant dense<0.000000e+00> : vector<5x7xf32>
    %99 = tpu.matmul %94, %96, %cst_27 {dimension_numbers = #tpu.dot_dimension_numbers<[1], [1], [0], [0], [0, 0, 1, 0], [], []>} : vector<5x8xbf16>, vector<7x8xbf16>, vector<5x7xf32> -> vector<5x7xf32>
    %cst_28 = arith.constant 0.353553385 : f32
    %100 = vector.broadcast %cst_28 : f32 to vector<5x7xf32>
    %101 = arith.mulf %99, %100 : vector<5x7xf32>
    %102 = vector.broadcast %11 : vector<1x7xf32> to vector<5x7xf32>
    %103 = arith.addf %101, %102 : vector<5x7xf32>
    %cst_29 = arith.constant dense<0xFF800000> : vector<5xf32>
    %104 = vector.multi_reduction <maximumf>, %103, %cst_29 [1] : vector<5x7xf32> to vector<5xf32>
    %105 = vector.shape_cast %104 : vector<5xf32> to vector<5x1xf32>
    %106 = vector.broadcast %105 : vector<5x1xf32> to vector<5x7xf32>
    %107 = arith.subf %103, %106 : vector<5x7xf32>
    %108 = math.exp %107 : vector<5x7xf32>
    %109 = vector.broadcast %7 : vector<1x7xf32> to vector<5x7xf32>
    %110 = arith.mulf %108, %109 : vector<5x7xf32>
    %111 = arith.truncf %110 : vector<5x7xf32> to vector<5x7xbf16>
    %cst_30 = arith.constant dense<0.000000e+00> : vector<5x8xf32>
    %112 = tpu.matmul %111, %98, %cst_30 {dimension_numbers = #tpu.dot_dimension_numbers<[1], [0], [0], [1], [0, 0, 1, 1], [], []>} : vector<5x7xbf16>, vector<7x8xbf16>, vector<5x8xf32> -> vector<5x8xf32>
    %cst_31 = arith.constant dense<0.000000e+00> : vector<5xf32>
    %113 = vector.multi_reduction <add>, %110, %cst_31 [1] : vector<5x7xf32> to vector<5xf32>
    %114 = vector.shape_cast %113 : vector<5xf32> to vector<5x1xf32>
    %cst_32 = arith.constant 9.99999997E-7 : f32
    %115 = vector.broadcast %cst_32 : f32 to vector<5x1xf32>
    %116 = arith.addf %114, %115 : vector<5x1xf32>
    %117 = tpu.reciprocal %116 {approx = true} : vector<5x1xf32> -> vector<5x1xf32>
    %118 = vector.broadcast %117 : vector<5x1xf32> to vector<5x8xf32>
    %119 = arith.mulf %112, %118 : vector<5x8xf32>
    %120 = tpu.concatenate %38, %65, %92, %119 in 1 : vector<5x8xf32>, vector<5x8xf32>, vector<5x8xf32>, vector<5x8xf32> -> vector<5x32xf32>
    %c0_33 = arith.constant 0 : index
    %c0_34 = arith.constant 0 : index
    %c0_35 = arith.constant 0 : index
    %121 = vector.load %arg4[%c0_33, %c0_34, %c0_35] : memref<1x5x32xf32, #tpu.memory_space<vmem>>, vector<1x5x32xf32>
    %122 = vector.shape_cast %121 : vector<1x5x32xf32> to vector<5x32xf32>
    %123 = vector.shape_cast %120 : vector<5x32xf32> to vector<1x5x32xf32>
    tpu.vector_store %arg4[%c0_33, %c0_34, %c0_35], %123 {strides = array<i32>} : memref<1x5x32xf32, #tpu.memory_space<vmem>>, vector<1x5x32xf32>,
    return
  }
  func.func @transform_0(%arg0: i32) -> (i32, i32, i32) {
    %c0_i32 = arith.constant 0 : i32
    %c0_i32_0 = arith.constant 0 : i32
    %c0_i32_1 = arith.constant 0 : i32
    return %arg0, %c0_i32, %c0_i32_0 : i32, i32, i32
  }
  func.func @transform_1(%arg0: i32) -> (i32, i32, i32) {
    %c0_i32 = arith.constant 0 : i32
    %c0_i32_0 = arith.constant 0 : i32
    %c0_i32_1 = arith.constant 0 : i32
    return %arg0, %c0_i32, %c0_i32_0 : i32, i32, i32
  }
  func.func @transform_2(%arg0: i32) -> (i32, i32, i32) {
    %c0_i32 = arith.constant 0 : i32
    %c0_i32_0 = arith.constant 0 : i32
    %c0_i32_1 = arith.constant 0 : i32
    return %arg0, %c0_i32, %c0_i32_0 : i32, i32, i32
  }
  func.func @transform_3(%arg0: i32) -> (i32, i32, i32) {
    %c0_i32 = arith.constant 0 : i32
    %c0_i32_0 = arith.constant 0 : i32
    %c0_i32_1 = arith.constant 0 : i32
    return %arg0, %c0_i32, %c0_i32_0 : i32, i32, i32
  }
}

module attributes {stable_mosaic.version = 11 : i64} {
  func.func @_self_attn_kernel(%arg0: i32, %arg1: memref<1x5x96xf32, #tpu.memory_space<vmem>>, %arg2: memref<1x5x5xf32, #tpu.memory_space<vmem>>, %arg3: memref<1x5x32xf32, #tpu.memory_space<vmem>>) attributes {dimension_semantics = [#tpu.dimension_semantics<parallel>], iteration_bounds = array<i64: 2>, scalar_prefetch = 0 : i64, scratch_operands = 0 : i64, tpu.core_type = #tpu.core_type<tc>, window_params = [{transform_indices = @transform_0, window_bounds = array<i64: 1, 5, 96>}, {transform_indices = @transform_1, window_bounds = array<i64: 1, 5, 5>}, {transform_indices = @transform_2, window_bounds = array<i64: 1, 5, 32>}]} {
    %c0 = arith.constant 0 : index
    %c0_0 = arith.constant 0 : index
    %c0_1 = arith.constant 0 : index
    %0 = vector.load %arg1[%c0, %c0_0, %c0_1] : memref<1x5x96xf32, #tpu.memory_space<vmem>>, vector<1x5x96xf32>
    %1 = vector.shape_cast %0 : vector<1x5x96xf32> to vector<5x96xf32>
    %2 = vector.extract_strided_slice %1 {offsets = [0, 0], sizes = [5, 32], strides = [1, 1]} : vector<5x96xf32> to vector<5x32xf32>
    %3 = vector.extract_strided_slice %1 {offsets = [0, 32], sizes = [5, 32], strides = [1, 1]} : vector<5x96xf32> to vector<5x32xf32>
    %4 = vector.extract_strided_slice %1 {offsets = [0, 64], sizes = [5, 32], strides = [1, 1]} : vector<5x96xf32> to vector<5x32xf32>
    %c0_2 = arith.constant 0 : index
    %c0_3 = arith.constant 0 : index
    %c0_4 = arith.constant 0 : index
    %5 = vector.load %arg2[%c0_2, %c0_3, %c0_4] : memref<1x5x5xf32, #tpu.memory_space<vmem>>, vector<1x5x5xf32>
    %6 = vector.shape_cast %5 : vector<1x5x5xf32> to vector<5x5xf32>
    %cst = arith.constant 1.000000e+00 : f32
    %7 = vector.broadcast %cst : f32 to vector<5x5xf32>
    %8 = arith.subf %6, %7 : vector<5x5xf32>
    %cst_5 = arith.constant 1.000000e+09 : f32
    %9 = vector.broadcast %cst_5 : f32 to vector<5x5xf32>
    %10 = arith.mulf %8, %9 : vector<5x5xf32>
    %11 = vector.extract_strided_slice %2 {offsets = [0, 0], sizes = [5, 8], strides = [1, 1]} : vector<5x32xf32> to vector<5x8xf32>
    %12 = arith.truncf %11 : vector<5x8xf32> to vector<5x8xbf16>
    %13 = vector.extract_strided_slice %3 {offsets = [0, 0], sizes = [5, 8], strides = [1, 1]} : vector<5x32xf32> to vector<5x8xf32>
    %14 = arith.truncf %13 : vector<5x8xf32> to vector<5x8xbf16>
    %15 = vector.extract_strided_slice %4 {offsets = [0, 0], sizes = [5, 8], strides = [1, 1]} : vector<5x32xf32> to vector<5x8xf32>
    %16 = arith.truncf %15 : vector<5x8xf32> to vector<5x8xbf16>
    %cst_6 = arith.constant dense<0.000000e+00> : vector<5x5xf32>
    %17 = tpu.matmul %12, %14, %cst_6 {dimension_numbers = #tpu.dot_dimension_numbers<[1], [1], [0], [0], [0, 0, 1, 0], [], []>} : vector<5x8xbf16>, vector<5x8xbf16>, vector<5x5xf32> -> vector<5x5xf32>
    %cst_7 = arith.constant 0.353553385 : f32
    %18 = vector.broadcast %cst_7 : f32 to vector<5x5xf32>
    %19 = arith.mulf %17, %18 : vector<5x5xf32>
    %20 = arith.addf %19, %10 : vector<5x5xf32>
    %cst_8 = arith.constant dense<0xFF800000> : vector<5xf32>
    %21 = vector.multi_reduction <maximumf>, %20, %cst_8 [1] : vector<5x5xf32> to vector<5xf32>
    %22 = vector.shape_cast %21 : vector<5xf32> to vector<5x1xf32>
    %23 = vector.broadcast %22 : vector<5x1xf32> to vector<5x5xf32>
    %24 = arith.subf %20, %23 : vector<5x5xf32>
    %25 = math.exp %24 : vector<5x5xf32>
    %26 = arith.mulf %25, %6 : vector<5x5xf32>
    %27 = arith.truncf %26 : vector<5x5xf32> to vector<5x5xbf16>
    %cst_9 = arith.constant dense<0.000000e+00> : vector<5x8xf32>
    %28 = tpu.matmul %27, %16, %cst_9 {dimension_numbers = #tpu.dot_dimension_numbers<[1], [0], [0], [1], [0, 0, 1, 1], [], []>} : vector<5x5xbf16>, vector<5x8xbf16>, vector<5x8xf32> -> vector<5x8xf32>
    %cst_10 = arith.constant dense<0.000000e+00> : vector<5xf32>
    %29 = vector.multi_reduction <add>, %26, %cst_10 [1] : vector<5x5xf32> to vector<5xf32>
    %30 = vector.shape_cast %29 : vector<5xf32> to vector<5x1xf32>
    %cst_11 = arith.constant 9.99999997E-7 : f32
    %31 = vector.broadcast %cst_11 : f32 to vector<5x1xf32>
    %32 = arith.addf %30, %31 : vector<5x1xf32>
    %33 = tpu.reciprocal %32 {approx = true} : vector<5x1xf32> -> vector<5x1xf32>
    %34 = vector.broadcast %33 : vector<5x1xf32> to vector<5x8xf32>
    %35 = arith.mulf %28, %34 : vector<5x8xf32>
    %36 = vector.extract_strided_slice %2 {offsets = [0, 8], sizes = [5, 8], strides = [1, 1]} : vector<5x32xf32> to vector<5x8xf32>
    %37 = arith.truncf %36 : vector<5x8xf32> to vector<5x8xbf16>
    %38 = vector.extract_strided_slice %3 {offsets = [0, 8], sizes = [5, 8], strides = [1, 1]} : vector<5x32xf32> to vector<5x8xf32>
    %39 = arith.truncf %38 : vector<5x8xf32> to vector<5x8xbf16>
    %40 = vector.extract_strided_slice %4 {offsets = [0, 8], sizes = [5, 8], strides = [1, 1]} : vector<5x32xf32> to vector<5x8xf32>
    %41 = arith.truncf %40 : vector<5x8xf32> to vector<5x8xbf16>
    %cst_12 = arith.constant dense<0.000000e+00> : vector<5x5xf32>
    %42 = tpu.matmul %37, %39, %cst_12 {dimension_numbers = #tpu.dot_dimension_numbers<[1], [1], [0], [0], [0, 0, 1, 0], [], []>} : vector<5x8xbf16>, vector<5x8xbf16>, vector<5x5xf32> -> vector<5x5xf32>
    %cst_13 = arith.constant 0.353553385 : f32
    %43 = vector.broadcast %cst_13 : f32 to vector<5x5xf32>
    %44 = arith.mulf %42, %43 : vector<5x5xf32>
    %45 = arith.addf %44, %10 : vector<5x5xf32>
    %cst_14 = arith.constant dense<0xFF800000> : vector<5xf32>
    %46 = vector.multi_reduction <maximumf>, %45, %cst_14 [1] : vector<5x5xf32> to vector<5xf32>
    %47 = vector.shape_cast %46 : vector<5xf32> to vector<5x1xf32>
    %48 = vector.broadcast %47 : vector<5x1xf32> to vector<5x5xf32>
    %49 = arith.subf %45, %48 : vector<5x5xf32>
    %50 = math.exp %49 : vector<5x5xf32>
    %51 = arith.mulf %50, %6 : vector<5x5xf32>
    %52 = arith.truncf %51 : vector<5x5xf32> to vector<5x5xbf16>
    %cst_15 = arith.constant dense<0.000000e+00> : vector<5x8xf32>
    %53 = tpu.matmul %52, %41, %cst_15 {dimension_numbers = #tpu.dot_dimension_numbers<[1], [0], [0], [1], [0, 0, 1, 1], [], []>} : vector<5x5xbf16>, vector<5x8xbf16>, vector<5x8xf32> -> vector<5x8xf32>
    %cst_16 = arith.constant dense<0.000000e+00> : vector<5xf32>
    %54 = vector.multi_reduction <add>, %51, %cst_16 [1] : vector<5x5xf32> to vector<5xf32>
    %55 = vector.shape_cast %54 : vector<5xf32> to vector<5x1xf32>
    %cst_17 = arith.constant 9.99999997E-7 : f32
    %56 = vector.broadcast %cst_17 : f32 to vector<5x1xf32>
    %57 = arith.addf %55, %56 : vector<5x1xf32>
    %58 = tpu.reciprocal %57 {approx = true} : vector<5x1xf32> -> vector<5x1xf32>
    %59 = vector.broadcast %58 : vector<5x1xf32> to vector<5x8xf32>
    %60 = arith.mulf %53, %59 : vector<5x8xf32>
    %61 = vector.extract_strided_slice %2 {offsets = [0, 16], sizes = [5, 8], strides = [1, 1]} : vector<5x32xf32> to vector<5x8xf32>
    %62 = arith.truncf %61 : vector<5x8xf32> to vector<5x8xbf16>
    %63 = vector.extract_strided_slice %3 {offsets = [0, 16], sizes = [5, 8], strides = [1, 1]} : vector<5x32xf32> to vector<5x8xf32>
    %64 = arith.truncf %63 : vector<5x8xf32> to vector<5x8xbf16>
    %65 = vector.extract_strided_slice %4 {offsets = [0, 16], sizes = [5, 8], strides = [1, 1]} : vector<5x32xf32> to vector<5x8xf32>
    %66 = arith.truncf %65 : vector<5x8xf32> to vector<5x8xbf16>
    %cst_18 = arith.constant dense<0.000000e+00> : vector<5x5xf32>
    %67 = tpu.matmul %62, %64, %cst_18 {dimension_numbers = #tpu.dot_dimension_numbers<[1], [1], [0], [0], [0, 0, 1, 0], [], []>} : vector<5x8xbf16>, vector<5x8xbf16>, vector<5x5xf32> -> vector<5x5xf32>
    %cst_19 = arith.constant 0.353553385 : f32
    %68 = vector.broadcast %cst_19 : f32 to vector<5x5xf32>
    %69 = arith.mulf %67, %68 : vector<5x5xf32>
    %70 = arith.addf %69, %10 : vector<5x5xf32>
    %cst_20 = arith.constant dense<0xFF800000> : vector<5xf32>
    %71 = vector.multi_reduction <maximumf>, %70, %cst_20 [1] : vector<5x5xf32> to vector<5xf32>
    %72 = vector.shape_cast %71 : vector<5xf32> to vector<5x1xf32>
    %73 = vector.broadcast %72 : vector<5x1xf32> to vector<5x5xf32>
    %74 = arith.subf %70, %73 : vector<5x5xf32>
    %75 = math.exp %74 : vector<5x5xf32>
    %76 = arith.mulf %75, %6 : vector<5x5xf32>
    %77 = arith.truncf %76 : vector<5x5xf32> to vector<5x5xbf16>
    %cst_21 = arith.constant dense<0.000000e+00> : vector<5x8xf32>
    %78 = tpu.matmul %77, %66, %cst_21 {dimension_numbers = #tpu.dot_dimension_numbers<[1], [0], [0], [1], [0, 0, 1, 1], [], []>} : vector<5x5xbf16>, vector<5x8xbf16>, vector<5x8xf32> -> vector<5x8xf32>
    %cst_22 = arith.constant dense<0.000000e+00> : vector<5xf32>
    %79 = vector.multi_reduction <add>, %76, %cst_22 [1] : vector<5x5xf32> to vector<5xf32>
    %80 = vector.shape_cast %79 : vector<5xf32> to vector<5x1xf32>
    %cst_23 = arith.constant 9.99999997E-7 : f32
    %81 = vector.broadcast %cst_23 : f32 to vector<5x1xf32>
    %82 = arith.addf %80, %81 : vector<5x1xf32>
    %83 = tpu.reciprocal %82 {approx = true} : vector<5x1xf32> -> vector<5x1xf32>
    %84 = vector.broadcast %83 : vector<5x1xf32> to vector<5x8xf32>
    %85 = arith.mulf %78, %84 : vector<5x8xf32>
    %86 = vector.extract_strided_slice %2 {offsets = [0, 24], sizes = [5, 8], strides = [1, 1]} : vector<5x32xf32> to vector<5x8xf32>
    %87 = arith.truncf %86 : vector<5x8xf32> to vector<5x8xbf16>
    %88 = vector.extract_strided_slice %3 {offsets = [0, 24], sizes = [5, 8], strides = [1, 1]} : vector<5x32xf32> to vector<5x8xf32>
    %89 = arith.truncf %88 : vector<5x8xf32> to vector<5x8xbf16>
    %90 = vector.extract_strided_slice %4 {offsets = [0, 24], sizes = [5, 8], strides = [1, 1]} : vector<5x32xf32> to vector<5x8xf32>
    %91 = arith.truncf %90 : vector<5x8xf32> to vector<5x8xbf16>
    %cst_24 = arith.constant dense<0.000000e+00> : vector<5x5xf32>
    %92 = tpu.matmul %87, %89, %cst_24 {dimension_numbers = #tpu.dot_dimension_numbers<[1], [1], [0], [0], [0, 0, 1, 0], [], []>} : vector<5x8xbf16>, vector<5x8xbf16>, vector<5x5xf32> -> vector<5x5xf32>
    %cst_25 = arith.constant 0.353553385 : f32
    %93 = vector.broadcast %cst_25 : f32 to vector<5x5xf32>
    %94 = arith.mulf %92, %93 : vector<5x5xf32>
    %95 = arith.addf %94, %10 : vector<5x5xf32>
    %cst_26 = arith.constant dense<0xFF800000> : vector<5xf32>
    %96 = vector.multi_reduction <maximumf>, %95, %cst_26 [1] : vector<5x5xf32> to vector<5xf32>
    %97 = vector.shape_cast %96 : vector<5xf32> to vector<5x1xf32>
    %98 = vector.broadcast %97 : vector<5x1xf32> to vector<5x5xf32>
    %99 = arith.subf %95, %98 : vector<5x5xf32>
    %100 = math.exp %99 : vector<5x5xf32>
    %101 = arith.mulf %100, %6 : vector<5x5xf32>
    %102 = arith.truncf %101 : vector<5x5xf32> to vector<5x5xbf16>
    %cst_27 = arith.constant dense<0.000000e+00> : vector<5x8xf32>
    %103 = tpu.matmul %102, %91, %cst_27 {dimension_numbers = #tpu.dot_dimension_numbers<[1], [0], [0], [1], [0, 0, 1, 1], [], []>} : vector<5x5xbf16>, vector<5x8xbf16>, vector<5x8xf32> -> vector<5x8xf32>
    %cst_28 = arith.constant dense<0.000000e+00> : vector<5xf32>
    %104 = vector.multi_reduction <add>, %101, %cst_28 [1] : vector<5x5xf32> to vector<5xf32>
    %105 = vector.shape_cast %104 : vector<5xf32> to vector<5x1xf32>
    %cst_29 = arith.constant 9.99999997E-7 : f32
    %106 = vector.broadcast %cst_29 : f32 to vector<5x1xf32>
    %107 = arith.addf %105, %106 : vector<5x1xf32>
    %108 = tpu.reciprocal %107 {approx = true} : vector<5x1xf32> -> vector<5x1xf32>
    %109 = vector.broadcast %108 : vector<5x1xf32> to vector<5x8xf32>
    %110 = arith.mulf %103, %109 : vector<5x8xf32>
    %111 = tpu.concatenate %35, %60, %85, %110 in 1 : vector<5x8xf32>, vector<5x8xf32>, vector<5x8xf32>, vector<5x8xf32> -> vector<5x32xf32>
    %c0_30 = arith.constant 0 : index
    %c0_31 = arith.constant 0 : index
    %c0_32 = arith.constant 0 : index
    %112 = vector.load %arg3[%c0_30, %c0_31, %c0_32] : memref<1x5x32xf32, #tpu.memory_space<vmem>>, vector<1x5x32xf32>
    %113 = vector.shape_cast %112 : vector<1x5x32xf32> to vector<5x32xf32>
    %114 = vector.shape_cast %111 : vector<5x32xf32> to vector<1x5x32xf32>
    tpu.vector_store %arg3[%c0_30, %c0_31, %c0_32], %114 {strides = array<i32>} : memref<1x5x32xf32, #tpu.memory_space<vmem>>, vector<1x5x32xf32>,
    return
  }
  func.func @transform_0(%arg0: i32) -> (i32, i32, i32) {
    %c0_i32 = arith.constant 0 : i32
    %c0_i32_0 = arith.constant 0 : i32
    %c0_i32_1 = arith.constant 0 : i32
    return %arg0, %c0_i32, %c0_i32_0 : i32, i32, i32
  }
  func.func @transform_1(%arg0: i32) -> (i32, i32, i32) {
    %c0_i32 = arith.constant 0 : i32
    %c0_i32_0 = arith.constant 0 : i32
    %c0_i32_1 = arith.constant 0 : i32
    return %arg0, %c0_i32, %c0_i32_0 : i32, i32, i32
  }
  func.func @transform_2(%arg0: i32) -> (i32, i32, i32) {
    %c0_i32 = arith.constant 0 : i32
    %c0_i32_0 = arith.constant 0 : i32
    %c0_i32_1 = arith.constant 0 : i32
    return %arg0, %c0_i32, %c0_i32_0 : i32, i32, i32
  }
}

module attributes {stable_mosaic.version = 11 : i64} {
  func.func @_ln_linear_logsoftmax_kernel(%arg0: i32, %arg1: memref<16x32xf32, #tpu.memory_space<vmem>>, %arg2: memref<1x32xf32, #tpu.memory_space<vmem>>, %arg3: memref<1x32xf32, #tpu.memory_space<vmem>>, %arg4: memref<32x128xbf16, #tpu.memory_space<vmem>>, %arg5: memref<1x128xf32, #tpu.memory_space<vmem>>, %arg6: memref<16x128xf32, #tpu.memory_space<vmem>>) attributes {dimension_semantics = [#tpu.dimension_semantics<parallel>], iteration_bounds = array<i64: 1>, scalar_prefetch = 0 : i64, scratch_operands = 0 : i64, tpu.core_type = #tpu.core_type<tc>, window_params = [{transform_indices = @transform_0, window_bounds = array<i64: 16, 32>}, {pipeline_mode = #tpu.pipeline_mode<synchronous>, transform_indices = @transform_1, window_bounds = array<i64: 1, 32>}, {pipeline_mode = #tpu.pipeline_mode<synchronous>, transform_indices = @transform_2, window_bounds = array<i64: 1, 32>}, {pipeline_mode = #tpu.pipeline_mode<synchronous>, transform_indices = @transform_3, window_bounds = array<i64: 32, 128>}, {pipeline_mode = #tpu.pipeline_mode<synchronous>, transform_indices = @transform_4, window_bounds = array<i64: 1, 128>}, {transform_indices = @transform_5, window_bounds = array<i64: 16, 128>}]} {
    %c0 = arith.constant 0 : index
    %c0_0 = arith.constant 0 : index
    %0 = vector.load %arg1[%c0, %c0_0] : memref<16x32xf32, #tpu.memory_space<vmem>>, vector<16x32xf32>
    %c0_1 = arith.constant 0 : index
    %c0_2 = arith.constant 0 : index
    %1 = vector.load %arg2[%c0_1, %c0_2] : memref<1x32xf32, #tpu.memory_space<vmem>>, vector<1x32xf32>
    %c0_3 = arith.constant 0 : index
    %c0_4 = arith.constant 0 : index
    %2 = vector.load %arg3[%c0_3, %c0_4] : memref<1x32xf32, #tpu.memory_space<vmem>>, vector<1x32xf32>
    %cst = arith.constant dense<0.000000e+00> : vector<16xf32>
    %3 = vector.multi_reduction <add>, %0, %cst [1] : vector<16x32xf32> to vector<16xf32>
    %4 = vector.shape_cast %3 : vector<16xf32> to vector<16x1xf32>
    %cst_5 = arith.constant 3.200000e+01 : f32
    %5 = vector.broadcast %cst_5 : f32 to vector<16x1xf32>
    %6 = arith.divf %4, %5 : vector<16x1xf32>
    %7 = vector.broadcast %6 : vector<16x1xf32> to vector<16x32xf32>
    %8 = arith.subf %0, %7 : vector<16x32xf32>
    %9 = arith.mulf %8, %8 : vector<16x32xf32>
    %cst_6 = arith.constant dense<0.000000e+00> : vector<16xf32>
    %10 = vector.multi_reduction <add>, %9, %cst_6 [1] : vector<16x32xf32> to vector<16xf32>
    %11 = vector.shape_cast %10 : vector<16xf32> to vector<16x1xf32>
    %cst_7 = arith.constant 3.200000e+01 : f32
    %12 = vector.broadcast %cst_7 : f32 to vector<16x1xf32>
    %13 = arith.divf %11, %12 : vector<16x1xf32>
    %14 = vector.broadcast %6 : vector<16x1xf32> to vector<16x32xf32>
    %15 = arith.subf %0, %14 : vector<16x32xf32>
    %cst_8 = arith.constant 9.99999996E-13 : f32
    %16 = vector.broadcast %cst_8 : f32 to vector<16x1xf32>
    %17 = arith.addf %13, %16 : vector<16x1xf32>
    %18 = math.rsqrt %17 : vector<16x1xf32>
    %19 = vector.broadcast %18 : vector<16x1xf32> to vector<16x32xf32>
    %20 = arith.mulf %15, %19 : vector<16x32xf32>
    %21 = vector.broadcast %1 : vector<1x32xf32> to vector<16x32xf32>
    %22 = arith.mulf %20, %21 : vector<16x32xf32>
    %23 = vector.broadcast %2 : vector<1x32xf32> to vector<16x32xf32>
    %24 = arith.addf %22, %23 : vector<16x32xf32>
    %c0_9 = arith.constant 0 : index
    %c0_10 = arith.constant 0 : index
    %25 = vector.load %arg4[%c0_9, %c0_10] : memref<32x128xbf16, #tpu.memory_space<vmem>>, vector<32x128xbf16>
    %26 = arith.truncf %24 : vector<16x32xf32> to vector<16x32xbf16>
    %cst_11 = arith.constant dense<0.000000e+00> : vector<16x128xf32>
    %27 = tpu.matmul %26, %25, %cst_11 {dimension_numbers = #tpu.dot_dimension_numbers<[1], [0], [0], [1], [0, 0, 1, 1], [], []>} : vector<16x32xbf16>, vector<32x128xbf16>, vector<16x128xf32> -> vector<16x128xf32>
    %c0_12 = arith.constant 0 : index
    %c0_13 = arith.constant 0 : index
    %28 = vector.load %arg5[%c0_12, %c0_13] : memref<1x128xf32, #tpu.memory_space<vmem>>, vector<1x128xf32>
    %29 = vector.broadcast %28 : vector<1x128xf32> to vector<16x128xf32>
    %30 = arith.addf %27, %29 : vector<16x128xf32>
    %cst_14 = arith.constant dense<0xFF800000> : vector<16xf32>
    %31 = vector.multi_reduction <maximumf>, %30, %cst_14 [1] : vector<16x128xf32> to vector<16xf32>
    %32 = vector.shape_cast %31 : vector<16xf32> to vector<16x1xf32>
    %33 = vector.broadcast %32 : vector<16x1xf32> to vector<16x128xf32>
    %34 = arith.subf %30, %33 : vector<16x128xf32>
    %35 = math.exp %34 : vector<16x128xf32>
    %cst_15 = arith.constant dense<0.000000e+00> : vector<16xf32>
    %36 = vector.multi_reduction <add>, %35, %cst_15 [1] : vector<16x128xf32> to vector<16xf32>
    %37 = vector.shape_cast %36 : vector<16xf32> to vector<16x1xf32>
    %38 = math.log %37 : vector<16x1xf32>
    %39 = vector.broadcast %38 : vector<16x1xf32> to vector<16x128xf32>
    %40 = arith.subf %34, %39 : vector<16x128xf32>
    %c0_16 = arith.constant 0 : index
    %c0_17 = arith.constant 0 : index
    %41 = vector.load %arg6[%c0_16, %c0_17] : memref<16x128xf32, #tpu.memory_space<vmem>>, vector<16x128xf32>
    tpu.vector_store %arg6[%c0_16, %c0_17], %40 {strides = array<i32>} : memref<16x128xf32, #tpu.memory_space<vmem>>, vector<16x128xf32>,
    return
  }
  func.func @transform_0(%arg0: i32) -> (i32, i32) {
    %c0_i32 = arith.constant 0 : i32
    %c0_i32_0 = arith.constant 0 : i32
    return %arg0, %c0_i32 : i32, i32
  }
  func.func @transform_1(%arg0: i32) -> (i32, i32) {
    %c0_i32 = arith.constant 0 : i32
    %c0_i32_0 = arith.constant 0 : i32
    %c0_i32_1 = arith.constant 0 : i32
    return %c0_i32, %c0_i32_0 : i32, i32
  }
  func.func @transform_2(%arg0: i32) -> (i32, i32) {
    %c0_i32 = arith.constant 0 : i32
    %c0_i32_0 = arith.constant 0 : i32
    %c0_i32_1 = arith.constant 0 : i32
    return %c0_i32, %c0_i32_0 : i32, i32
  }
  func.func @transform_3(%arg0: i32) -> (i32, i32) {
    %c0_i32 = arith.constant 0 : i32
    %c0_i32_0 = arith.constant 0 : i32
    %c0_i32_1 = arith.constant 0 : i32
    return %c0_i32, %c0_i32_0 : i32, i32
  }
  func.func @transform_4(%arg0: i32) -> (i32, i32) {
    %c0_i32 = arith.constant 0 : i32
    %c0_i32_0 = arith.constant 0 : i32
    %c0_i32_1 = arith.constant 0 : i32
    return %c0_i32, %c0_i32_0 : i32, i32
  }
  func.func @transform_5(%arg0: i32) -> (i32, i32) {
    %c0_i32 = arith.constant 0 : i32
    %c0_i32_0 = arith.constant 0 : i32
    return %arg0, %c0_i32 : i32, i32
  }
}

module attributes {stable_mosaic.version = 11 : i64} {
  func.func @_linear_logsoftmax_kernel(%arg0: i32, %arg1: memref<16x32xf32, #tpu.memory_space<vmem>>, %arg2: memref<32x128xbf16, #tpu.memory_space<vmem>>, %arg3: memref<1x128xf32, #tpu.memory_space<vmem>>, %arg4: memref<16x128xf32, #tpu.memory_space<vmem>>) attributes {dimension_semantics = [#tpu.dimension_semantics<parallel>], iteration_bounds = array<i64: 1>, scalar_prefetch = 0 : i64, scratch_operands = 0 : i64, tpu.core_type = #tpu.core_type<tc>, window_params = [{transform_indices = @transform_0, window_bounds = array<i64: 16, 32>}, {pipeline_mode = #tpu.pipeline_mode<synchronous>, transform_indices = @transform_1, window_bounds = array<i64: 32, 128>}, {pipeline_mode = #tpu.pipeline_mode<synchronous>, transform_indices = @transform_2, window_bounds = array<i64: 1, 128>}, {transform_indices = @transform_3, window_bounds = array<i64: 16, 128>}]} {
    %c0 = arith.constant 0 : index
    %c0_0 = arith.constant 0 : index
    %0 = vector.load %arg1[%c0, %c0_0] : memref<16x32xf32, #tpu.memory_space<vmem>>, vector<16x32xf32>
    %c0_1 = arith.constant 0 : index
    %c0_2 = arith.constant 0 : index
    %1 = vector.load %arg2[%c0_1, %c0_2] : memref<32x128xbf16, #tpu.memory_space<vmem>>, vector<32x128xbf16>
    %2 = arith.truncf %0 : vector<16x32xf32> to vector<16x32xbf16>
    %cst = arith.constant dense<0.000000e+00> : vector<16x128xf32>
    %3 = tpu.matmul %2, %1, %cst {dimension_numbers = #tpu.dot_dimension_numbers<[1], [0], [0], [1], [0, 0, 1, 1], [], []>} : vector<16x32xbf16>, vector<32x128xbf16>, vector<16x128xf32> -> vector<16x128xf32>
    %c0_3 = arith.constant 0 : index
    %c0_4 = arith.constant 0 : index
    %4 = vector.load %arg3[%c0_3, %c0_4] : memref<1x128xf32, #tpu.memory_space<vmem>>, vector<1x128xf32>
    %5 = vector.broadcast %4 : vector<1x128xf32> to vector<16x128xf32>
    %6 = arith.addf %3, %5 : vector<16x128xf32>
    %cst_5 = arith.constant dense<0xFF800000> : vector<16xf32>
    %7 = vector.multi_reduction <maximumf>, %6, %cst_5 [1] : vector<16x128xf32> to vector<16xf32>
    %8 = vector.shape_cast %7 : vector<16xf32> to vector<16x1xf32>
    %9 = vector.broadcast %8 : vector<16x1xf32> to vector<16x128xf32>
    %10 = arith.subf %6, %9 : vector<16x128xf32>
    %11 = math.exp %10 : vector<16x128xf32>
    %cst_6 = arith.constant dense<0.000000e+00> : vector<16xf32>
    %12 = vector.multi_reduction <add>, %11, %cst_6 [1] : vector<16x128xf32> to vector<16xf32>
    %13 = vector.shape_cast %12 : vector<16xf32> to vector<16x1xf32>
    %14 = math.log %13 : vector<16x1xf32>
    %15 = vector.broadcast %14 : vector<16x1xf32> to vector<16x128xf32>
    %16 = arith.subf %10, %15 : vector<16x128xf32>
    %c0_7 = arith.constant 0 : index
    %c0_8 = arith.constant 0 : index
    %17 = vector.load %arg4[%c0_7, %c0_8] : memref<16x128xf32, #tpu.memory_space<vmem>>, vector<16x128xf32>
    tpu.vector_store %arg4[%c0_7, %c0_8], %16 {strides = array<i32>} : memref<16x128xf32, #tpu.memory_space<vmem>>, vector<16x128xf32>,
    return
  }
  func.func @transform_0(%arg0: i32) -> (i32, i32) {
    %c0_i32 = arith.constant 0 : i32
    %c0_i32_0 = arith.constant 0 : i32
    return %arg0, %c0_i32 : i32, i32
  }
  func.func @transform_1(%arg0: i32) -> (i32, i32) {
    %c0_i32 = arith.constant 0 : i32
    %c0_i32_0 = arith.constant 0 : i32
    %c0_i32_1 = arith.constant 0 : i32
    return %c0_i32, %c0_i32_0 : i32, i32
  }
  func.func @transform_2(%arg0: i32) -> (i32, i32) {
    %c0_i32 = arith.constant 0 : i32
    %c0_i32_0 = arith.constant 0 : i32
    %c0_i32_1 = arith.constant 0 : i32
    return %c0_i32, %c0_i32_0 : i32, i32
  }
  func.func @transform_3(%arg0: i32) -> (i32, i32) {
    %c0_i32 = arith.constant 0 : i32
    %c0_i32_0 = arith.constant 0 : i32
    return %arg0, %c0_i32 : i32, i32
  }
}

</mosaic_0001>

<bundles_post_ra>
// kernel: fwd.29
= control target key start
LH: loop header
LB: loop body
LE: loop exit
PB: predicated region body
PF: predicated region fallthrough
CT: control target
= control target key end

     0   :  { %vm110_vm0 = vcmask 1043456   ;;  %vm111_vm1 = vcmask 1044480   ;;  %v278_v2 = vmov 65535   ;;  %vm67_vm2 = vcmask 72704   ;;  %s540_s1 = inlined_call_operand.vmem [shape: bf16[9,32], index: 1, kind: input, shape index: {}]   ;;  %s541_s0 = inlined_call_operand.vmem [shape: f32[216,9], index: 0, kind: input, shape index: {}]   ;;  %s542_s2 = inlined_call_operand.vmem [shape: f32[1,32], index: 2, kind: input, shape index: {}]   ;;  %s543_s3 = inlined_call_operand.vmem [shape: f32[216,32], index: 3, kind: output, shape index: {}]  }
   0x1   :  { %v256_v0 = vld [vmem:[%s540_s1] sm:$0xf]  ;;  %v272_v1 = vld [vmem:[%s540_s1] sm:$0x10]  ;;  %v112_v3 = vsel %vm110_vm0, 4294967295, %v278_v2  ;;  %v16_v7 = vld [vmem:[%s541_s0 + $0x8] sm:$0xff] }
   0x2   :  { %v15_v4 = vld [vmem:[%s541_s0] sm:$0xff]  ;;  %v257_v5 = vor.u32 %v272_v1, %v256_v0  ;;  %v113_v6 = vsel %vm111_vm1, %v112_v3, 0  ;;  %v24_v9 = vld [vmem:[%s541_s0 + $0x48] sm:$0xff]  ;;  %v17_v19 = vld [vmem:[%s541_s0 + $0x10] sm:$0xff]  ;;  %vm222_vm3 = vcmask 261120  }
   0x3   :  { %v23_v8 = vld [vmem:[%s541_s0 + $0x40] sm:$0xff]  ;;  %v32_v11 = vld [vmem:[%s541_s0 + $0x88] sm:$0xff]  ;;  %v44_v13 = vpack.c.bf16 %v16_v7, %v15_v4  ;;  %v18_v20 = vld [vmem:[%s541_s0 + $0x18] sm:$0xff] }
   0x4   :  { %v31_v10 = vld [vmem:[%s541_s0 + $0x80] sm:$0xff]  ;;  %v115_v12 = vand.u32 %v257_v5, %v113_v6  ;;  %v48_v14 = vpack.c.bf16 %v24_v9, %v23_v8  ;;  %v40_v17 = vld [vmem:[%s541_s0 + $0xc8] sm:$0xff]  ;;  %v25_v21 = vld [vmem:[%s541_s0 + $0x50] sm:$0xff]  ;;  %v45_v26 = vpack.c.bf16 %v18_v20, %v17_v19 }
   0x5   :  { %v39_v15 = vld [vmem:[%s541_s0 + $0xc0] sm:$0xff]  ;;  %v52_v16 = vpack.c.bf16 %v32_v11, %v31_v10  ;;  %v26_v22 = vld [vmem:[%s541_s0 + $0x58] sm:$0xff]  ;;  %v33_v23 = vld [vmem:[%s541_s0 + $0x90] sm:$0xff] }
   0x6   :  { %124 = vmatpush.bf16.msra.mxu0 %v115_v12  ;;  %273 = vmatpush.bf16.msra.mxu1 %v115_v12  ;;  %v56_v18 = vpack.c.bf16 %v40_v17, %v39_v15  ;;  %v34_v24 = vld [vmem:[%s541_s0 + $0x98] sm:$0xff]  ;;  %v41_v25 = vld [vmem:[%s541_s0 + $0xd0] sm:$0xff]  ;;  %v49_v27 = vpack.c.bf16 %v26_v22, %v25_v21  ;;  %v19_v30 = vld [vmem:[%s541_s0 + $0x20] sm:$0xff] }
   0x7   :  { %274 = vmatpush.bf16.msra.mxu2 %v115_v12  ;;  %275 = vmatpush.bf16.msra.mxu3 %v115_v12  ;;  %v53_v28 = vpack.c.bf16 %v34_v24, %v33_v23  ;;  %v57_v29 = vpack.c.bf16 %v41_v25, %v41_v25  ;;  %v20_v31 = vld [vmem:[%s541_s0 + $0x28] sm:$0xff]  ;;  %v27_v32 = vld [vmem:[%s541_s0 + $0x60] sm:$0xff]  ;;  %v21_v39 = vld [vmem:[%s541_s0 + $0x30] sm:$0xff] }
   0x8   :  { %v28_v33 = vld [vmem:[%s541_s0 + $0x68] sm:$0xff]  ;;  %v35_v34 = vld [vmem:[%s541_s0 + $0xa0] sm:$0xff]  ;;  %v46_v36 = vpack.c.bf16 %v20_v31, %v19_v30  ;;  %v22_v40 = vld [vmem:[%s541_s0 + $0x38] sm:$0xff] }
   0x9   :  { %258 = vmatmul.msk.bf16.vlgmr.msra.gmra.mxu0 %vm67_vm2, %v44_v13  ;;  %262 = vmatmul.msk.bf16.vlgmr.msra.gmra.mxu1 %vm67_vm2, %v48_v14  ;;  %v36_v35 = vld [vmem:[%s541_s0 + $0xa8] sm:$0xff]  ;;  %v50_v37 = vpack.c.bf16 %v28_v33, %v27_v32  ;;  %v29_v41 = vld [vmem:[%s541_s0 + $0x70] sm:$0xff]  ;;  %v30_v42 = vld [vmem:[%s541_s0 + $0x78] sm:$0xff]  ;;  %v47_v45 = vpack.c.bf16 %v22_v40, %v21_v39 }
   0xa   :  { %266 = vmatmul.msk.bf16.vlgmr.msra.gmra.mxu2 %vm67_vm2, %v52_v16  ;;  %270 = vmatmul.msk.bf16.vlgmr.msra.gmra.mxu3 %vm67_vm2, %v56_v18  ;;  %v54_v38 = vpack.c.bf16 %v36_v35, %v35_v34  ;;  %v37_v43 = vld [vmem:[%s541_s0 + $0xb0] sm:$0xff]  ;;  %v38_v44 = vld [vmem:[%s541_s0 + $0xb8] sm:$0xff]  ;;  %v51_v46 = vpack.c.bf16 %v30_v42, %v29_v41  ;;  %v403_v48 = vld [vmem:[%s542_s2] ss:$0 sm:$0xff] }
   0xb   :  { %v55_v47 = vpack.c.bf16 %v38_v44, %v37_v43 }
  0x19   :  { %259 = vmatmul.msk.bf16.gmra.mxu0 %vm67_vm2, %v45_v26  ;;  %263 = vmatmul.msk.bf16.gmra.mxu1 %vm67_vm2, %v49_v27 }
  0x1a   :  { %267 = vmatmul.msk.bf16.gmra.mxu2 %vm67_vm2, %v53_v28  ;;  %271 = vmatmul.msk.bf16.gmra.mxu3 %vm67_vm2, %v57_v29 }
  0x29   :  { %260 = vmatmul.msk.bf16.gmra.mxu0 %vm67_vm2, %v46_v36  ;;  %264 = vmatmul.msk.bf16.gmra.mxu1 %vm67_vm2, %v50_v37 }
  0x2a   :  { %268 = vmatmul.msk.bf16.gmra.mxu2 %vm67_vm2, %v54_v38 }
  0x39   :  { %261 = vmatmul.msk.bf16.gmra.mxu0 %vm67_vm2, %v47_v45  ;;  %265 = vmatmul.msk.bf16.gmra.mxu1 %vm67_vm2, %v51_v46 }
  0x3a   :  { %269 = vmatmul.msk.bf16.gmra.mxu2 %vm67_vm2, %v55_v47 }
  0x86   :  { %v126_v49 = vpop.f32.mrf.mxu0  ;;  %v146_v50 = vpop.f32.mrf.mxu1 }
  0x87   :  { %v127_v51 = vadd.f32 %v403_v48, %v126_v49  ;;  %v147_v52 = vadd.f32 %v403_v48, %v146_v50 }
  0x89   :  { %v195_v53 = vmax.f32 %v127_v51, 0.0  ;;  %v203_v54 = vmax.f32 %v147_v52, 0.0 }
  0x8b   :  { %223 = vst.msk [vmem:[%s543_s3] sm:$0xff] %vm222_vm3, %v195_v53 }
  0x8c   :  { %231 = vst.msk [vmem:[%s543_s3 + $0x40] sm:$0xff] %vm222_vm3, %v203_v54 }
  0x8d   :  { %v166_v55 = vpop.f32.mrf.mxu2  ;;  %v186_v56 = vpop.f32.mrf.mxu3 }
  0x8e   :  { %v167_v57 = vadd.f32 %v403_v48, %v166_v55  ;;  %v128_v58 = vpop.f32.mrf.mxu0  ;;  %v148_v59 = vpop.f32.mrf.mxu1  ;;  %v187_v60 = vadd.f32 %v403_v48, %v186_v56 }
  0x8f   :  { %v129_v61 = vadd.f32 %v403_v48, %v128_v58  ;;  %v149_v62 = vadd.f32 %v403_v48, %v148_v59 }
  0x90   :  { %v211_v63 = vmax.f32 %v167_v57, 0.0  ;;  %v219_v2 = vmax.f32 %v187_v60, 0.0 }
  0x91   :  { %v196_v0 = vmax.f32 %v129_v61, 0.0  ;;  %v204_v1 = vmax.f32 %v149_v62, 0.0 }
  0x92   :  { %239 = vst.msk [vmem:[%s543_s3 + $0x80] sm:$0xff] %vm222_vm3, %v211_v63 }
  0x93   :  { %224 = vst.msk [vmem:[%s543_s3 + $0x8] sm:$0xff] %vm222_vm3, %v196_v0 }
  0x94   :  { %232 = vst.msk [vmem:[%s543_s3 + $0x48] sm:$0xff] %vm222_vm3, %v204_v1 }
  0x95   :  { %v168_v3 = vpop.f32.mrf.mxu2  ;;  %247 = vst.msk [vmem:[%s543_s3 + $0xc0] sm:$0xff] %vm222_vm3, %v219_v2  ;;  %v188_v4 = vpop.f32.mrf.mxu3 }
  0x96   :  { %v169_v5 = vadd.f32 %v403_v48, %v168_v3  ;;  %v131_v6 = vpop.f32.mrf.mxu0  ;;  %v151_v7 = vpop.f32.mrf.mxu1  ;;  %v189_v8 = vadd.f32 %v403_v48, %v188_v4 }
  0x97   :  { %v132_v9 = vadd.f32 %v403_v48, %v131_v6  ;;  %v152_v10 = vadd.f32 %v403_v48, %v151_v7 }
  0x98   :  { %v212_v11 = vmax.f32 %v169_v5, 0.0  ;;  %v220_v14 = vmax.f32 %v189_v8, 0.0 }
  0x99   :  { %v197_v12 = vmax.f32 %v132_v9, 0.0  ;;  %v205_v13 = vmax.f32 %v152_v10, 0.0 }
  0x9a   :  { %240 = vst.msk [vmem:[%s543_s3 + $0x88] sm:$0xff] %vm222_vm3, %v212_v11 }
  0x9b   :  { %225 = vst.msk [vmem:[%s543_s3 + $0x10] sm:$0xff] %vm222_vm3, %v197_v12 }
  0x9c   :  { %233 = vst.msk [vmem:[%s543_s3 + $0x50] sm:$0xff] %vm222_vm3, %v205_v13 }
  0x9d   :  { %v171_v15 = vpop.f32.mrf.mxu2  ;;  %248 = vst.msk [vmem:[%s543_s3 + $0xc8] sm:$0xff] %vm222_vm3, %v220_v14  ;;  %v191_v16 = vpop.f32.mrf.mxu3 }
  0x9e   :  { %v172_v17 = vadd.f32 %v403_v48, %v171_v15  ;;  %v133_v18 = vpop.f32.mrf.mxu0  ;;  %v153_v19 = vpop.f32.mrf.mxu1  ;;  %v192_v20 = vadd.f32 %v403_v48, %v191_v16 }
  0x9f   :  { %v134_v21 = vadd.f32 %v403_v48, %v133_v18  ;;  %v154_v22 = vadd.f32 %v403_v48, %v153_v19 }
  0xa0   :  { %v213_v23 = vmax.f32 %v172_v17, 0.0  ;;  %v221_v26 = vmax.f32 %v192_v20, 0.0 }
  0xa1   :  { %v198_v24 = vmax.f32 %v134_v21, 0.0  ;;  %v206_v25 = vmax.f32 %v154_v22, 0.0 }
  0xa2   :  { %241 = vst.msk [vmem:[%s543_s3 + $0x90] sm:$0xff] %vm222_vm3, %v213_v23 }
  0xa3   :  { %226 = vst.msk [vmem:[%s543_s3 + $0x18] sm:$0xff] %vm222_vm3, %v198_v24 }
  0xa4   :  { %234 = vst.msk [vmem:[%s543_s3 + $0x58] sm:$0xff] %vm222_vm3, %v206_v25 }
  0xa5   :  { %v173_v27 = vpop.f32.mrf.mxu2  ;;  %249 = vst.msk [vmem:[%s543_s3 + $0xd0] sm:$0xff] %vm222_vm3, %v221_v26  ;;  %v193_v28 = vpop.f32.mrf.mxu3 }
  0xa6   :  { %v174_v29 = vadd.f32 %v403_v48, %v173_v27  ;;  %v136_v30 = vpop.f32.mrf.mxu0  ;;  %v156_v31 = vpop.f32.mrf.mxu1 }
  0xa7   :  { %v137_v32 = vadd.f32 %v403_v48, %v136_v30  ;;  %v157_v33 = vadd.f32 %v403_v48, %v156_v31 }
  0xa8   :  { %v214_v34 = vmax.f32 %v174_v29, 0.0 }
  0xa9   :  { %v199_v35 = vmax.f32 %v137_v32, 0.0  ;;  %v207_v36 = vmax.f32 %v157_v33, 0.0 }
  0xaa   :  { %242 = vst.msk [vmem:[%s543_s3 + $0x98] sm:$0xff] %vm222_vm3, %v214_v34 }
  0xab   :  { %227 = vst.msk [vmem:[%s543_s3 + $0x20] sm:$0xff] %vm222_vm3, %v199_v35 }
  0xac   :  { %235 = vst.msk [vmem:[%s543_s3 + $0x60] sm:$0xff] %vm222_vm3, %v207_v36 }
  0xad   :  { %v176_v37 = vpop.f32.mrf.mxu2 }
  0xae   :  { %v177_v38 = vadd.f32 %v403_v48, %v176_v37  ;;  %v138_v39 = vpop.f32.mrf.mxu0  ;;  %v158_v40 = vpop.f32.mrf.mxu1 }
  0xaf   :  { %v139_v41 = vadd.f32 %v403_v48, %v138_v39  ;;  %v159_v42 = vadd.f32 %v403_v48, %v158_v40 }
  0xb0   :  { %v215_v43 = vmax.f32 %v177_v38, 0.0 }
  0xb1   :  { %v200_v44 = vmax.f32 %v139_v41, 0.0  ;;  %v208_v45 = vmax.f32 %v159_v42, 0.0 }
  0xb2   :  { %243 = vst.msk [vmem:[%s543_s3 + $0xa0] sm:$0xff] %vm222_vm3, %v215_v43 }
  0xb3   :  { %228 = vst.msk [vmem:[%s543_s3 + $0x28] sm:$0xff] %vm222_vm3, %v200_v44 }
  0xb4   :  { %236 = vst.msk [vmem:[%s543_s3 + $0x68] sm:$0xff] %vm222_vm3, %v208_v45 }
  0xb5   :  { %v178_v46 = vpop.f32.mrf.mxu2 }
  0xb6   :  { %v179_v47 = vadd.f32 %v403_v48, %v178_v46  ;;  %v141_v49 = vpop.f32.mrf.mxu0  ;;  %v161_v50 = vpop.f32.mrf.mxu1 }
  0xb7   :  { %v142_v51 = vadd.f32 %v403_v48, %v141_v49  ;;  %v162_v52 = vadd.f32 %v403_v48, %v161_v50 }
  0xb8   :  { %v216_v53 = vmax.f32 %v179_v47, 0.0 }
  0xb9   :  { %v201_v54 = vmax.f32 %v142_v51, 0.0  ;;  %v209_v55 = vmax.f32 %v162_v52, 0.0 }
  0xba   :  { %244 = vst.msk [vmem:[%s543_s3 + $0xa8] sm:$0xff] %vm222_vm3, %v216_v53 }
  0xbb   :  { %229 = vst.msk [vmem:[%s543_s3 + $0x30] sm:$0xff] %vm222_vm3, %v201_v54 }
  0xbc   :  { %237 = vst.msk [vmem:[%s543_s3 + $0x70] sm:$0xff] %vm222_vm3, %v209_v55 }
  0xbd   :  { %v181_v56 = vpop.f32.mrf.mxu2 }
  0xbe   :  { %v182_v57 = vadd.f32 %v403_v48, %v181_v56  ;;  %v143_v58 = vpop.f32.mrf.mxu0  ;;  %v163_v59 = vpop.f32.mrf.mxu1 }
  0xbf   :  { %v144_v60 = vadd.f32 %v403_v48, %v143_v58  ;;  %v164_v61 = vadd.f32 %v403_v48, %v163_v59 }
  0xc0   :  { %v217_v62 = vmax.f32 %v182_v57, 0.0 }
  0xc1   :  { %v202_v63 = vmax.f32 %v144_v60, 0.0  ;;  %v210_v0 = vmax.f32 %v164_v61, 0.0 }
  0xc2   :  { %245 = vst.msk [vmem:[%s543_s3 + $0xb0] sm:$0xff] %vm222_vm3, %v217_v62 }
  0xc3   :  { %230 = vst.msk [vmem:[%s543_s3 + $0x38] sm:$0xff] %vm222_vm3, %v202_v63 }
  0xc4   :  { %238 = vst.msk [vmem:[%s543_s3 + $0x78] sm:$0xff] %vm222_vm3, %v210_v0 }
  0xc5   :  { %v183_v1 = vpop.f32.mrf.mxu2 }
  0xc6   :  { %v184_v2 = vadd.f32 %v403_v48, %v183_v1 }
  0xc8   :  { %v218_v3 = vmax.f32 %v184_v2, 0.0 }
  0xca   :  { %246 = vst.msk [vmem:[%s543_s3 + $0xb8] sm:$0xff] %vm222_vm3, %v218_v3 }

// kernel: fwd.30
= control target key start
LH: loop header
LB: loop body
LE: loop exit
PB: predicated region body
PF: predicated region fallthrough
CT: control target
= control target key end

     0   :  { %vm190_vm0 = vcmask 261120   ;;  %s548_s1 = inlined_call_operand.vmem [shape: bf16[288,32], index: 1, kind: input, shape index: {}]   ;;  %s549_s0 = inlined_call_operand.vmem [shape: f32[48,288], index: 0, kind: input, shape index: {}]   ;;  %s550_s2 = inlined_call_operand.vmem [shape: f32[1,32], index: 2, kind: input, shape index: {}]   ;;  %s551_s3 = inlined_call_operand.vmem [shape: f32[48,32], index: 3, kind: output, shape index: {}]  }
   0x1   :  { %v370_v0 = vld [vmem:[%s548_s1 + $0x38] sm:$0xff]  ;;  %v369_v2 = vld [vmem:[%s548_s1 + $0x30] sm:$0xff]  ;;  %v380_v3 = vld [vmem:[%s548_s1 + $0x88] sm:$0xff] }
   0x2   :  { %v378_v1 = vld [vmem:[%s548_s1 + $0x78] sm:$0xff]  ;;  %200 = vmatpush.bf16.msra.mxu0 %v370_v0  ;;  %381 = vmatpush.bf16.msra.mxu3 %v370_v0  ;;  %v377_v4 = vld [vmem:[%s548_s1 + $0x70] sm:$0xff]  ;;  %v379_v5 = vld [vmem:[%s548_s1 + $0x80] sm:$0xff] }
   0x3   :  { %224 = vmatpush.bf16.msra.mxu1 %v378_v1  ;;  %254 = vmatpush.bf16.msra.mxu2 %v380_v3  ;;  %v17_v6 = vld [vmem:[%s549_s0 + $0x10] sm:$0xff]  ;;  %v20_v7 = vld [vmem:[%s549_s0 + $0x28] sm:$0xff]  ;;  %v367_v11 = vld [vmem:[%s548_s1 + $0x20] sm:$0xff] }
   0x4   :  { %v368_v8 = vld [vmem:[%s548_s1 + $0x28] sm:$0xff]  ;;  %v71_v10 = vpack.c.bf16 %v20_v7, %v17_v6  ;;  %v375_v12 = vld [vmem:[%s548_s1 + $0x60] sm:$0xff]  ;;  %v366_v13 = vld [vmem:[%s548_s1 + $0x18] sm:$0xff] }
   0x5   :  { %v376_v9 = vld [vmem:[%s548_s1 + $0x68] sm:$0xff]  ;;  %v374_v14 = vld [vmem:[%s548_s1 + $0x58] sm:$0xff]  ;;  %v365_v15 = vld [vmem:[%s548_s1 + $0x10] sm:$0xff] }
   0x6   :  { %201 = vmatpush.bf16.msra.mxu0 %v369_v2  ;;  %382 = vmatpush.bf16.msra.mxu3 %v369_v2  ;;  %v373_v16 = vld [vmem:[%s548_s1 + $0x50] sm:$0xff]  ;;  %v23_v17 = vld [vmem:[%s549_s0 + $0x40] sm:$0xff]  ;;  %v26_v18 = vld [vmem:[%s549_s0 + $0x58] sm:$0xff] }
   0x7   :  { %225 = vmatpush.bf16.msra.mxu1 %v377_v4  ;;  %255 = vmatpush.bf16.msra.mxu2 %v379_v5  ;;  %v364_v19 = vld [vmem:[%s548_s1 + $0x8] sm:$0xff]  ;;  %v74_v21 = vpack.c.bf16 %v26_v18, %v23_v17  ;;  %v363_v22 = vld [vmem:[%s548_s1] sm:$0xff]  ;;  %v18_v24 = vld [vmem:[%s549_s0 + $0x18] sm:$0xff] }
   0x8   :  { %v372_v20 = vld [vmem:[%s548_s1 + $0x48] sm:$0xff]  ;;  %v15_v23 = vld [vmem:[%s549_s0] sm:$0xff]  ;;  %v21_v25 = vld [vmem:[%s549_s0 + $0x30] sm:$0xff] }
   0x9   :  { %v24_v26 = vld [vmem:[%s549_s0 + $0x48] sm:$0xff]  ;;  %v371_v27 = vld [vmem:[%s548_s1 + $0x40] sm:$0xff]  ;;  %v69_v30 = vpack.c.bf16 %v18_v24, %v15_v23  ;;  %v29_v33 = vld [vmem:[%s549_s0 + $0x70] sm:$0xff] }
   0xa   :  { %202 = vmatpush.bf16.msra.mxu0 %v368_v8  ;;  %383 = vmatpush.bf16.msra.mxu3 %v368_v8  ;;  %v16_v28 = vld [vmem:[%s549_s0 + $0x8] sm:$0xff]  ;;  %v19_v29 = vld [vmem:[%s549_s0 + $0x20] sm:$0xff]  ;;  %v72_v31 = vpack.c.bf16 %v24_v26, %v21_v25  ;;  %v30_v37 = vld [vmem:[%s549_s0 + $0x78] sm:$0xff] }
   0xb   :  { %226 = vmatpush.bf16.msra.mxu1 %v376_v9  ;;  %360 = vmatmul.msk.bf16.vlgmr.msra.gmra.mxu2 %vm190_vm0, %v71_v10  ;;  %v70_v32 = vpack.c.bf16 %v19_v29, %v16_v28  ;;  %v32_v34 = vld [vmem:[%s549_s0 + $0x88] sm:$0xff]  ;;  %v27_v36 = vld [vmem:[%s549_s0 + $0x60] sm:$0xff]  ;;  %v22_v38 = vld [vmem:[%s549_s0 + $0x38] sm:$0xff] }
   0xc   :  { %v77_v35 = vpack.c.bf16 %v32_v34, %v29_v33  ;;  %v25_v39 = vld [vmem:[%s549_s0 + $0x50] sm:$0xff]  ;;  %v75_v40 = vpack.c.bf16 %v30_v37, %v27_v36  ;;  %v28_v42 = vld [vmem:[%s549_s0 + $0x68] sm:$0xff]  ;;  %v31_v43 = vld [vmem:[%s549_s0 + $0x80] sm:$0xff] }
   0xd   :  { %v73_v41 = vpack.c.bf16 %v25_v39, %v22_v38  ;;  %v76_v44 = vpack.c.bf16 %v31_v43, %v28_v42  ;;  %v389_v46 = vld [vmem:[%s550_s2] ss:$0 sm:$0xff] }
   0xe   :  { %203 = vmatpush.bf16.msra.mxu0 %v367_v11  ;;  %384 = vmatpush.bf16.msra.mxu3 %v367_v11 }
   0xf   :  { %227 = vmatpush.bf16.msra.mxu1 %v375_v12 }
  0x12   :  { %204 = vmatpush.bf16.msra.mxu0 %v366_v13  ;;  %385 = vmatpush.bf16.msra.mxu3 %v366_v13 }
  0x13   :  { %228 = vmatpush.bf16.msra.mxu1 %v374_v14 }
  0x16   :  { %205 = vmatpush.bf16.msra.mxu0 %v365_v15  ;;  %386 = vmatpush.bf16.msra.mxu3 %v365_v15 }
  0x17   :  { %229 = vmatpush.bf16.msra.mxu1 %v373_v16 }
  0x1a   :  { %206 = vmatpush.bf16.msra.mxu0 %v364_v19  ;;  %387 = vmatpush.bf16.msra.mxu3 %v364_v19 }
  0x1b   :  { %230 = vmatpush.bf16.msra.mxu1 %v372_v20  ;;  %361 = vmatmul.msk.bf16.gmra.mxu2 %vm190_vm0, %v74_v21 }
  0x1e   :  { %207 = vmatpush.bf16.msra.mxu0 %v363_v22  ;;  %388 = vmatpush.bf16.msra.mxu3 %v363_v22 }
  0x1f   :  { %231 = vmatpush.bf16.msra.mxu1 %v371_v27 }
  0x21   :  { %208 = vmatmul.bf16.vlgmr.msra.gmra.mxu0 %v69_v30  ;;  %213 = vmatmul.bf16.vlgmr.msra.gmra.mxu3 %v72_v31 }
  0x22   :  { %232 = vmatmul.bf16.vlgmr.msra.gmra.mxu1 %v70_v32 }
  0x2b   :  { %362 = vmatmul.msk.bf16.gmra.mxu2 %vm190_vm0, %v77_v35 }
  0x31   :  { %218 = vmatmul.bf16.gmra.mxu3 %v75_v40 }
  0x32   :  { %237 = vmatmul.bf16.gmra.mxu1 %v73_v41 }
  0x42   :  { %242 = vmatmul.bf16.gmra.mxu1 %v76_v44 }
  0x8e   :  { %v257_v45 = vpop.f32.mrf.mxu2 }
  0x96   :  { %v259_v51 = vpop.f32.mrf.mxu2 }
  0x9e   :  { %v209_v47 = vpop.f32.mrf.mxu0  ;;  %v262_v60 = vpop.f32.mrf.mxu2 }
  0x9f   :  { %v210_v48 = vadd.f32 %v389_v46, %v209_v47  ;;  %v233_v49 = vpop.f32.mrf.mxu1 }
  0xa1   :  { %v234_v50 = vadd.f32 %v233_v49, %v210_v48 }
  0xa3   :  { %v258_v52 = vadd.f32 %v257_v45, %v234_v50 }
  0xa4   :  { %v214_v54 = vpop.f32.mrf.mxu3 }
  0xa5   :  { %v272_v53 = vmax.f32 %v258_v52, 0.0  ;;  %v215_v61 = vadd.f32 %v389_v46, %v214_v54 }
  0xa6   :  { %v211_v55 = vpop.f32.mrf.mxu0  ;;  %v264_v4 = vpop.f32.mrf.mxu2 }
  0xa7   :  { %278 = vst.msk [vmem:[%s551_s3] sm:$0xff] %vm190_vm0, %v272_v53  ;;  %v212_v56 = vadd.f32 %v389_v46, %v211_v55  ;;  %v235_v57 = vpop.f32.mrf.mxu1 }
  0xa9   :  { %v236_v58 = vadd.f32 %v235_v57, %v212_v56 }
  0xab   :  { %v260_v59 = vadd.f32 %v259_v51, %v236_v58 }
  0xac   :  { %v216_v63 = vpop.f32.mrf.mxu3 }
  0xad   :  { %v273_v62 = vmax.f32 %v260_v59, 0.0  ;;  %v217_v5 = vadd.f32 %v389_v46, %v216_v63 }
  0xae   :  { %v267_v12 = vpop.f32.mrf.mxu2 }
  0xaf   :  { %279 = vst.msk [vmem:[%s551_s3 + $0x8] sm:$0xff] %vm190_vm0, %v273_v62  ;;  %v238_v0 = vpop.f32.mrf.mxu1 }
  0xb0   :  { %v239_v1 = vadd.f32 %v238_v0, %v215_v61 }
  0xb2   :  { %v263_v2 = vadd.f32 %v262_v60, %v239_v1 }
  0xb4   :  { %v274_v3 = vmax.f32 %v263_v2, 0.0  ;;  %v219_v8 = vpop.f32.mrf.mxu3 }
  0xb5   :  { %v220_v10 = vadd.f32 %v389_v46, %v219_v8 }
  0xb6   :  { %280 = vst.msk [vmem:[%s551_s3 + $0x10] sm:$0xff] %vm190_vm0, %v274_v3  ;;  %v269_v21 = vpop.f32.mrf.mxu2 }
  0xb7   :  { %v240_v6 = vpop.f32.mrf.mxu1 }
  0xb8   :  { %v241_v7 = vadd.f32 %v240_v6, %v217_v5 }
  0xba   :  { %v265_v9 = vadd.f32 %v264_v4, %v241_v7 }
  0xbc   :  { %v275_v11 = vmax.f32 %v265_v9, 0.0  ;;  %v221_v16 = vpop.f32.mrf.mxu3 }
  0xbd   :  { %v222_v18 = vadd.f32 %v389_v46, %v221_v16 }
  0xbe   :  { %281 = vst.msk [vmem:[%s551_s3 + $0x18] sm:$0xff] %vm190_vm0, %v275_v11 }
  0xbf   :  { %v243_v13 = vpop.f32.mrf.mxu1 }
  0xc0   :  { %v244_v14 = vadd.f32 %v243_v13, %v220_v10 }
  0xc2   :  { %v268_v15 = vadd.f32 %v267_v12, %v244_v14 }
  0xc4   :  { %v276_v17 = vmax.f32 %v268_v15, 0.0 }
  0xc6   :  { %282 = vst.msk [vmem:[%s551_s3 + $0x20] sm:$0xff] %vm190_vm0, %v276_v17 }
  0xc7   :  { %v245_v19 = vpop.f32.mrf.mxu1 }
  0xc8   :  { %v246_v20 = vadd.f32 %v245_v19, %v222_v18 }
  0xca   :  { %v270_v22 = vadd.f32 %v269_v21, %v246_v20 }
  0xcc   :  { %v277_v23 = vmax.f32 %v270_v22, 0.0 }
  0xce   :  { %283 = vst.msk [vmem:[%s551_s3 + $0x28] sm:$0xff] %vm190_vm0, %v277_v23 }

// kernel: fwd.31
= control target key start
LH: loop header
LB: loop body
LE: loop exit
PB: predicated region body
PF: predicated region fallthrough
CT: control target
= control target key end

     0   :  { %vm70_vm0 = vcmask 785408   ;;  %vm88_vm1 = vcmask 261120   ;;  %s180_s1 = inlined_call_operand.vmem [shape: bf16[96,32], index: 1, kind: input, shape index: {}]   ;;  %s181_s2 = inlined_call_operand.vmem [shape: f32[1,32], index: 2, kind: input, shape index: {}]   ;;  %s182_s0 = inlined_call_operand.vmem [shape: f32[16,96], index: 0, kind: input, shape index: {}]   ;;  %s183_s3 = inlined_call_operand.vmem [shape: f32[16,32], index: 3, kind: output, shape index: {}]  }
   0x1   :  { %v125_v0 = vld [vmem:[%s180_s1 + $0x28] sm:$0xff]  ;;  %v124_v1 = vld [vmem:[%s180_s1 + $0x20] sm:$0xff]  ;;  %v123_v2 = vld [vmem:[%s180_s1 + $0x18] sm:$0xff] }
   0x2   :  { %76 = vmatpush.bf16.msra.mxu0 %v125_v0  ;;  %v122_v3 = vld [vmem:[%s180_s1 + $0x10] sm:$0xff]  ;;  %v121_v4 = vld [vmem:[%s180_s1 + $0x8] sm:$0xff]  ;;  %v120_v5 = vld [vmem:[%s180_s1] sm:$0xff] }
   0x3   :  { %v15_v6 = vld [vmem:[%s182_s0] sm:$0xff]  ;;  %v16_v7 = vld [vmem:[%s182_s0 + $0x8] sm:$0xff] }
   0x4   :  { %v29_v8 = vpack.c.bf16 %v16_v7, %v15_v6  ;;  %v126_v9 = vld [vmem:[%s181_s2] ss:$0 sm:$0xff] }
   0x6   :  { %77 = vmatpush.bf16.msra.mxu0 %v124_v1 }
   0xa   :  { %78 = vmatpush.bf16.msra.mxu0 %v123_v2 }
   0xe   :  { %79 = vmatpush.bf16.msra.mxu0 %v122_v3 }
  0x12   :  { %80 = vmatpush.bf16.msra.mxu0 %v121_v4 }
  0x16   :  { %81 = vmatpush.bf16.msra.mxu0 %v120_v5 }
  0x19   :  { %119 = vmatmul.msk.bf16.vlgmr.msra.gmra.mxu0 %vm70_vm0, %v29_v8 }
  0x96   :  { %v83_v10 = vpop.f32.mrf.mxu0 }
  0x97   :  { %v84_v11 = vadd.f32 %v126_v9, %v83_v10 }
  0x99   :  { %89 = vst.msk [vmem:[%s183_s3] sm:$0xff] %vm88_vm1, %v84_v11 }
  0x9e   :  { %v85_v12 = vpop.f32.mrf.mxu0 }
  0x9f   :  { %v86_v13 = vadd.f32 %v126_v9, %v85_v12 }
  0xa1   :  { %90 = vst.msk [vmem:[%s183_s3 + $0x8] sm:$0xff] %vm88_vm1, %v86_v13 }

// kernel: fwd.32
= control target key start
LH: loop header
LB: loop body
LE: loop exit
PB: predicated region body
PF: predicated region fallthrough
CT: control target
= control target key end

     0   :  { %vm25_vm0 = vcmask 261120   ;;  %v153_v4 = vmov 32.0   ;;  %vm125_vm8 = vcmask 785408   ;;  %s216_s0 = inlined_call_operand.vmem [shape: f32[16,32], index: 0, kind: input, shape index: {}]   ;;  %s217_s1 = inlined_call_operand.vmem [shape: f32[1,32], index: 1, kind: input, shape index: {}]   ;;  %s218_s2 = inlined_call_operand.vmem [shape: f32[1,32], index: 2, kind: input, shape index: {}]   ;;  %s219_s4 = inlined_call_operand.vmem [shape: f32[1,96], index: 4, kind: input, shape index: {}]   ;;  %s220_s3 = inlined_call_operand.vmem [shape: bf16[32,96], index: 3, kind: input, shape index: {}]   ;;  %s221_s5 = inlined_call_operand.vmem [shape: f32[16,96], index: 5, kind: output, shape index: {}]  }
   0x1   :  { %v21_v0 = vld [vmem:[%s216_s0] sm:$0xff]  ;;  %v22_v2 = vld [vmem:[%s216_s0 + $0x8] sm:$0xff]  ;;  %147 = vrcp.f32 %v153_v4 }
   0x2   :  { %v26_v1 = vsel %vm25_vm0, %v21_v0, 0.0  ;;  %v29_v3 = vsel %vm25_vm0, %v22_v2, 0.0  ;;  %v142_v21 = vld [vmem:[%s220_s3 + $0x8] sm:$0xff]  ;;  %v141_v23 = vld [vmem:[%s220_s3] sm:$0xff] }
   0x3   :  { %27 = vadd.xlane.f32.xlu0 %v26_v1  ;;  %117 = vmatpush.bf16.msra.mxu0 %v142_v21  ;;  %v144_v42 = vld [vmem:[%s217_s1] ss:$0 sm:$0xff] }
   0x4   :  { %v145_v47 = vld [vmem:[%s218_s2] ss:$0 sm:$0xff] }
   0x5   :  { %v146_v52 = vld [vmem:[%s219_s4] ss:$0 sm:$0xff] }
   0x7   :  { %v148_v5 = vpop.eup %147  ;;  %118 = vmatpush.bf16.msra.mxu0 %v141_v23 }
   0x8   :  { %v33_v6 = vmul.f32 32.0, %v148_v5  ;;  %vm37_vm1 = vweird.f32 %v148_v5 }
   0xa   :  { %v34_v7 = vsub.f32 1.0, %v33_v6 }
   0xb   :  { %30 = vadd.xlane.f32.xlu0 %v29_v3 }
   0xc   :  { %v35_v8 = vmul.f32 %v148_v5, %v34_v7 }
   0xe   :  { %v36_v9 = vadd.f32 %v148_v5, %v35_v8 }
  0x10   :  { %v38_v10 = vsel %vm37_vm1, %v148_v5, %v36_v9 }
  0x76   :  { %v28_v11 = vpop.xlane.xlu0 %27 }
  0x77   :  { %v39_v12 = vmul.f32 %v38_v10, %v28_v11 }
  0x79   :  { %v41_v13 = vsub.f32 %v21_v0, %v39_v12 }
  0x7b   :  { %v43_v14 = vmul.f32 %v41_v13, %v41_v13 }
  0x7d   :  { %v45_v15 = vsel %vm25_vm0, %v43_v14, 0.0 }
  0x7e   :  { %46 = vadd.xlane.f32.xlu1 %v45_v15  ;;  %v31_v16 = vpop.xlane.xlu0 %30 }
  0x7f   :  { %v40_v17 = vmul.f32 %v38_v10, %v31_v16 }
  0x81   :  { %v42_v18 = vsub.f32 %v22_v2, %v40_v17 }
  0x83   :  { %v44_v19 = vmul.f32 %v42_v18, %v42_v18 }
  0x85   :  { %v48_v20 = vsel %vm25_vm0, %v44_v19, 0.0 }
  0x86   :  { %49 = vadd.xlane.f32.xlu1 %v48_v20 }
  0xf1   :  { %v47_v22 = vpop.xlane.xlu1 %46 }
  0xf2   :  { %v51_v24 = vmul.f32 %v47_v22, %v38_v10 }
  0xf4   :  { %v53_v25 = vadd.f32 1e-12, %v51_v24 }
  0xf6   :  { %149 = vrsqrt.f32 %v53_v25  ;;  %vm61_vm3 = vweird.f32 %v53_v25 }
  0xf9   :  { %v50_v26 = vpop.xlane.xlu1 %49 }
  0xfa   :  { %v52_v27 = vmul.f32 %v50_v26, %v38_v10 }
  0xfc   :  { %v150_v28 = vpop.eup %149  ;;  %v54_v29 = vadd.f32 1e-12, %v52_v27 }
  0xfd   :  { %v56_v30 = vmul.f32 %v150_v28, %v53_v25  ;;  %vm62_vm2 = vweird.f32 %v150_v28 }
  0xfe   :  { %151 = vrsqrt.f32 %v54_v29  ;;  %vm63_vm4 = vmor %vm61_vm3, %vm62_vm2  ;;  %vm71_vm6 = vweird.f32 %v54_v29 }
  0xff   :  { %v57_v31 = vmul.f32 %v150_v28, %v56_v30 }
 0x101   :  { %v58_v32 = vmul.f32 0.5, %v57_v31 }
 0x103   :  { %v59_v33 = vsub.f32 1.5, %v58_v32 }
 0x104   :  { %v152_v34 = vpop.eup %151 }
 0x105   :  { %v60_v35 = vmul.f32 %v150_v28, %v59_v33  ;;  %v66_v36 = vmul.f32 %v152_v34, %v54_v29  ;;  %vm72_vm5 = vweird.f32 %v152_v34 }
 0x106   :  { %vm73_vm7 = vmor %vm71_vm6, %vm72_vm5 }
 0x107   :  { %v67_v37 = vmul.f32 %v152_v34, %v66_v36  ;;  %v64_v38 = vsel %vm63_vm4, %v150_v28, %v60_v35 }
 0x108   :  { %v75_v41 = vmul.f32 %v64_v38, %v41_v13 }
 0x109   :  { %v68_v39 = vmul.f32 0.5, %v67_v37 }
 0x10a   :  { %v80_v46 = vmul.f32 %v144_v42, %v75_v41 }
 0x10b   :  { %v69_v40 = vsub.f32 1.5, %v68_v39 }
 0x10c   :  { %v85_v49 = vadd.f32 %v145_v47, %v80_v46 }
 0x10d   :  { %v70_v43 = vmul.f32 %v152_v34, %v69_v40 }
 0x10f   :  { %v74_v44 = vsel %vm73_vm7, %v152_v34, %v70_v43 }
 0x110   :  { %v76_v45 = vmul.f32 %v74_v44, %v42_v18 }
 0x112   :  { %v81_v48 = vmul.f32 %v144_v42, %v76_v45 }
 0x114   :  { %v86_v50 = vadd.f32 %v145_v47, %v81_v48 }
 0x116   :  { %v91_v51 = vpack.c.bf16 %v86_v50, %v85_v49 }
 0x118   :  { %140 = vmatmul.msk.bf16.vlgmr.msra.gmra.mxu0 %vm25_vm0, %v91_v51 }
 0x195   :  { %v120_v53 = vpop.f32.mrf.mxu0 }
 0x196   :  { %v121_v54 = vadd.f32 %v146_v52, %v120_v53 }
 0x198   :  { %126 = vst.msk [vmem:[%s221_s5] sm:$0xff] %vm125_vm8, %v121_v54 }
 0x19d   :  { %v122_v55 = vpop.f32.mrf.mxu0 }
 0x19e   :  { %v123_v56 = vadd.f32 %v146_v52, %v122_v55 }
 0x1a0   :  { %127 = vst.msk [vmem:[%s221_s5 + $0x8] sm:$0xff] %vm125_vm8, %v123_v56 }

// kernel: fwd.33
= control target key start
LH: loop header
LB: loop body
LE: loop exit
PB: predicated region body
PF: predicated region fallthrough
CT: control target
= control target key end

     0   :  { %s588_s9 = smov 0   ;;  %s661_s0 = inlined_call_operand.vmem [shape: f32[2,7,96], index: 0, kind: input, shape index: {}]   ;;  %s662_s1 = inlined_call_operand.vmem [shape: f32[2,1,7], index: 1, kind: input, shape index: {}]   ;;  %s663_s2 = inlined_call_operand.vmem [shape: f32[2,7,32], index: 2, kind: output, shape index: {}]  }
   0x1 LB: > { %s492_s10 = sadd.s32 4294967295, %s556_s9   ;;  %p496_p0 = scmp.ge.s32.totalorder %s556_s9, 1  ;;  %s556_s9 = sphi %s588_s9, %s12_s9  }
   0x2   : > { %p119_p1 = scmp.lt.s32.totalorder %s556_s9, 3 }
   0x4   : > { %p120_p2 = pnand %p496_p0, %p119_p1 }
   0x5   : > { %p142_p3 = scmp.lt.s32.totalorder (!%p120_p2), %s492_s10, 1  ;;  %s558_s15 = smov (!%p120_p2), 96  }
   0x6   : > { %123 = sbr.rel (%p120_p2) target bundleno = 932 (0x3a4), region = 28  ;;  %s559_s16 = smov (!%p120_p2), 88  }
   0x7   : > { %s560_s17 = smov (!%p120_p2), 120   ;;  %s561_s18 = smov (!%p120_p2), 72  }
   0x8   : > { %s562_s19 = smov (!%p120_p2), 104   ;;  %s563_s20 = smov (!%p120_p2), 64  }
   0x9   : > { %s564_s21 = smov (!%p120_p2), 80   ;;  %s565_s22 = smov (!%p120_p2), 112  }
   0xa   : > { %s566_s26 = smov (!%p120_p2), 56   ;;  %s567_s27 = smov (!%p120_p2), 48  }
   0xb   : > { %s665_s10 = smov (!%p142_p3, %s492_s10), 1  ;;  %vm162_vm0 = vcmask 64512   ;;  %vm187_vm1 = vcmask 55296   ;;  %vm205_vm2 = vcmask 1042432   ;;  %vm206_vm3 = vcmask 1043456   ;;  %s569_s28 = smov 40  }
   0xc   : > { %s497_s11 = sshll.u32 %s665_s10, 3  ;;  %s625_s25 = scalar_lea.vmem %s662_s1, %s665_s10  ;;  %v568_v29 = vmov 65535   ;;  %vm201_vm4 = vcmask 56320   ;;  %vm424_vm5 = vcmask 130048   ;;  %vm426_vm6 = vcmask 195584  }
   0xd   : > { %s145_s14 = scalar_lea.vmem %s661_s0, %s497_s11  ;;  %v155_v10 = vld [vmem:[%s625_s25] sm:$0x1]  ;;  %v207_v30 = vsel %vm205_vm2, 4294967295, %v568_v29  ;;  %s570_s29 = smov 8   ;;  %vm428_vm7 = vcmask 260096  }
   0xe   : > { %v154_v0 = vld [vmem:[%s145_s14] sm:$0x7f]  ;;  %v499_v11 = vadd.f32 -1.0, %v155_v10  ;;  %v208_v32 = vsel %vm206_vm3, %v207_v30, 0  ;;  %s571_s30 = smov 24   ;;  %s572_s3 = smov 16  }
   0xf   : > { %v604_v1 = vpack.c.bf16 %v154_v0, %v154_v0  ;;  %v533_v39 = vld [vmem:[%s625_s25] ss:$0 sm:$0xff]  ;;  %s152_s6 = scalar_lea.vmem %s663_s2, %s497_s11 }
  0x10   : > { %v157_v12 = vmul.f32 1e+09, %v499_v11 }
  0x11   : > { %160 = vrot.lane.b32.xlu0 %v604_v1, %s558_s15  ;;  %233 = vrot.lane.b32.xlu1 %v604_v1, %s559_s16 }
  0x12   : > { %199 = vrot.lane.b32.xlu2 %v604_v1, %s563_s20  ;;  %v628_v13 = vperm.slane %v157_v12, 0 }
  0x19   : > { %231 = vrot.lane.b32.xlu1 %v604_v1, %s560_s17 }
  0x1a   : > { %293 = vrot.lane.b32.xlu2 %v604_v1, %s564_s21 }
  0x21   : > { %353 = vrot.lane.b32.xlu1 %v604_v1, %s561_s18 }
  0x22   : > { %291 = vrot.lane.b32.xlu2 %v604_v1, %s565_s22 }
  0x29   : > { %351 = vrot.lane.b32.xlu1 %v604_v1, %s562_s19 }
  0x31   : > { %264 = vrot.lane.b32.xlu1 %v604_v1, %s566_s26 }
  0x6c   : > { %v200_v27 = vpop.permute.xlu2 %199 }
  0x6d   : > { %v210_v33 = vand.u32 %v208_v32, %v200_v27 }
  0x6f   : > { %219 = vmatpush.bf16.msra.mxu1 %v210_v33 }
  0x74   : > { %v294_v34 = vpop.permute.xlu2 %293 }
  0x75   : > { %v299_v35 = vsel %vm162_vm0, %v294_v34, 0 }
  0x76   : > { %308 = vmatpush.bf16.xpose.msrb.mxu1 %v299_v35 }
  0x7c   : > { %v292_v44 = vpop.permute.xlu2 %291 }
  0x83   : > { %v161_v2 = vpop.permute.xlu0 %160  ;;  %v234_v3 = vpop.permute.xlu1 %233 }
  0x84   : > { %v167_v4 = vsel %vm162_vm0, %v161_v2, 0  ;;  %v239_v5 = vsel %vm162_vm0, %v234_v3, 0 }
  0x85   : > { %176 = vmatpush.bf16.xpose.msra.mxu0 %v167_v4  ;;  %248 = vmatpush.bf16.xpose.msra.mxu2 %v239_v5 }
  0x8b   : > { %v232_v6 = vpop.permute.xlu1 %231 }
  0x8c   : > { %500 = vmatmul.msk.bf16.vlgmr.msra.gmra.mxu0 %vm162_vm0, %v604_v1  ;;  %502 = vmatmul.msk.bf16.vlgmr.msra.gmra.mxu2 %vm162_vm0, %v232_v6 }
  0x93   : > { %v354_v7 = vpop.permute.xlu1 %353 }
  0x94   : > { %v359_v8 = vsel %vm162_vm0, %v354_v7, 0 }
  0x95   : > { %368 = vmatpush.bf16.xpose.msrb.mxu0 %v359_v8 }
  0x9b   : > { %v352_v9 = vpop.permute.xlu1 %351 }
  0x9c   : > { %506 = vmatmul.msk.bf16.vlgmr.msrb.gmra.mxu0 %vm162_vm0, %v352_v9 }
  0xa3   : > { %v265_v53 = vpop.permute.xlu1 %264 }
  0xa4   : > { %v270_v56 = vand.u32 %v265_v53, %v208_v32 }
  0xa6   : > { %279 = vmatpush.bf16.msra.mxu3 %v270_v56 }
 0x109   : > { %v178_v14 = vpop.f32.mrf.mxu0 }
 0x10a   : > { %v182_v15 = vmul.f32 0.35355338, %v178_v14 }
 0x10c   : > { %v186_v16 = vadd.f32 %v628_v13, %v182_v15 }
 0x10e   : > { %v188_v17 = vsel %vm187_vm1, %v186_v16, -inf }
 0x10f   : > { %189 = vmax.xlane.f32.xlu0 %v188_v17  ;;  %v250_v19 = vpop.f32.mrf.mxu2 }
 0x110   : > { %v254_v26 = vmul.f32 0.35355338, %v250_v19 }
 0x111   : > { %v180_v18 = vpop.f32.mrf.mxu0 }
 0x112   : > { %v255_v28 = vadd.f32 %v254_v26, %v628_v13 }
 0x114   : > { %v256_v31 = vsel %vm187_vm1, %v255_v28, -inf }
 0x115   : > { %257 = vmax.xlane.f32.xlu2 %v256_v31 }
 0x117   : > { %v252_v22 = vpop.f32.mrf.mxu2 }
 0x119   : > { %v370_v20 = vpop.f32.mrf.mxu0 }
 0x11a   : > { %v374_v21 = vmul.f32 0.35355338, %v370_v20 }
 0x11c   : > { %v375_v23 = vadd.f32 %v374_v21, %v628_v13 }
 0x11e   : > { %v376_v24 = vsel %vm187_vm1, %v375_v23, -inf }
 0x11f   : > { %377 = vmax.xlane.f32.xlu0 %v376_v24 }
 0x121   : > { %v372_v25 = vpop.f32.mrf.mxu0 }
 0x12d   : > { %384 = vrot.lane.b32.xlu2 %v604_v1, %s569_s28 }
 0x133   : > { %324 = vrot.lane.b32.xlu0 %v604_v1, %s567_s27 }
 0x182   : > { %v190_v36 = vpop.xlane.xlu0 %189 }
 0x183   : > { %v191_v37 = vsub.f32 %v186_v16, %v190_v36 }
 0x185   : > { %v192_v38 = vmul.f32 1.442695, %v191_v37 }
 0x187   : > { %534 = vpow2.f32 %v192_v38 }
 0x188   : > { %v258_v47 = vpop.xlane.xlu2 %257 }
 0x189   : > { %v259_v48 = vsub.f32 %v255_v28, %v258_v47 }
 0x18b   : > { %v260_v50 = vmul.f32 1.442695, %v259_v48 }
 0x18d   : > { %v535_v40 = vpop.eup %534  ;;  %536 = vpow2.f32 %v260_v50 }
 0x18e   : > { %v197_v41 = vmul.f32 %v535_v40, %v533_v39 }
 0x190   : > { %v225_v42 = vsel %vm187_vm1, %v197_v41, 0.0  ;;  %v198_v43 = vpack.c.bf16 %v197_v41, %v197_v41  ;;  %v385_v54 = vpop.permute.xlu2 %384 }
 0x191   : > { %226 = vadd.xlane.f32.xlu0 %v225_v42  ;;  %v390_v57 = vand.u32 %v385_v54, %v208_v32 }
 0x192   : > { %501 = vmatmul.msk.bf16.vlgmr.msra.gmra.mxu1 %vm201_vm4, %v198_v43  ;;  %v378_v45 = vpop.xlane.xlu0 %377 }
 0x193   : > { %v379_v46 = vsub.f32 %v375_v23, %v378_v45  ;;  %v537_v55 = vpop.eup %536  ;;  %399 = vmatpush.bf16.msrb.mxu2 %v390_v57 }
 0x194   : > { %v262_v59 = vmul.f32 %v537_v55, %v533_v39 }
 0x195   : > { %v380_v49 = vmul.f32 1.442695, %v379_v46 }
 0x196   : > { %v263_v60 = vpack.c.bf16 %v262_v59, %v262_v59  ;;  %v285_v6 = vsel %vm187_vm1, %v262_v59, 0.0 }
 0x197   : > { %538 = vpow2.f32 %v380_v49 }
 0x198   : > { %503 = vmatmul.msk.bf16.vlgmr.msra.gmra.mxu3 %vm201_vm4, %v263_v60 }
 0x19d   : > { %v539_v58 = vpop.eup %538 }
 0x19e   : > { %v382_v61 = vmul.f32 %v539_v58, %v533_v39 }
 0x1a0   : > { %v383_v62 = vpack.c.bf16 %v382_v61, %v382_v61  ;;  %v405_v7 = vsel %vm187_vm1, %v382_v61, 0.0 }
 0x1a2   : > { %504 = vmatmul.msk.bf16.vlgmr.msrb.gmra.mxu1 %vm162_vm0, %v292_v44  ;;  %507 = vmatmul.msk.bf16.vlgmr.msrb.gmra.mxu2 %vm201_vm4, %v383_v62 }
 0x1a5   : > { %v325_v51 = vpop.permute.xlu0 %324 }
 0x1a6   : > { %v330_v52 = vand.u32 %v325_v51, %v208_v32 }
 0x1a8   : > { %339 = vmatpush.bf16.msrb.mxu3 %v330_v52 }
 0x204   : > { %v227_v33 = vpop.xlane.xlu0 %226 }
 0x205   : > { %v228_v34 = vadd.f32 1e-06, %v227_v33 }
 0x20f   : > { %v221_v63 = vpop.f32.mrf.mxu1 }
 0x217   : > { %v223_v0 = vpop.f32.mrf.mxu1 }
 0x21b   : > { %v281_v8 = vpop.f32.mrf.mxu3 }
 0x21f   : > { %v310_v1 = vpop.f32.mrf.mxu1 }
 0x220   : > { %v314_v2 = vmul.f32 0.35355338, %v310_v1 }
 0x222   : > { %v315_v3 = vadd.f32 %v314_v2, %v628_v13 }
 0x223   : > { %v283_v9 = vpop.f32.mrf.mxu3 }
 0x224   : > { %v316_v4 = vsel %vm187_vm1, %v315_v3, -inf }
 0x225   : > { %317 = vmax.xlane.f32.xlu1 %v316_v4  ;;  %v401_v10 = vpop.f32.mrf.mxu2 }
 0x227   : > { %v312_v5 = vpop.f32.mrf.mxu1 }
 0x22d   : > { %286 = vadd.xlane.f32.xlu1 %v285_v6  ;;  %v403_v11 = vpop.f32.mrf.mxu2 }
 0x235   : > { %406 = vadd.xlane.f32.xlu1 %v405_v7 }
 0x298   : > { %v318_v12 = vpop.xlane.xlu1 %317 }
 0x299   : > { %v319_v14 = vsub.f32 %v315_v3, %v318_v12 }
 0x29b   : > { %v320_v15 = vmul.f32 1.442695, %v319_v14 }
 0x29d   : > { %540 = vpow2.f32 %v320_v15 }
 0x2a0   : > { %v287_v16 = vpop.xlane.xlu1 %286 }
 0x2a1   : > { %v288_v13 = vadd.f32 1e-06, %v287_v16 }
 0x2a3   : > { %v541_v17 = vpop.eup %540  ;;  %542 = vrcp.f32 %v288_v13 }
 0x2a4   : > { %v322_v18 = vmul.f32 %v541_v17, %v533_v39 }
 0x2a6   : > { %v345_v19 = vsel %vm187_vm1, %v322_v18, 0.0  ;;  %v323_v20 = vpack.c.bf16 %v322_v18, %v322_v18 }
 0x2a7   : > { %346 = vadd.xlane.f32.xlu2 %v345_v19 }
 0x2a8   : > { %v407_v21 = vpop.xlane.xlu1 %406  ;;  %505 = vmatmul.msk.bf16.vlgmr.msrb.gmra.mxu3 %vm201_vm4, %v323_v20 }
 0x2a9   : > { %v543_v22 = vpop.eup %542  ;;  %v408_v23 = vadd.f32 1e-06, %v407_v21 }
 0x2aa   : > { %v290_v24 = vmul.f32 %v543_v22, %v281_v8 }
 0x2ab   : > { %544 = vrcp.f32 %v408_v23 }
 0x2ac   : > { %412 = vrot.lane.b32.xlu1 %v290_v24, %s570_s29 }
 0x2b1   : > { %v545_v25 = vpop.eup %544 }
 0x2b2   : > { %v410_v26 = vmul.f32 %v545_v25, %v401_v10 }
 0x2b4   : > { %420 = vrot.lane.b32.xlu1 %v410_v26, %s571_s30 }
 0x31a   : > { %v347_v27 = vpop.xlane.xlu2 %346 }
 0x31b   : > { %v348_v28 = vadd.f32 1e-06, %v347_v27 }
 0x31d   : > { %546 = vrcp.f32 %v348_v28 }
 0x31e   : > { %548 = vrcp.f32 %v228_v34  ;;  %v413_v35 = vpop.permute.xlu1 %412 }
 0x323   : > { %v547_v29 = vpop.eup %546 }
 0x324   : > { %v549_v36 = vpop.eup %548 }
 0x325   : > { %v230_v37 = vmul.f32 %v549_v36, %v221_v63 }
 0x326   : > { %v421_v40 = vpop.permute.xlu1 %420 }
 0x327   : > { %v423_v38 = vsel %vm162_vm0, %v230_v37, %v413_v35 }
 0x32b   : > { %v341_v30 = vpop.f32.mrf.mxu3 }
 0x32c   : > { %v350_v31 = vmul.f32 %v547_v29, %v341_v30 }
 0x32e   : > { %416 = vrot.lane.b32.xlu0 %v350_v31, %s572_s3 }
 0x333   : > { %v343_v32 = vpop.f32.mrf.mxu3 }
 0x3a0   : > { %v417_v39 = vpop.permute.xlu0 %416 }
 0x3a1   : > { %v425_v41 = vsel %vm424_vm5, %v423_v38, %v417_v39 }
 0x3a2   : > { %v427_v42 = vsel %vm426_vm6, %v425_v41, %v421_v40 }
 0x3a3   : > { %429 = vst.msk [vmem:[%s152_s6] sm:$0x7f] %vm428_vm7, %v427_v42 }
 0x3a4 PF: > { %s12_s9 = sadd.s32 1, %s556_s9  }
 0x3a5   : > { %p9_p4 = scmp.ge.s32.totalorder %s12_s9, 4  }
 0x3a7   :  { %11 = sbr.rel (!%p9_p4) target bundleno = 1 (0x1), region = 61 }

// kernel: fwd.34
= control target key start
LH: loop header
LB: loop body
LE: loop exit
PB: predicated region body
PF: predicated region fallthrough
CT: control target
= control target key end

     0   :  { %vm39_vm0 = vcmask 261120   ;;  %s135_s2 = inlined_call_operand.vmem [shape: bf16[32,32], index: 2, kind: input, shape index: {}]   ;;  %s136_s0 = inlined_call_operand.vmem [shape: f32[16,32], index: 0, kind: input, shape index: {}]   ;;  %s137_s3 = inlined_call_operand.vmem [shape: f32[1,32], index: 3, kind: input, shape index: {}]   ;;  %s138_s1 = inlined_call_operand.vmem [shape: f32[16,32], index: 1, kind: input, shape index: {}]   ;;  %s139_s4 = inlined_call_operand.vmem [shape: f32[16,32], index: 4, kind: output, shape index: {}]  }
   0x1   :  { %v81_v0 = vld [vmem:[%s135_s2 + $0x8] sm:$0xff]  ;;  %v80_v1 = vld [vmem:[%s135_s2] sm:$0xff] }
   0x2   :  { %49 = vmatpush.bf16.msra.mxu0 %v81_v0  ;;  %v20_v2 = vld [vmem:[%s136_s0] sm:$0xff]  ;;  %v21_v3 = vld [vmem:[%s136_s0 + $0x8] sm:$0xff] }
   0x3   :  { %v26_v4 = vpack.c.bf16 %v21_v3, %v20_v2  ;;  %v18_v5 = vld [vmem:[%s138_s1] sm:$0xff]  ;;  %v19_v10 = vld [vmem:[%s138_s1 + $0x8] sm:$0xff] }
   0x4   :  { %v82_v6 = vld [vmem:[%s137_s3] ss:$0 sm:$0xff] }
   0x6   :  { %50 = vmatpush.bf16.msra.mxu0 %v80_v1 }
   0x9   :  { %79 = vmatmul.msk.bf16.vlgmr.msra.gmra.mxu0 %vm39_vm0, %v26_v4 }
  0x86   :  { %v52_v7 = vpop.f32.mrf.mxu0 }
  0x87   :  { %v57_v8 = vadd.f32 %v52_v7, %v18_v5 }
  0x89   :  { %v63_v9 = vadd.f32 %v82_v6, %v57_v8 }
  0x8b   :  { %65 = vst.msk [vmem:[%s139_s4] sm:$0xff] %vm39_vm0, %v63_v9 }
  0x8e   :  { %v54_v11 = vpop.f32.mrf.mxu0 }
  0x8f   :  { %v58_v12 = vadd.f32 %v54_v11, %v19_v10 }
  0x91   :  { %v64_v13 = vadd.f32 %v82_v6, %v58_v12 }
  0x93   :  { %66 = vst.msk [vmem:[%s139_s4 + $0x8] sm:$0xff] %vm39_vm0, %v64_v13 }

// kernel: fwd.35
= control target key start
LH: loop header
LB: loop body
LE: loop exit
PB: predicated region body
PF: predicated region fallthrough
CT: control target
= control target key end

     0   :  { %vm31_vm0 = vcmask 261120   ;;  %v241_v4 = vmov 32.0   ;;  %vm166_vm8 = vcmask 523264   ;;  %s341_s0 = inlined_call_operand.vmem [shape: f32[16,32], index: 0, kind: input, shape index: {}]   ;;  %s342_s1 = inlined_call_operand.vmem [shape: f32[1,32], index: 1, kind: input, shape index: {}]   ;;  %s343_s2 = inlined_call_operand.vmem [shape: f32[1,32], index: 2, kind: input, shape index: {}]   ;;  %s344_s4 = inlined_call_operand.vmem [shape: f32[1,64], index: 4, kind: input, shape index: {}]   ;;  %s345_s3 = inlined_call_operand.vmem [shape: bf16[32,64], index: 3, kind: input, shape index: {}]   ;;  %s346_s6 = inlined_call_operand.vmem [shape: f32[1,32], index: 6, kind: input, shape index: {}]   ;;  %s347_s5 = inlined_call_operand.vmem [shape: bf16[64,32], index: 5, kind: input, shape index: {}]   ;;  %s348_s7 = inlined_call_operand.vmem [shape: f32[16,32], index: 7, kind: output, shape index: {}]  }
   0x1   :  { %v285_v0 = vld [vmem:[%s341_s0] sm:$0xff]  ;;  %v292_v2 = vld [vmem:[%s341_s0 + $0x8] sm:$0xff]  ;;  %235 = vrcp.f32 %v241_v4  ;;  %v229_v52 = vld [vmem:[%s347_s5 + $0x18] sm:$0xff] }
   0x2   :  { %v32_v1 = vsel %vm31_vm0, %v285_v0, 0.0  ;;  %v35_v3 = vsel %vm31_vm0, %v292_v2, 0.0  ;;  %v225_v21 = vld [vmem:[%s345_s3 + $0x8] sm:$0xff]  ;;  %v224_v23 = vld [vmem:[%s345_s3] sm:$0xff]  ;;  %174 = vmatpush.bf16.msra.mxu1 %v229_v52  ;;  %v228_v53 = vld [vmem:[%s347_s5 + $0x10] sm:$0xff] }
   0x3   :  { %33 = vadd.xlane.f32.xlu0 %v32_v1  ;;  %123 = vmatpush.bf16.msra.mxu0 %v225_v21  ;;  %v231_v42 = vld [vmem:[%s342_s1] ss:$0 sm:$0xff]  ;;  %v227_v54 = vld [vmem:[%s347_s5 + $0x8] sm:$0xff] }
   0x4   :  { %v232_v47 = vld [vmem:[%s343_s2] ss:$0 sm:$0xff] }
   0x5   :  { %v226_v55 = vld [vmem:[%s347_s5] sm:$0xff] }
   0x6   :  { %175 = vmatpush.bf16.msra.mxu1 %v228_v53  ;;  %v233_v57 = vld [vmem:[%s344_s4] ss:$0 sm:$0xff] }
   0x7   :  { %v236_v5 = vpop.eup %235  ;;  %124 = vmatpush.bf16.msra.mxu0 %v224_v23  ;;  %v234_v1 = vld [vmem:[%s346_s6] ss:$0 sm:$0xff] }
   0x8   :  { %v39_v6 = vmul.f32 32.0, %v236_v5  ;;  %vm43_vm1 = vweird.f32 %v236_v5 }
   0xa   :  { %v40_v7 = vsub.f32 1.0, %v39_v6  ;;  %176 = vmatpush.bf16.msra.mxu1 %v227_v54 }
   0xb   :  { %36 = vadd.xlane.f32.xlu0 %v35_v3 }
   0xc   :  { %v41_v8 = vmul.f32 %v236_v5, %v40_v7 }
   0xe   :  { %v42_v9 = vadd.f32 %v236_v5, %v41_v8  ;;  %177 = vmatpush.bf16.msra.mxu1 %v226_v55 }
  0x10   :  { %v44_v10 = vsel %vm43_vm1, %v236_v5, %v42_v9 }
  0x76   :  { %v34_v11 = vpop.xlane.xlu0 %33 }
  0x77   :  { %v45_v12 = vmul.f32 %v44_v10, %v34_v11 }
  0x79   :  { %v47_v13 = vsub.f32 %v285_v0, %v45_v12 }
  0x7b   :  { %v49_v14 = vmul.f32 %v47_v13, %v47_v13 }
  0x7d   :  { %v51_v15 = vsel %vm31_vm0, %v49_v14, 0.0 }
  0x7e   :  { %52 = vadd.xlane.f32.xlu1 %v51_v15  ;;  %v37_v16 = vpop.xlane.xlu0 %36 }
  0x7f   :  { %v46_v17 = vmul.f32 %v44_v10, %v37_v16 }
  0x81   :  { %v48_v18 = vsub.f32 %v292_v2, %v46_v17 }
  0x83   :  { %v50_v19 = vmul.f32 %v48_v18, %v48_v18 }
  0x85   :  { %v54_v20 = vsel %vm31_vm0, %v50_v19, 0.0 }
  0x86   :  { %55 = vadd.xlane.f32.xlu1 %v54_v20 }
  0xf1   :  { %v53_v22 = vpop.xlane.xlu1 %52 }
  0xf2   :  { %v57_v24 = vmul.f32 %v53_v22, %v44_v10 }
  0xf4   :  { %v59_v25 = vadd.f32 1e-12, %v57_v24 }
  0xf6   :  { %237 = vrsqrt.f32 %v59_v25  ;;  %vm67_vm3 = vweird.f32 %v59_v25 }
  0xf9   :  { %v56_v26 = vpop.xlane.xlu1 %55 }
  0xfa   :  { %v58_v27 = vmul.f32 %v56_v26, %v44_v10 }
  0xfc   :  { %v238_v28 = vpop.eup %237  ;;  %v60_v29 = vadd.f32 1e-12, %v58_v27 }
  0xfd   :  { %v62_v30 = vmul.f32 %v238_v28, %v59_v25  ;;  %vm68_vm2 = vweird.f32 %v238_v28 }
  0xfe   :  { %239 = vrsqrt.f32 %v60_v29  ;;  %vm69_vm4 = vmor %vm67_vm3, %vm68_vm2  ;;  %vm77_vm6 = vweird.f32 %v60_v29 }
  0xff   :  { %v63_v31 = vmul.f32 %v238_v28, %v62_v30 }
 0x101   :  { %v64_v32 = vmul.f32 0.5, %v63_v31 }
 0x103   :  { %v65_v33 = vsub.f32 1.5, %v64_v32 }
 0x104   :  { %v240_v34 = vpop.eup %239 }
 0x105   :  { %v66_v35 = vmul.f32 %v238_v28, %v65_v33  ;;  %v72_v36 = vmul.f32 %v240_v34, %v60_v29  ;;  %vm78_vm5 = vweird.f32 %v240_v34 }
 0x106   :  { %vm79_vm7 = vmor %vm77_vm6, %vm78_vm5 }
 0x107   :  { %v73_v37 = vmul.f32 %v240_v34, %v72_v36  ;;  %v70_v38 = vsel %vm69_vm4, %v238_v28, %v66_v35 }
 0x108   :  { %v81_v41 = vmul.f32 %v70_v38, %v47_v13 }
 0x109   :  { %v74_v39 = vmul.f32 0.5, %v73_v37 }
 0x10a   :  { %v86_v46 = vmul.f32 %v231_v42, %v81_v41 }
 0x10b   :  { %v75_v40 = vsub.f32 1.5, %v74_v39 }
 0x10c   :  { %v91_v49 = vadd.f32 %v232_v47, %v86_v46 }
 0x10d   :  { %v76_v43 = vmul.f32 %v240_v34, %v75_v40 }
 0x10f   :  { %v80_v44 = vsel %vm79_vm7, %v240_v34, %v76_v43 }
 0x110   :  { %v82_v45 = vmul.f32 %v80_v44, %v48_v18 }
 0x112   :  { %v87_v48 = vmul.f32 %v231_v42, %v82_v45 }
 0x114   :  { %v92_v50 = vadd.f32 %v232_v47, %v87_v48 }
 0x116   :  { %v97_v51 = vpack.c.bf16 %v92_v50, %v91_v49 }
 0x118   :  { %206 = vmatmul.msk.bf16.vlgmr.msra.gmra.mxu0 %vm31_vm0, %v97_v51 }
 0x195   :  { %v126_v56 = vpop.f32.mrf.mxu0 }
 0x196   :  { %v127_v58 = vadd.f32 %v233_v57, %v126_v56 }
 0x198   :  { %v131_v61 = vmax.f32 %v127_v58, 0.0 }
 0x19d   :  { %v128_v59 = vpop.f32.mrf.mxu0 }
 0x19e   :  { %v129_v60 = vadd.f32 %v233_v57, %v128_v59 }
 0x1a0   :  { %v132_v62 = vmax.f32 %v129_v60, 0.0 }
 0x1a2   :  { %v141_v63 = vpack.c.bf16 %v132_v62, %v131_v61 }
 0x1a4   :  { %223 = vmatmul.msk.bf16.vlgmr.msra.gmra.mxu1 %vm166_vm8, %v141_v63 }
 0x221   :  { %v179_v3 = vpop.f32.mrf.mxu1 }
 0x222   :  { %v184_v4 = vadd.f32 %v179_v3, %v285_v0 }
 0x224   :  { %v190_v5 = vadd.f32 %v234_v1, %v184_v4 }
 0x226   :  { %192 = vst.msk [vmem:[%s348_s7] sm:$0xff] %vm31_vm0, %v190_v5 }
 0x229   :  { %v181_v6 = vpop.f32.mrf.mxu1 }
 0x22a   :  { %v185_v7 = vadd.f32 %v181_v6, %v292_v2 }
 0x22c   :  { %v191_v8 = vadd.f32 %v234_v1, %v185_v7 }
 0x22e   :  { %193 = vst.msk [vmem:[%s348_s7 + $0x8] sm:$0xff] %vm31_vm0, %v191_v8 }

// kernel: fwd.40
= control target key start
LH: loop header
LB: loop body
LE: loop exit
PB: predicated region body
PF: predicated region fallthrough
CT: control target
= control target key end

     0   :  { %vm18_vm0 = vcmask 261120   ;;  %v95_v4 = vmov 32.0   ;;  %s140_s0 = inlined_call_operand.vmem [shape: f32[16,32], index: 0, kind: input, shape index: {}]   ;;  %s141_s1 = inlined_call_operand.vmem [shape: f32[1,32], index: 1, kind: input, shape index: {}]   ;;  %s142_s2 = inlined_call_operand.vmem [shape: f32[1,32], index: 2, kind: input, shape index: {}]   ;;  %s143_s3 = inlined_call_operand.vmem [shape: f32[16,32], index: 3, kind: output, shape index: {}]  }
   0x1   :  { %v14_v0 = vld [vmem:[%s140_s0] sm:$0xff]  ;;  %v15_v2 = vld [vmem:[%s140_s0 + $0x8] sm:$0xff]  ;;  %89 = vrcp.f32 %v95_v4 }
   0x2   :  { %v19_v1 = vsel %vm18_vm0, %v14_v0, 0.0  ;;  %v22_v3 = vsel %vm18_vm0, %v15_v2, 0.0  ;;  %v87_v35 = vld [vmem:[%s141_s1] ss:$0 sm:$0xff] }
   0x3   :  { %20 = vadd.xlane.f32.xlu0 %v19_v1  ;;  %v88_v38 = vld [vmem:[%s142_s2] ss:$0 sm:$0xff] }
   0x7   :  { %v90_v5 = vpop.eup %89 }
   0x8   :  { %v26_v6 = vmul.f32 32.0, %v90_v5  ;;  %vm30_vm1 = vweird.f32 %v90_v5 }
   0xa   :  { %v27_v7 = vsub.f32 1.0, %v26_v6 }
   0xb   :  { %23 = vadd.xlane.f32.xlu0 %v22_v3 }
   0xc   :  { %v28_v8 = vmul.f32 %v90_v5, %v27_v7 }
   0xe   :  { %v29_v9 = vadd.f32 %v90_v5, %v28_v8 }
  0x10   :  { %v31_v10 = vsel %vm30_vm1, %v90_v5, %v29_v9 }
  0x76   :  { %v21_v11 = vpop.xlane.xlu0 %20 }
  0x77   :  { %v32_v12 = vmul.f32 %v31_v10, %v21_v11 }
  0x79   :  { %v34_v13 = vsub.f32 %v14_v0, %v32_v12 }
  0x7b   :  { %v36_v14 = vmul.f32 %v34_v13, %v34_v13 }
  0x7d   :  { %v38_v15 = vsel %vm18_vm0, %v36_v14, 0.0 }
  0x7e   :  { %39 = vadd.xlane.f32.xlu1 %v38_v15  ;;  %v24_v16 = vpop.xlane.xlu0 %23 }
  0x7f   :  { %v33_v17 = vmul.f32 %v31_v10, %v24_v16 }
  0x81   :  { %v35_v18 = vsub.f32 %v15_v2, %v33_v17 }
  0x83   :  { %v37_v19 = vmul.f32 %v35_v18, %v35_v18 }
  0x85   :  { %v41_v20 = vsel %vm18_vm0, %v37_v19, 0.0 }
  0x86   :  { %42 = vadd.xlane.f32.xlu1 %v41_v20 }
  0xf1   :  { %v40_v21 = vpop.xlane.xlu1 %39 }
  0xf2   :  { %v44_v22 = vmul.f32 %v40_v21, %v31_v10 }
  0xf4   :  { %v46_v23 = vadd.f32 1e-12, %v44_v22 }
  0xf6   :  { %91 = vrsqrt.f32 %v46_v23  ;;  %vm54_vm3 = vweird.f32 %v46_v23 }
  0xf9   :  { %v43_v24 = vpop.xlane.xlu1 %42 }
  0xfa   :  { %v45_v25 = vmul.f32 %v43_v24, %v31_v10 }
  0xfc   :  { %v92_v26 = vpop.eup %91  ;;  %v47_v27 = vadd.f32 1e-12, %v45_v25 }
  0xfd   :  { %v49_v28 = vmul.f32 %v92_v26, %v46_v23  ;;  %vm55_vm2 = vweird.f32 %v92_v26 }
  0xfe   :  { %93 = vrsqrt.f32 %v47_v27  ;;  %vm56_vm4 = vmor %vm54_vm3, %vm55_vm2  ;;  %vm64_vm6 = vweird.f32 %v47_v27 }
  0xff   :  { %v50_v29 = vmul.f32 %v92_v26, %v49_v28 }
 0x101   :  { %v51_v30 = vmul.f32 0.5, %v50_v29 }
 0x103   :  { %v52_v31 = vsub.f32 1.5, %v51_v30 }
 0x104   :  { %v94_v32 = vpop.eup %93 }
 0x105   :  { %v53_v33 = vmul.f32 %v92_v26, %v52_v31  ;;  %v59_v34 = vmul.f32 %v94_v32, %v47_v27  ;;  %vm65_vm5 = vweird.f32 %v94_v32 }
 0x106   :  { %vm66_vm7 = vmor %vm64_vm6, %vm65_vm5 }
 0x107   :  { %v57_v36 = vsel %vm56_vm4, %v92_v26, %v53_v33  ;;  %v60_v37 = vmul.f32 %v94_v32, %v59_v34 }
 0x108   :  { %v68_v39 = vmul.f32 %v57_v36, %v34_v13 }
 0x109   :  { %v61_v40 = vmul.f32 0.5, %v60_v37 }
 0x10a   :  { %v73_v41 = vmul.f32 %v87_v35, %v68_v39 }
 0x10b   :  { %v62_v42 = vsub.f32 1.5, %v61_v40 }
 0x10c   :  { %v78_v43 = vadd.f32 %v88_v38, %v73_v41 }
 0x10d   :  { %v63_v44 = vmul.f32 %v94_v32, %v62_v42 }
 0x10e   :  { %80 = vst.msk [vmem:[%s143_s3] sm:$0xff] %vm18_vm0, %v78_v43 }
 0x10f   :  { %v67_v45 = vsel %vm66_vm7, %v94_v32, %v63_v44 }
 0x110   :  { %v69_v46 = vmul.f32 %v67_v45, %v35_v18 }
 0x112   :  { %v74_v47 = vmul.f32 %v87_v35, %v69_v46 }
 0x114   :  { %v79_v48 = vadd.f32 %v88_v38, %v74_v47 }
 0x116   :  { %81 = vst.msk [vmem:[%s143_s3 + $0x8] sm:$0xff] %vm18_vm0, %v79_v48 }

// kernel: fwd.41
= control target key start
LH: loop header
LB: loop body
LE: loop exit
PB: predicated region body
PF: predicated region fallthrough
CT: control target
= control target key end

     0   :  { %vm38_vm0 = vcmask 261120   ;;  %s115_s1 = inlined_call_operand.vmem [shape: bf16[32,128], index: 1, kind: input, shape index: {}]   ;;  %s116_s0 = inlined_call_operand.vmem [shape: f32[16,32], index: 0, kind: input, shape index: {}]   ;;  %s117_s2 = inlined_call_operand.vmem [shape: f32[1,128], index: 2, kind: input, shape index: {}]   ;;  %s118_s3 = inlined_call_operand.vmem [shape: f32[16,128], index: 3, kind: output, shape index: {}]  }
   0x1   :  { %v72_v0 = vld [vmem:[%s115_s1 + $0x8] sm:$0xff]  ;;  %v71_v1 = vld [vmem:[%s115_s1] sm:$0xff] }
   0x2   :  { %48 = vmatpush.bf16.msra.mxu0 %v72_v0  ;;  %v15_v2 = vld [vmem:[%s116_s0] sm:$0xff]  ;;  %v16_v3 = vld [vmem:[%s116_s0 + $0x8] sm:$0xff] }
   0x3   :  { %v21_v4 = vpack.c.bf16 %v16_v3, %v15_v2  ;;  %v73_v5 = vld [vmem:[%s117_s2] ss:$0 sm:$0xff] }
   0x6   :  { %49 = vmatpush.bf16.msra.mxu0 %v71_v1 }
   0x9   :  { %70 = vmatmul.msk.bf16.vlgmr.msra.gmra.mxu0 %vm38_vm0, %v21_v4 }
  0x86   :  { %v51_v6 = vpop.f32.mrf.mxu0 }
  0x87   :  { %v52_v7 = vadd.f32 %v73_v5, %v51_v6 }
  0x89   :  { %56 = vst [vmem:[%s118_s3] sm:$0xff] %v52_v7 }
  0x8e   :  { %v53_v8 = vpop.f32.mrf.mxu0 }
  0x8f   :  { %v54_v9 = vadd.f32 %v73_v5, %v53_v8 }
  0x91   :  { %57 = vst [vmem:[%s118_s3 + $0x8] sm:$0xff] %v54_v9 }

// kernel: fwd.45
= control target key start
LH: loop header
LB: loop body
LE: loop exit
PB: predicated region body
PF: predicated region fallthrough
CT: control target
= control target key end

     0   :  { %vm25_vm0 = vcmask 261120   ;;  %v152_v4 = vmov 32.0   ;;  %s217_s0 = inlined_call_operand.vmem [shape: f32[16,32], index: 0, kind: input, shape index: {}]   ;;  %s218_s1 = inlined_call_operand.vmem [shape: f32[1,32], index: 1, kind: input, shape index: {}]   ;;  %s219_s2 = inlined_call_operand.vmem [shape: f32[1,32], index: 2, kind: input, shape index: {}]   ;;  %s220_s4 = inlined_call_operand.vmem [shape: f32[1,32], index: 4, kind: input, shape index: {}]   ;;  %s221_s3 = inlined_call_operand.vmem [shape: bf16[32,32], index: 3, kind: input, shape index: {}]   ;;  %s222_s5 = inlined_call_operand.vmem [shape: f32[16,32], index: 5, kind: output, shape index: {}]  }
   0x1   :  { %v21_v0 = vld [vmem:[%s217_s0] sm:$0xff]  ;;  %v22_v2 = vld [vmem:[%s217_s0 + $0x8] sm:$0xff]  ;;  %146 = vrcp.f32 %v152_v4 }
   0x2   :  { %v26_v1 = vsel %vm25_vm0, %v21_v0, 0.0  ;;  %v29_v3 = vsel %vm25_vm0, %v22_v2, 0.0  ;;  %v141_v21 = vld [vmem:[%s221_s3 + $0x8] sm:$0xff]  ;;  %v140_v23 = vld [vmem:[%s221_s3] sm:$0xff] }
   0x3   :  { %27 = vadd.xlane.f32.xlu0 %v26_v1  ;;  %117 = vmatpush.bf16.msra.mxu0 %v141_v21  ;;  %v143_v42 = vld [vmem:[%s218_s1] ss:$0 sm:$0xff] }
   0x4   :  { %v144_v47 = vld [vmem:[%s219_s2] ss:$0 sm:$0xff] }
   0x5   :  { %v145_v52 = vld [vmem:[%s220_s4] ss:$0 sm:$0xff] }
   0x7   :  { %v147_v5 = vpop.eup %146  ;;  %118 = vmatpush.bf16.msra.mxu0 %v140_v23 }
   0x8   :  { %v33_v6 = vmul.f32 32.0, %v147_v5  ;;  %vm37_vm1 = vweird.f32 %v147_v5 }
   0xa   :  { %v34_v7 = vsub.f32 1.0, %v33_v6 }
   0xb   :  { %30 = vadd.xlane.f32.xlu0 %v29_v3 }
   0xc   :  { %v35_v8 = vmul.f32 %v147_v5, %v34_v7 }
   0xe   :  { %v36_v9 = vadd.f32 %v147_v5, %v35_v8 }
  0x10   :  { %v38_v10 = vsel %vm37_vm1, %v147_v5, %v36_v9 }
  0x76   :  { %v28_v11 = vpop.xlane.xlu0 %27 }
  0x77   :  { %v39_v12 = vmul.f32 %v38_v10, %v28_v11 }
  0x79   :  { %v41_v13 = vsub.f32 %v21_v0, %v39_v12 }
  0x7b   :  { %v43_v14 = vmul.f32 %v41_v13, %v41_v13 }
  0x7d   :  { %v45_v15 = vsel %vm25_vm0, %v43_v14, 0.0 }
  0x7e   :  { %46 = vadd.xlane.f32.xlu1 %v45_v15  ;;  %v31_v16 = vpop.xlane.xlu0 %30 }
  0x7f   :  { %v40_v17 = vmul.f32 %v38_v10, %v31_v16 }
  0x81   :  { %v42_v18 = vsub.f32 %v22_v2, %v40_v17 }
  0x83   :  { %v44_v19 = vmul.f32 %v42_v18, %v42_v18 }
  0x85   :  { %v48_v20 = vsel %vm25_vm0, %v44_v19, 0.0 }
  0x86   :  { %49 = vadd.xlane.f32.xlu1 %v48_v20 }
  0xf1   :  { %v47_v22 = vpop.xlane.xlu1 %46 }
  0xf2   :  { %v51_v24 = vmul.f32 %v47_v22, %v38_v10 }
  0xf4   :  { %v53_v25 = vadd.f32 1e-12, %v51_v24 }
  0xf6   :  { %148 = vrsqrt.f32 %v53_v25  ;;  %vm61_vm3 = vweird.f32 %v53_v25 }
  0xf9   :  { %v50_v26 = vpop.xlane.xlu1 %49 }
  0xfa   :  { %v52_v27 = vmul.f32 %v50_v26, %v38_v10 }
  0xfc   :  { %v149_v28 = vpop.eup %148  ;;  %v54_v29 = vadd.f32 1e-12, %v52_v27 }
  0xfd   :  { %v56_v30 = vmul.f32 %v149_v28, %v53_v25  ;;  %vm62_vm2 = vweird.f32 %v149_v28 }
  0xfe   :  { %150 = vrsqrt.f32 %v54_v29  ;;  %vm63_vm4 = vmor %vm61_vm3, %vm62_vm2  ;;  %vm71_vm6 = vweird.f32 %v54_v29 }
  0xff   :  { %v57_v31 = vmul.f32 %v149_v28, %v56_v30 }
 0x101   :  { %v58_v32 = vmul.f32 0.5, %v57_v31 }
 0x103   :  { %v59_v33 = vsub.f32 1.5, %v58_v32 }
 0x104   :  { %v151_v34 = vpop.eup %150 }
 0x105   :  { %v60_v35 = vmul.f32 %v149_v28, %v59_v33  ;;  %v66_v36 = vmul.f32 %v151_v34, %v54_v29  ;;  %vm72_vm5 = vweird.f32 %v151_v34 }
 0x106   :  { %vm73_vm7 = vmor %vm71_vm6, %vm72_vm5 }
 0x107   :  { %v67_v37 = vmul.f32 %v151_v34, %v66_v36  ;;  %v64_v38 = vsel %vm63_vm4, %v149_v28, %v60_v35 }
 0x108   :  { %v75_v41 = vmul.f32 %v64_v38, %v41_v13 }
 0x109   :  { %v68_v39 = vmul.f32 0.5, %v67_v37 }
 0x10a   :  { %v80_v46 = vmul.f32 %v143_v42, %v75_v41 }
 0x10b   :  { %v69_v40 = vsub.f32 1.5, %v68_v39 }
 0x10c   :  { %v85_v49 = vadd.f32 %v144_v47, %v80_v46 }
 0x10d   :  { %v70_v43 = vmul.f32 %v151_v34, %v69_v40 }
 0x10f   :  { %v74_v44 = vsel %vm73_vm7, %v151_v34, %v70_v43 }
 0x110   :  { %v76_v45 = vmul.f32 %v74_v44, %v42_v18 }
 0x112   :  { %v81_v48 = vmul.f32 %v143_v42, %v76_v45 }
 0x114   :  { %v86_v50 = vadd.f32 %v144_v47, %v81_v48 }
 0x116   :  { %v91_v51 = vpack.c.bf16 %v86_v50, %v85_v49 }
 0x118   :  { %139 = vmatmul.msk.bf16.vlgmr.msra.gmra.mxu0 %vm25_vm0, %v91_v51 }
 0x195   :  { %v120_v53 = vpop.f32.mrf.mxu0 }
 0x196   :  { %v121_v54 = vadd.f32 %v145_v52, %v120_v53 }
 0x198   :  { %125 = vst.msk [vmem:[%s222_s5] sm:$0xff] %vm25_vm0, %v121_v54 }
 0x19d   :  { %v122_v55 = vpop.f32.mrf.mxu0 }
 0x19e   :  { %v123_v56 = vadd.f32 %v145_v52, %v122_v55 }
 0x1a0   :  { %126 = vst.msk [vmem:[%s222_s5 + $0x8] sm:$0xff] %vm25_vm0, %v123_v56 }

// kernel: fwd.46
= control target key start
LH: loop header
LB: loop body
LE: loop exit
PB: predicated region body
PF: predicated region fallthrough
CT: control target
= control target key end

     0   :  { %s643_s12 = smov 0   ;;  %s719_s0 = inlined_call_operand.vmem [shape: f32[2,5,32], index: 0, kind: input, shape index: {}]   ;;  %s720_s1 = inlined_call_operand.vmem [shape: f32[2,7,64], index: 1, kind: input, shape index: {}]   ;;  %s721_s2 = inlined_call_operand.vmem [shape: f32[2,1,7], index: 2, kind: input, shape index: {}]   ;;  %s722_s3 = inlined_call_operand.vmem [shape: f32[2,5,32], index: 3, kind: output, shape index: {}]  }
   0x1 LB: > { %s549_s13 = sadd.s32 4294967295, %s610_s12   ;;  %p553_p0 = scmp.ge.s32.totalorder %s610_s12, 1  ;;  %s610_s12 = sphi %s643_s12, %s13_s12  }
   0x2   : > { %p153_p1 = scmp.lt.s32.totalorder %s610_s12, 3 }
   0x4   : > { %p154_p2 = pnand %p553_p0, %p153_p1 }
   0x5   : > { %p182_p3 = scmp.lt.s32.totalorder (!%p154_p2), %s549_s13, 1  ;;  %s612_s21 = smov (!%p154_p2), 112  }
   0x6   : > { %157 = sbr.rel (%p154_p2) target bundleno = 826 (0x33a), region = 32  ;;  %s613_s22 = smov (!%p154_p2), 104  }
   0x7   : > { %s614_s23 = smov (!%p154_p2), 120   ;;  %s615_s24 = smov (!%p154_p2), 96  }
   0x8   : > { %s616_s25 = smov (!%p154_p2), 88   ;;  %s618_s29 = smov (!%p154_p2), 72  }
   0x9   : > { %s619_s30 = smov (!%p154_p2), 80   ;;  %s620_s4 = smov (!%p154_p2), 8  }
   0xa   : > { %s621_s5 = smov (!%p154_p2), 24   ;;  %s622_s6 = smov (!%p154_p2), 16  }
   0xb   : > { %s724_s13 = smov (!%p182_p3, %s549_s13), 1  ;;  %vm205_vm0 = vcmask 64512   ;;  %vm230_vm1 = vcmask 53248   ;;  %vm249_vm2 = vcmask 1042432   ;;  %vm250_vm3 = vcmask 1043456  }
   0xc   : > { %s654_s14 = sshll.u32 %s724_s13, 3  ;;  %s679_s28 = scalar_lea.vmem %s721_s2, %s724_s13  ;;  %v617_v19 = vmov 65535   ;;  %vm245_vm4 = vcmask 56320   ;;  %vm469_vm5 = vcmask 130048   ;;  %vm471_vm6 = vcmask 195584  }
   0xd   : > { %s189_s17 = scalar_lea.vmem %s720_s1, %s654_s14  ;;  %s185_s20 = scalar_lea.vmem %s719_s0, %s654_s14  ;;  %v200_v9 = vld [vmem:[%s679_s28] sm:$0x1]  ;;  %v251_v20 = vsel %vm249_vm2, 4294967295, %v617_v19  ;;  %vm473_vm7 = vcmask 258048  }
   0xe   : > { %v198_v0 = vld [vmem:[%s189_s17] sm:$0x7f]  ;;  %v557_v10 = vadd.f32 -1.0, %v200_v9  ;;  %v684_v21 = vsel %vm250_vm3, %v251_v20, 0  ;;  %s196_s9 = scalar_lea.vmem %s722_s3, %s654_s14 }
   0xf   : > { %v660_v1 = vpack.c.bf16 %v198_v0, %v198_v0  ;;  %v199_v3 = vld [vmem:[%s185_s20] sm:$0x1f] }
  0x10   : > { %v203_v4 = vpack.c.bf16 %v199_v3, %v199_v3  ;;  %v202_v11 = vmul.f32 1e+09, %v557_v10  ;;  %v587_v33 = vld [vmem:[%s679_s28] ss:$0 sm:$0xff] }
  0x11   : > { %v210_v2 = vsel %vm205_vm0, %v660_v1, 0  ;;  %338 = vrot.lane.b32.xlu2 %v660_v1, %s612_s21 }
  0x12   : > { %219 = vmatpush.bf16.xpose.msra.mxu0 %v210_v2  ;;  %276 = vrot.lane.b32.xlu1 %v203_v4, %s614_s23  ;;  %v227_v12 = vperm.slane %v202_v11, 0 }
  0x19   : > { %558 = vmatmul.msk.bf16.vlgmr.msra.gmra.mxu0 %vm205_vm0, %v203_v4  ;;  %398 = vrot.lane.b32.xlu2 %v660_v1, %s613_s22 }
  0x1a   : > { %243 = vrot.lane.b32.xlu1 %v660_v1, %s615_s24 }
  0x21   : > { %396 = vrot.lane.b32.xlu2 %v203_v4, %s613_s22 }
  0x22   : > { %336 = vrot.lane.b32.xlu1 %v203_v4, %s612_s21 }
  0x29   : > { %309 = vrot.lane.b32.xlu2 %v660_v1, %s616_s25 }
  0x6b   : > { %v339_v5 = vpop.permute.xlu2 %338 }
  0x6c   : > { %v344_v29 = vsel %vm205_vm0, %v339_v5, 0 }
  0x73   : > { %v399_v6 = vpop.permute.xlu2 %398 }
  0x74   : > { %v404_v7 = vsel %vm205_vm0, %v399_v6, 0 }
  0x75   : > { %413 = vmatpush.bf16.xpose.msrb.mxu0 %v404_v7 }
  0x7b   : > { %v397_v8 = vpop.permute.xlu2 %396 }
  0x7c   : > { %564 = vmatmul.msk.bf16.vlgmr.msrb.gmra.mxu0 %vm205_vm0, %v397_v8 }
  0x83   : > { %v310_v53 = vpop.permute.xlu2 %309 }
  0x84   : > { %v277_v18 = vpop.permute.xlu1 %276  ;;  %v315_v54 = vand.u32 %v310_v53, %v684_v21 }
  0x86   : > { %324 = vmatpush.bf16.msra.mxu3 %v315_v54 }
  0x8c   : > { %v244_v23 = vpop.permute.xlu1 %243 }
  0x8d   : > { %v254_v25 = vand.u32 %v684_v21, %v244_v23 }
  0x8f   : > { %263 = vmatpush.bf16.msra.mxu1 %v254_v25 }
  0x93   : > { %353 = vmatpush.bf16.xpose.msrb.mxu1 %v344_v29 }
  0x94   : > { %v337_v40 = vpop.permute.xlu1 %336 }
  0x96   : > { %v221_v13 = vpop.f32.mrf.mxu0 }
  0x97   : > { %v225_v14 = vmul.f32 0.35355338, %v221_v13 }
  0x99   : > { %v229_v15 = vadd.f32 %v227_v12, %v225_v14 }
  0x9b   : > { %v231_v16 = vsel %vm230_vm1, %v229_v15, -inf }
  0x9c   : > { %232 = vmax.xlane.f32.xlu0 %v231_v16 }
  0x9e   : > { %v223_v17 = vpop.f32.mrf.mxu0 }
  0xb0   : > { %278 = vrot.lane.b32.xlu0 %v660_v1, %s614_s23 }
  0xf9   : > { %v415_v22 = vpop.f32.mrf.mxu0 }
  0xfa   : > { %v419_v24 = vmul.f32 0.35355338, %v415_v22 }
  0xfc   : > { %v420_v26 = vadd.f32 %v419_v24, %v227_v12 }
  0xfe   : > { %v421_v27 = vsel %vm230_vm1, %v420_v26, -inf }
  0xff   : > { %422 = vmax.xlane.f32.xlu2 %v421_v27 }
 0x101   : > { %v417_v28 = vpop.f32.mrf.mxu0 }
 0x10f   : > { %v233_v30 = vpop.xlane.xlu0 %232 }
 0x110   : > { %v234_v31 = vsub.f32 %v229_v15, %v233_v30 }
 0x112   : > { %v235_v32 = vmul.f32 1.442695, %v234_v31 }
 0x114   : > { %588 = vpow2.f32 %v235_v32 }
 0x11a   : > { %v589_v34 = vpop.eup %588 }
 0x11b   : > { %v240_v35 = vmul.f32 %v589_v34, %v587_v33 }
 0x11d   : > { %v269_v36 = vsel %vm230_vm1, %v240_v35, 0.0  ;;  %v241_v37 = vpack.c.bf16 %v240_v35, %v240_v35 }
 0x11e   : > { %270 = vadd.xlane.f32.xlu2 %v269_v36 }
 0x11f   : > { %559 = vmatmul.msk.bf16.vlgmr.msra.gmra.mxu1 %vm245_vm4, %v241_v37 }
 0x122   : > { %v279_v38 = vpop.permute.xlu0 %278 }
 0x123   : > { %v284_v39 = vsel %vm205_vm0, %v279_v38, 0 }
 0x124   : > { %293 = vmatpush.bf16.xpose.msra.mxu2 %v284_v39 }
 0x12b   : > { %560 = vmatmul.msk.bf16.vlgmr.msra.gmra.mxu2 %vm205_vm0, %v277_v18 }
 0x12f   : > { %562 = vmatmul.msk.bf16.vlgmr.msrb.gmra.mxu1 %vm205_vm0, %v337_v40 }
 0x172   : > { %v423_v55 = vpop.xlane.xlu2 %422 }
 0x173   : > { %v424_v56 = vsub.f32 %v420_v26, %v423_v55 }
 0x175   : > { %v425_v57 = vmul.f32 1.442695, %v424_v56 }
 0x177   : > { %590 = vpow2.f32 %v425_v57 }
 0x17d   : > { %v591_v58 = vpop.eup %590 }
 0x17e   : > { %v427_v59 = vmul.f32 %v591_v58, %v587_v33 }
 0x180   : > { %v450_v60 = vsel %vm230_vm1, %v427_v59, 0.0  ;;  %v428_v11 = vpack.c.bf16 %v427_v59, %v427_v59 }
 0x191   : > { %v271_v16 = vpop.xlane.xlu2 %270 }
 0x192   : > { %v272_v35 = vadd.f32 1e-06, %v271_v16 }
 0x19c   : > { %v695_v41 = vpop.f32.mrf.mxu1 }
 0x1a4   : > { %v267_v42 = vpop.f32.mrf.mxu1 }
 0x1ac   : > { %v355_v43 = vpop.f32.mrf.mxu1 }
 0x1ad   : > { %v359_v44 = vmul.f32 0.35355338, %v355_v43 }
 0x1ae   : > { %v295_v45 = vpop.f32.mrf.mxu2 }
 0x1af   : > { %v299_v46 = vmul.f32 0.35355338, %v295_v45  ;;  %v360_v47 = vadd.f32 %v359_v44, %v227_v12 }
 0x1b1   : > { %v361_v48 = vsel %vm230_vm1, %v360_v47, -inf  ;;  %v300_v49 = vadd.f32 %v299_v46, %v227_v12 }
 0x1b2   : > { %362 = vmax.xlane.f32.xlu0 %v361_v48 }
 0x1b3   : > { %v301_v50 = vsel %vm230_vm1, %v300_v49, -inf }
 0x1b4   : > { %v357_v51 = vpop.f32.mrf.mxu1  ;;  %302 = vmax.xlane.f32.xlu1 %v301_v50 }
 0x1b6   : > { %v297_v52 = vpop.f32.mrf.mxu2 }
 0x1c6   : > { %429 = vrot.lane.b32.xlu0 %v660_v1, %s618_s29 }
 0x1cd   : > { %369 = vrot.lane.b32.xlu1 %v660_v1, %s619_s30 }
 0x1f0   : > { %451 = vadd.xlane.f32.xlu0 %v450_v60 }
 0x225   : > { %v363_v61 = vpop.xlane.xlu0 %362 }
 0x226   : > { %v364_v63 = vsub.f32 %v360_v47, %v363_v61 }
 0x227   : > { %v303_v62 = vpop.xlane.xlu1 %302 }
 0x228   : > { %v304_v0 = vsub.f32 %v300_v49, %v303_v62  ;;  %v365_v3 = vmul.f32 1.442695, %v364_v63 }
 0x22a   : > { %v305_v2 = vmul.f32 1.442695, %v304_v0 }
 0x22c   : > { %592 = vpow2.f32 %v305_v2 }
 0x22d   : > { %594 = vpow2.f32 %v365_v3 }
 0x232   : > { %v593_v1 = vpop.eup %592 }
 0x233   : > { %v307_v4 = vmul.f32 %v593_v1, %v587_v33  ;;  %v595_v7 = vpop.eup %594 }
 0x234   : > { %v367_v10 = vmul.f32 %v595_v7, %v587_v33 }
 0x235   : > { %v330_v5 = vsel %vm230_vm1, %v307_v4, 0.0  ;;  %v308_v6 = vpack.c.bf16 %v307_v4, %v307_v4 }
 0x236   : > { %331 = vadd.xlane.f32.xlu2 %v330_v5  ;;  %v390_v12 = vsel %vm230_vm1, %v367_v10, 0.0  ;;  %v368_v15 = vpack.c.bf16 %v367_v10, %v367_v10 }
 0x237   : > { %561 = vmatmul.msk.bf16.vlgmr.msra.gmra.mxu3 %vm245_vm4, %v308_v6 }
 0x238   : > { %v430_v8 = vpop.permute.xlu0 %429 }
 0x239   : > { %v435_v9 = vand.u32 %v430_v8, %v684_v21 }
 0x23b   : > { %444 = vmatpush.bf16.msrb.mxu2 %v435_v9 }
 0x23e   : > { %391 = vadd.xlane.f32.xlu2 %v390_v12  ;;  %565 = vmatmul.msk.bf16.vlgmr.msrb.gmra.mxu2 %vm245_vm4, %v428_v11 }
 0x23f   : > { %v370_v13 = vpop.permute.xlu1 %369 }
 0x240   : > { %v375_v14 = vand.u32 %v370_v13, %v684_v21 }
 0x242   : > { %384 = vmatpush.bf16.msrb.mxu3 %v375_v14 }
 0x247   : > { %563 = vmatmul.msk.bf16.vlgmr.msrb.gmra.mxu3 %vm245_vm4, %v368_v15 }
 0x263   : > { %v452_v19 = vpop.xlane.xlu0 %451 }
 0x264   : > { %v453_v20 = vadd.f32 1e-06, %v452_v19 }
 0x2a9   : > { %v332_v17 = vpop.xlane.xlu2 %331 }
 0x2aa   : > { %v333_v18 = vadd.f32 1e-06, %v332_v17 }
 0x2ac   : > { %596 = vrcp.f32 %v333_v18 }
 0x2ad   : > { %598 = vrcp.f32 %v453_v20 }
 0x2b1   : > { %v392_v25 = vpop.xlane.xlu2 %391 }
 0x2b2   : > { %v597_v22 = vpop.eup %596  ;;  %v393_v26 = vadd.f32 1e-06, %v392_v25 }
 0x2b3   : > { %v599_v27 = vpop.eup %598 }
 0x2b4   : > { %600 = vrcp.f32 %v393_v26 }
 0x2b5   : > { %602 = vrcp.f32 %v272_v35 }
 0x2ba   : > { %v326_v23 = vpop.f32.mrf.mxu3  ;;  %v601_v31 = vpop.eup %600 }
 0x2bb   : > { %v335_v24 = vmul.f32 %v597_v22, %v326_v23  ;;  %v603_v37 = vpop.eup %602 }
 0x2bc   : > { %v274_v38 = vmul.f32 %v603_v37, %v695_v41 }
 0x2bd   : > { %457 = vrot.lane.b32.xlu1 %v335_v24, %s620_s4 }
 0x2c1   : > { %v446_v21 = vpop.f32.mrf.mxu2 }
 0x2c2   : > { %v455_v28 = vmul.f32 %v599_v27, %v446_v21  ;;  %v328_v29 = vpop.f32.mrf.mxu3 }
 0x2c5   : > { %465 = vrot.lane.b32.xlu1 %v455_v28, %s621_s5 }
 0x2c9   : > { %v448_v30 = vpop.f32.mrf.mxu2 }
 0x2ca   : > { %v386_v32 = vpop.f32.mrf.mxu3 }
 0x2cb   : > { %v395_v33 = vmul.f32 %v601_v31, %v386_v32 }
 0x2cd   : > { %461 = vrot.lane.b32.xlu2 %v395_v33, %s622_s6 }
 0x2d2   : > { %v388_v34 = vpop.f32.mrf.mxu3 }
 0x327   : > { %v462_v40 = vpop.permute.xlu2 %461 }
 0x32f   : > { %v458_v36 = vpop.permute.xlu1 %457 }
 0x330   : > { %v468_v39 = vsel %vm205_vm0, %v274_v38, %v458_v36 }
 0x331   : > { %v470_v43 = vsel %vm469_vm5, %v468_v39, %v462_v40 }
 0x337   : > { %v466_v42 = vpop.permute.xlu1 %465 }
 0x338   : > { %v472_v44 = vsel %vm471_vm6, %v470_v43, %v466_v42 }
 0x339   : > { %474 = vst.msk [vmem:[%s196_s9] sm:$0x1f] %vm473_vm7, %v472_v44 }
 0x33a PF: > { %s13_s12 = sadd.s32 1, %s610_s12  }
 0x33b   : > { %p10_p4 = scmp.ge.s32.totalorder %s13_s12, 4  }
 0x33d   :  { %12 = sbr.rel (!%p10_p4) target bundleno = 1 (0x1), region = 68 }

// kernel: fwd.43
= control target key start
LH: loop header
LB: loop body
LE: loop exit
PB: predicated region body
PF: predicated region fallthrough
CT: control target
= control target key end

     0   :  { %s588_s9 = smov 0   ;;  %s661_s0 = inlined_call_operand.vmem [shape: f32[2,5,96], index: 0, kind: input, shape index: {}]   ;;  %s662_s1 = inlined_call_operand.vmem [shape: f32[2,5,5], index: 1, kind: input, shape index: {}]   ;;  %s663_s2 = inlined_call_operand.vmem [shape: f32[2,5,32], index: 2, kind: output, shape index: {}]  }
   0x1 LB: > { %s492_s10 = sadd.s32 4294967295, %s556_s9   ;;  %p496_p0 = scmp.ge.s32.totalorder %s556_s9, 1  ;;  %s556_s9 = sphi %s588_s9, %s12_s9  }
   0x2   : > { %p120_p1 = scmp.lt.s32.totalorder %s556_s9, 3 }
   0x4   : > { %p121_p2 = pnand %p496_p0, %p120_p1 }
   0x5   : > { %p144_p3 = scmp.lt.s32.totalorder (!%p121_p2), %s492_s10, 1  ;;  %s558_s15 = smov (!%p121_p2), 96  }
   0x6   : > { %124 = sbr.rel (%p121_p2) target bundleno = 932 (0x3a4), region = 28  ;;  %s559_s16 = smov (!%p121_p2), 88  }
   0x7   : > { %s560_s17 = smov (!%p121_p2), 120   ;;  %s561_s18 = smov (!%p121_p2), 72  }
   0x8   : > { %s562_s19 = smov (!%p121_p2), 104   ;;  %s563_s20 = smov (!%p121_p2), 64  }
   0x9   : > { %s564_s21 = smov (!%p121_p2), 80   ;;  %s565_s22 = smov (!%p121_p2), 112  }
   0xa   : > { %s566_s26 = smov (!%p121_p2), 56   ;;  %s567_s27 = smov (!%p121_p2), 48  }
   0xb   : > { %s665_s10 = smov (!%p144_p3, %s492_s10), 1  ;;  %vm165_vm0 = vcmask 64512   ;;  %vm187_vm1 = vcmask 36864   ;;  %vm202_vm2 = vcmask 1041408   ;;  %vm203_vm3 = vcmask 1042432   ;;  %s569_s28 = smov 40  }
   0xc   : > { %s596_s11 = sshll.u32 %s665_s10, 3  ;;  %v568_v28 = vmov 65535   ;;  %vm198_vm4 = vcmask 39936   ;;  %s570_s29 = smov 8   ;;  %vm421_vm5 = vcmask 130048   ;;  %vm423_vm6 = vcmask 195584  }
   0xd   : > { %s147_s14 = scalar_lea.vmem %s661_s0, %s596_s11  ;;  %s151_s25 = scalar_lea.vmem %s662_s1, %s596_s11  ;;  %v204_v29 = vsel %vm202_vm2, 4294967295, %v568_v28  ;;  %vm425_vm7 = vcmask 258048  }
   0xe   : > { %v157_v0 = vld [vmem:[%s147_s14] sm:$0x1f]  ;;  %v205_v31 = vsel %vm203_vm3, %v204_v29, 0  ;;  %s571_s30 = smov 24   ;;  %s572_s3 = smov 16  }
   0xf   : > { %v602_v1 = vpack.c.bf16 %v157_v0, %v157_v0  ;;  %v623_v10 = vld [vmem:[%s151_s25] sm:$0x1f]  ;;  %s155_s6 = scalar_lea.vmem %s663_s2, %s596_s11 }
  0x10   : > { %v500_v11 = vadd.f32 -1.0, %v623_v10 }
  0x11   : > { %163 = vrot.lane.b32.xlu0 %v602_v1, %s558_s15  ;;  %230 = vrot.lane.b32.xlu1 %v602_v1, %s559_s16 }
  0x12   : > { %196 = vrot.lane.b32.xlu2 %v602_v1, %s563_s20  ;;  %v626_v12 = vmul.f32 1e+09, %v500_v11 }
  0x19   : > { %228 = vrot.lane.b32.xlu1 %v602_v1, %s560_s17 }
  0x1a   : > { %290 = vrot.lane.b32.xlu2 %v602_v1, %s564_s21 }
  0x21   : > { %350 = vrot.lane.b32.xlu1 %v602_v1, %s561_s18 }
  0x22   : > { %288 = vrot.lane.b32.xlu2 %v602_v1, %s565_s22 }
  0x29   : > { %348 = vrot.lane.b32.xlu1 %v602_v1, %s562_s19 }
  0x31   : > { %261 = vrot.lane.b32.xlu1 %v602_v1, %s566_s26 }
  0x6c   : > { %v197_v26 = vpop.permute.xlu2 %196 }
  0x6d   : > { %v207_v32 = vand.u32 %v205_v31, %v197_v26 }
  0x6f   : > { %216 = vmatpush.bf16.msra.mxu1 %v207_v32 }
  0x74   : > { %v291_v33 = vpop.permute.xlu2 %290 }
  0x75   : > { %v296_v34 = vsel %vm165_vm0, %v291_v33, 0 }
  0x76   : > { %305 = vmatpush.bf16.xpose.msrb.mxu1 %v296_v34 }
  0x7c   : > { %v289_v42 = vpop.permute.xlu2 %288 }
  0x83   : > { %v164_v2 = vpop.permute.xlu0 %163  ;;  %v231_v3 = vpop.permute.xlu1 %230 }
  0x84   : > { %v170_v4 = vsel %vm165_vm0, %v164_v2, 0  ;;  %v236_v5 = vsel %vm165_vm0, %v231_v3, 0 }
  0x85   : > { %179 = vmatpush.bf16.xpose.msra.mxu0 %v170_v4  ;;  %245 = vmatpush.bf16.xpose.msra.mxu2 %v236_v5 }
  0x8b   : > { %v229_v6 = vpop.permute.xlu1 %228 }
  0x8c   : > { %501 = vmatmul.msk.bf16.vlgmr.msra.gmra.mxu0 %vm165_vm0, %v602_v1  ;;  %503 = vmatmul.msk.bf16.vlgmr.msra.gmra.mxu2 %vm165_vm0, %v229_v6 }
  0x93   : > { %v351_v7 = vpop.permute.xlu1 %350 }
  0x94   : > { %v356_v8 = vsel %vm165_vm0, %v351_v7, 0 }
  0x95   : > { %365 = vmatpush.bf16.xpose.msrb.mxu0 %v356_v8 }
  0x9b   : > { %v349_v9 = vpop.permute.xlu1 %348 }
  0x9c   : > { %507 = vmatmul.msk.bf16.vlgmr.msrb.gmra.mxu0 %vm165_vm0, %v349_v9 }
  0xa3   : > { %v262_v51 = vpop.permute.xlu1 %261 }
  0xa4   : > { %v267_v54 = vand.u32 %v262_v51, %v205_v31 }
  0xa6   : > { %276 = vmatpush.bf16.msra.mxu3 %v267_v54 }
 0x109   : > { %v181_v13 = vpop.f32.mrf.mxu0 }
 0x10a   : > { %v185_v14 = vmul.f32 0.35355338, %v181_v13 }
 0x10c   : > { %v186_v15 = vadd.f32 %v185_v14, %v626_v12 }
 0x10e   : > { %v188_v16 = vsel %vm187_vm1, %v186_v15, -inf }
 0x10f   : > { %189 = vmax.xlane.f32.xlu0 %v188_v16  ;;  %v247_v18 = vpop.f32.mrf.mxu2 }
 0x110   : > { %v251_v25 = vmul.f32 0.35355338, %v247_v18 }
 0x111   : > { %v183_v17 = vpop.f32.mrf.mxu0 }
 0x112   : > { %v252_v27 = vadd.f32 %v251_v25, %v626_v12 }
 0x114   : > { %v253_v30 = vsel %vm187_vm1, %v252_v27, -inf }
 0x115   : > { %254 = vmax.xlane.f32.xlu2 %v253_v30 }
 0x117   : > { %v249_v21 = vpop.f32.mrf.mxu2 }
 0x119   : > { %v367_v19 = vpop.f32.mrf.mxu0 }
 0x11a   : > { %v371_v20 = vmul.f32 0.35355338, %v367_v19 }
 0x11c   : > { %v372_v22 = vadd.f32 %v371_v20, %v626_v12 }
 0x11e   : > { %v373_v23 = vsel %vm187_vm1, %v372_v22, -inf }
 0x11f   : > { %374 = vmax.xlane.f32.xlu0 %v373_v23 }
 0x121   : > { %v369_v24 = vpop.f32.mrf.mxu0 }
 0x12d   : > { %381 = vrot.lane.b32.xlu2 %v602_v1, %s569_s28 }
 0x133   : > { %321 = vrot.lane.b32.xlu0 %v602_v1, %s567_s27 }
 0x182   : > { %v190_v35 = vpop.xlane.xlu0 %189 }
 0x183   : > { %v191_v36 = vsub.f32 %v186_v15, %v190_v35 }
 0x185   : > { %v192_v37 = vmul.f32 1.442695, %v191_v36 }
 0x187   : > { %534 = vpow2.f32 %v192_v37 }
 0x188   : > { %v255_v45 = vpop.xlane.xlu2 %254 }
 0x189   : > { %v256_v46 = vsub.f32 %v252_v27, %v255_v45 }
 0x18b   : > { %v257_v48 = vmul.f32 1.442695, %v256_v46 }
 0x18d   : > { %v535_v38 = vpop.eup %534  ;;  %536 = vpow2.f32 %v257_v48 }
 0x18e   : > { %v194_v39 = vmul.f32 %v535_v38, %v623_v10 }
 0x190   : > { %v222_v40 = vsel %vm187_vm1, %v194_v39, 0.0  ;;  %v195_v41 = vpack.c.bf16 %v194_v39, %v194_v39  ;;  %v382_v52 = vpop.permute.xlu2 %381 }
 0x191   : > { %223 = vadd.xlane.f32.xlu0 %v222_v40  ;;  %v387_v55 = vand.u32 %v382_v52, %v205_v31 }
 0x192   : > { %502 = vmatmul.msk.bf16.vlgmr.msra.gmra.mxu1 %vm198_vm4, %v195_v41  ;;  %v375_v43 = vpop.xlane.xlu0 %374 }
 0x193   : > { %v376_v44 = vsub.f32 %v372_v22, %v375_v43  ;;  %v537_v53 = vpop.eup %536  ;;  %396 = vmatpush.bf16.msrb.mxu2 %v387_v55 }
 0x194   : > { %v259_v57 = vmul.f32 %v537_v53, %v623_v10 }
 0x195   : > { %v377_v47 = vmul.f32 1.442695, %v376_v44 }
 0x196   : > { %v260_v58 = vpack.c.bf16 %v259_v57, %v259_v57  ;;  %v282_v4 = vsel %vm187_vm1, %v259_v57, 0.0 }
 0x197   : > { %538 = vpow2.f32 %v377_v47 }
 0x198   : > { %504 = vmatmul.msk.bf16.vlgmr.msra.gmra.mxu3 %vm198_vm4, %v260_v58 }
 0x19d   : > { %v539_v56 = vpop.eup %538 }
 0x19e   : > { %v379_v59 = vmul.f32 %v539_v56, %v623_v10 }
 0x1a0   : > { %v380_v60 = vpack.c.bf16 %v379_v59, %v379_v59  ;;  %v402_v5 = vsel %vm187_vm1, %v379_v59, 0.0 }
 0x1a2   : > { %505 = vmatmul.msk.bf16.vlgmr.msrb.gmra.mxu1 %vm165_vm0, %v289_v42  ;;  %508 = vmatmul.msk.bf16.vlgmr.msrb.gmra.mxu2 %vm198_vm4, %v380_v60 }
 0x1a5   : > { %v322_v49 = vpop.permute.xlu0 %321 }
 0x1a6   : > { %v327_v50 = vand.u32 %v322_v49, %v205_v31 }
 0x1a8   : > { %336 = vmatpush.bf16.msrb.mxu3 %v327_v50 }
 0x204   : > { %v224_v31 = vpop.xlane.xlu0 %223 }
 0x205   : > { %v225_v32 = vadd.f32 1e-06, %v224_v31 }
 0x20f   : > { %v218_v61 = vpop.f32.mrf.mxu1 }
 0x217   : > { %v220_v62 = vpop.f32.mrf.mxu1 }
 0x21b   : > { %v278_v6 = vpop.f32.mrf.mxu3 }
 0x21f   : > { %v307_v63 = vpop.f32.mrf.mxu1 }
 0x220   : > { %v311_v0 = vmul.f32 0.35355338, %v307_v63 }
 0x222   : > { %v312_v1 = vadd.f32 %v311_v0, %v626_v12 }
 0x223   : > { %v280_v7 = vpop.f32.mrf.mxu3 }
 0x224   : > { %v313_v2 = vsel %vm187_vm1, %v312_v1, -inf }
 0x225   : > { %314 = vmax.xlane.f32.xlu1 %v313_v2  ;;  %v398_v8 = vpop.f32.mrf.mxu2 }
 0x227   : > { %v309_v3 = vpop.f32.mrf.mxu1 }
 0x22d   : > { %283 = vadd.xlane.f32.xlu1 %v282_v4  ;;  %v400_v9 = vpop.f32.mrf.mxu2 }
 0x235   : > { %403 = vadd.xlane.f32.xlu1 %v402_v5 }
 0x298   : > { %v315_v11 = vpop.xlane.xlu1 %314 }
 0x299   : > { %v316_v13 = vsub.f32 %v312_v1, %v315_v11 }
 0x29b   : > { %v317_v14 = vmul.f32 1.442695, %v316_v13 }
 0x29d   : > { %540 = vpow2.f32 %v317_v14 }
 0x2a0   : > { %v284_v15 = vpop.xlane.xlu1 %283 }
 0x2a1   : > { %v285_v12 = vadd.f32 1e-06, %v284_v15 }
 0x2a3   : > { %v541_v16 = vpop.eup %540  ;;  %542 = vrcp.f32 %v285_v12 }
 0x2a4   : > { %v319_v17 = vmul.f32 %v541_v16, %v623_v10 }
 0x2a6   : > { %v342_v18 = vsel %vm187_vm1, %v319_v17, 0.0  ;;  %v320_v19 = vpack.c.bf16 %v319_v17, %v319_v17 }
 0x2a7   : > { %343 = vadd.xlane.f32.xlu2 %v342_v18 }
 0x2a8   : > { %v404_v20 = vpop.xlane.xlu1 %403  ;;  %506 = vmatmul.msk.bf16.vlgmr.msrb.gmra.mxu3 %vm198_vm4, %v320_v19 }
 0x2a9   : > { %v543_v21 = vpop.eup %542  ;;  %v405_v22 = vadd.f32 1e-06, %v404_v20 }
 0x2aa   : > { %v287_v23 = vmul.f32 %v543_v21, %v278_v6 }
 0x2ab   : > { %544 = vrcp.f32 %v405_v22 }
 0x2ac   : > { %409 = vrot.lane.b32.xlu1 %v287_v23, %s570_s29 }
 0x2b1   : > { %v545_v24 = vpop.eup %544 }
 0x2b2   : > { %v407_v25 = vmul.f32 %v545_v24, %v398_v8 }
 0x2b4   : > { %417 = vrot.lane.b32.xlu1 %v407_v25, %s571_s30 }
 0x31a   : > { %v344_v26 = vpop.xlane.xlu2 %343 }
 0x31b   : > { %v345_v27 = vadd.f32 1e-06, %v344_v26 }
 0x31d   : > { %546 = vrcp.f32 %v345_v27 }
 0x31e   : > { %548 = vrcp.f32 %v225_v32  ;;  %v410_v33 = vpop.permute.xlu1 %409 }
 0x323   : > { %v547_v10 = vpop.eup %546 }
 0x324   : > { %v549_v34 = vpop.eup %548 }
 0x325   : > { %v227_v35 = vmul.f32 %v549_v34, %v218_v61 }
 0x326   : > { %v418_v38 = vpop.permute.xlu1 %417 }
 0x327   : > { %v420_v36 = vsel %vm165_vm0, %v227_v35, %v410_v33 }
 0x32b   : > { %v338_v28 = vpop.f32.mrf.mxu3 }
 0x32c   : > { %v347_v29 = vmul.f32 %v547_v10, %v338_v28 }
 0x32e   : > { %413 = vrot.lane.b32.xlu0 %v347_v29, %s572_s3 }
 0x333   : > { %v340_v30 = vpop.f32.mrf.mxu3 }
 0x3a0   : > { %v414_v37 = vpop.permute.xlu0 %413 }
 0x3a1   : > { %v422_v39 = vsel %vm421_vm5, %v420_v36, %v414_v37 }
 0x3a2   : > { %v424_v40 = vsel %vm423_vm6, %v422_v39, %v418_v38 }
 0x3a3   : > { %426 = vst.msk [vmem:[%s155_s6] sm:$0x1f] %vm425_vm7, %v424_v40 }
 0x3a4 PF: > { %s12_s9 = sadd.s32 1, %s556_s9  }
 0x3a5   : > { %p9_p4 = scmp.ge.s32.totalorder %s12_s9, 4  }
 0x3a7   :  { %11 = sbr.rel (!%p9_p4) target bundleno = 1 (0x1), region = 61 }

// kernel: fwd.56
= control target key start
LH: loop header
LB: loop body
LE: loop exit
PB: predicated region body
PF: predicated region fallthrough
CT: control target
= control target key end

     0   :  { %vm25_vm0 = vcmask 261120   ;;  %v180_v4 = vmov 32.0   ;;  %s243_s0 = inlined_call_operand.vmem [shape: f32[16,32], index: 0, kind: input, shape index: {}]   ;;  %s244_s1 = inlined_call_operand.vmem [shape: f32[1,32], index: 1, kind: input, shape index: {}]   ;;  %s245_s2 = inlined_call_operand.vmem [shape: f32[1,32], index: 2, kind: input, shape index: {}]   ;;  %s246_s4 = inlined_call_operand.vmem [shape: f32[1,128], index: 4, kind: input, shape index: {}]   ;;  %s247_s3 = inlined_call_operand.vmem [shape: bf16[32,128], index: 3, kind: input, shape index: {}]   ;;  %s248_s5 = inlined_call_operand.vmem [shape: f32[16,128], index: 5, kind: output, shape index: {}]  }
   0x1   :  { %v21_v0 = vld [vmem:[%s243_s0] sm:$0xff]  ;;  %v22_v2 = vld [vmem:[%s243_s0 + $0x8] sm:$0xff]  ;;  %166 = vrcp.f32 %v180_v4 }
   0x2   :  { %v26_v1 = vsel %vm25_vm0, %v21_v0, 0.0  ;;  %v29_v3 = vsel %vm25_vm0, %v22_v2, 0.0  ;;  %v161_v21 = vld [vmem:[%s247_s3 + $0x8] sm:$0xff]  ;;  %v160_v23 = vld [vmem:[%s247_s3] sm:$0xff] }
   0x3   :  { %27 = vadd.xlane.f32.xlu0 %v26_v1  ;;  %117 = vmatpush.bf16.msra.mxu0 %v161_v21  ;;  %v163_v42 = vld [vmem:[%s244_s1] ss:$0 sm:$0xff] }
   0x4   :  { %v164_v47 = vld [vmem:[%s245_s2] ss:$0 sm:$0xff] }
   0x5   :  { %v165_v52 = vld [vmem:[%s246_s4] ss:$0 sm:$0xff] }
   0x7   :  { %v167_v5 = vpop.eup %166  ;;  %118 = vmatpush.bf16.msra.mxu0 %v160_v23 }
   0x8   :  { %v33_v6 = vmul.f32 32.0, %v167_v5  ;;  %vm37_vm1 = vweird.f32 %v167_v5 }
   0xa   :  { %v34_v7 = vsub.f32 1.0, %v33_v6 }
   0xb   :  { %30 = vadd.xlane.f32.xlu0 %v29_v3 }
   0xc   :  { %v35_v8 = vmul.f32 %v167_v5, %v34_v7 }
   0xe   :  { %v36_v9 = vadd.f32 %v167_v5, %v35_v8 }
  0x10   :  { %v38_v10 = vsel %vm37_vm1, %v167_v5, %v36_v9 }
  0x76   :  { %v28_v11 = vpop.xlane.xlu0 %27 }
  0x77   :  { %v39_v12 = vmul.f32 %v38_v10, %v28_v11 }
  0x79   :  { %v41_v13 = vsub.f32 %v21_v0, %v39_v12 }
  0x7b   :  { %v43_v14 = vmul.f32 %v41_v13, %v41_v13 }
  0x7d   :  { %v45_v15 = vsel %vm25_vm0, %v43_v14, 0.0 }
  0x7e   :  { %46 = vadd.xlane.f32.xlu1 %v45_v15  ;;  %v31_v16 = vpop.xlane.xlu0 %30 }
  0x7f   :  { %v40_v17 = vmul.f32 %v38_v10, %v31_v16 }
  0x81   :  { %v42_v18 = vsub.f32 %v22_v2, %v40_v17 }
  0x83   :  { %v44_v19 = vmul.f32 %v42_v18, %v42_v18 }
  0x85   :  { %v48_v20 = vsel %vm25_vm0, %v44_v19, 0.0 }
  0x86   :  { %49 = vadd.xlane.f32.xlu1 %v48_v20 }
  0xf1   :  { %v47_v22 = vpop.xlane.xlu1 %46 }
  0xf2   :  { %v51_v24 = vmul.f32 %v47_v22, %v38_v10 }
  0xf4   :  { %v53_v25 = vadd.f32 1e-12, %v51_v24 }
  0xf6   :  { %168 = vrsqrt.f32 %v53_v25  ;;  %vm61_vm3 = vweird.f32 %v53_v25 }
  0xf9   :  { %v50_v26 = vpop.xlane.xlu1 %49 }
  0xfa   :  { %v52_v27 = vmul.f32 %v50_v26, %v38_v10 }
  0xfc   :  { %v169_v28 = vpop.eup %168  ;;  %v54_v29 = vadd.f32 1e-12, %v52_v27 }
  0xfd   :  { %v56_v30 = vmul.f32 %v169_v28, %v53_v25  ;;  %vm62_vm2 = vweird.f32 %v169_v28 }
  0xfe   :  { %170 = vrsqrt.f32 %v54_v29  ;;  %vm63_vm4 = vmor %vm61_vm3, %vm62_vm2  ;;  %vm71_vm6 = vweird.f32 %v54_v29 }
  0xff   :  { %v57_v31 = vmul.f32 %v169_v28, %v56_v30 }
 0x101   :  { %v58_v32 = vmul.f32 0.5, %v57_v31 }
 0x103   :  { %v59_v33 = vsub.f32 1.5, %v58_v32 }
 0x104   :  { %v171_v34 = vpop.eup %170 }
 0x105   :  { %v60_v35 = vmul.f32 %v169_v28, %v59_v33  ;;  %v66_v36 = vmul.f32 %v171_v34, %v54_v29  ;;  %vm72_vm5 = vweird.f32 %v171_v34 }
 0x106   :  { %vm73_vm7 = vmor %vm71_vm6, %vm72_vm5 }
 0x107   :  { %v67_v37 = vmul.f32 %v171_v34, %v66_v36  ;;  %v64_v38 = vsel %vm63_vm4, %v169_v28, %v60_v35 }
 0x108   :  { %v75_v41 = vmul.f32 %v64_v38, %v41_v13 }
 0x109   :  { %v68_v39 = vmul.f32 0.5, %v67_v37 }
 0x10a   :  { %v80_v46 = vmul.f32 %v163_v42, %v75_v41 }
 0x10b   :  { %v69_v40 = vsub.f32 1.5, %v68_v39 }
 0x10c   :  { %v85_v49 = vadd.f32 %v164_v47, %v80_v46 }
 0x10d   :  { %v70_v43 = vmul.f32 %v171_v34, %v69_v40 }
 0x10f   :  { %v74_v44 = vsel %vm73_vm7, %v171_v34, %v70_v43 }
 0x110   :  { %v76_v45 = vmul.f32 %v74_v44, %v42_v18 }
 0x112   :  { %v81_v48 = vmul.f32 %v163_v42, %v76_v45 }
 0x114   :  { %v86_v50 = vadd.f32 %v164_v47, %v81_v48 }
 0x116   :  { %v91_v51 = vpack.c.bf16 %v86_v50, %v85_v49 }
 0x118   :  { %159 = vmatmul.msk.bf16.vlgmr.msra.gmra.mxu0 %vm25_vm0, %v91_v51 }
 0x195   :  { %v120_v53 = vpop.f32.mrf.mxu0 }
 0x196   :  { %v121_v54 = vadd.f32 %v165_v52, %v120_v53 }
 0x198   :  { %125 = vmax.xlane.f32.xlu2 %v121_v54 }
 0x19d   :  { %v122_v55 = vpop.f32.mrf.mxu0 }
 0x19e   :  { %v123_v56 = vadd.f32 %v165_v52, %v122_v55 }
 0x1a0   :  { %127 = vmax.xlane.f32.xlu2 %v123_v56 }
 0x20b   :  { %v126_v57 = vpop.xlane.xlu2 %125 }
 0x20c   :  { %v129_v58 = vsub.f32 %v121_v54, %v126_v57 }
 0x20e   :  { %v131_v59 = vmul.f32 1.442695, %v129_v58 }
 0x210   :  { %172 = vpow2.f32 %v131_v59 }
 0x213   :  { %v128_v60 = vpop.xlane.xlu2 %127 }
 0x214   :  { %v130_v61 = vsub.f32 %v123_v56, %v128_v60 }
 0x216   :  { %v173_v62 = vpop.eup %172  ;;  %v133_v63 = vmul.f32 1.442695, %v130_v61 }
 0x217   :  { %135 = vadd.xlane.f32.xlu0 %v173_v62 }
 0x218   :  { %174 = vpow2.f32 %v133_v63 }
 0x21e   :  { %v175_v0 = vpop.eup %174 }
 0x21f   :  { %137 = vadd.xlane.f32.xlu1 %v175_v0 }
 0x28a   :  { %v136_v1 = vpop.xlane.xlu0 %135 }
 0x28b   :  { %176 = vlog2.f32 %v136_v1 }
 0x291   :  { %v177_v2 = vpop.eup %176 }
 0x292   :  { %v140_v3 = vmul.f32 0.6931472, %v177_v2  ;;  %v138_v4 = vpop.xlane.xlu1 %137 }
 0x293   :  { %178 = vlog2.f32 %v138_v4 }
 0x294   :  { %v143_v5 = vsub.f32 %v129_v58, %v140_v3 }
 0x296   :  { %145 = vst [vmem:[%s248_s5] sm:$0xff] %v143_v5 }
 0x299   :  { %v179_v6 = vpop.eup %178 }
 0x29a   :  { %v142_v7 = vmul.f32 0.6931472, %v179_v6 }
 0x29c   :  { %v144_v8 = vsub.f32 %v130_v61, %v142_v7 }
 0x29e   :  { %146 = vst [vmem:[%s248_s5 + $0x8] sm:$0xff] %v144_v8 }

// kernel: fwd.57
= control target key start
LH: loop header
LB: loop body
LE: loop exit
PB: predicated region body
PF: predicated region fallthrough
CT: control target
= control target key end

     0   :  { %vm38_vm0 = vcmask 261120   ;;  %s143_s1 = inlined_call_operand.vmem [shape: bf16[32,128], index: 1, kind: input, shape index: {}]   ;;  %s144_s0 = inlined_call_operand.vmem [shape: f32[16,32], index: 0, kind: input, shape index: {}]   ;;  %s145_s2 = inlined_call_operand.vmem [shape: f32[1,128], index: 2, kind: input, shape index: {}]   ;;  %s146_s3 = inlined_call_operand.vmem [shape: f32[16,128], index: 3, kind: output, shape index: {}]  }
   0x1   :  { %v92_v0 = vld [vmem:[%s143_s1 + $0x8] sm:$0xff]  ;;  %v91_v1 = vld [vmem:[%s143_s1] sm:$0xff] }
   0x2   :  { %48 = vmatpush.bf16.msra.mxu0 %v92_v0  ;;  %v15_v2 = vld [vmem:[%s144_s0] sm:$0xff]  ;;  %v16_v3 = vld [vmem:[%s144_s0 + $0x8] sm:$0xff] }
   0x3   :  { %v21_v4 = vpack.c.bf16 %v16_v3, %v15_v2  ;;  %v93_v5 = vld [vmem:[%s145_s2] ss:$0 sm:$0xff] }
   0x6   :  { %49 = vmatpush.bf16.msra.mxu0 %v91_v1 }
   0x9   :  { %90 = vmatmul.msk.bf16.vlgmr.msra.gmra.mxu0 %vm38_vm0, %v21_v4 }
  0x86   :  { %v51_v6 = vpop.f32.mrf.mxu0 }
  0x87   :  { %v52_v7 = vadd.f32 %v93_v5, %v51_v6 }
  0x89   :  { %56 = vmax.xlane.f32.xlu0 %v52_v7 }
  0x8e   :  { %v53_v8 = vpop.f32.mrf.mxu0 }
  0x8f   :  { %v54_v9 = vadd.f32 %v93_v5, %v53_v8 }
  0x91   :  { %58 = vmax.xlane.f32.xlu0 %v54_v9 }
  0xfc   :  { %v57_v10 = vpop.xlane.xlu0 %56 }
  0xfd   :  { %v60_v11 = vsub.f32 %v52_v7, %v57_v10 }
  0xff   :  { %v62_v12 = vmul.f32 1.442695, %v60_v11 }
 0x101   :  { %94 = vpow2.f32 %v62_v12 }
 0x104   :  { %v59_v13 = vpop.xlane.xlu0 %58 }
 0x105   :  { %v61_v14 = vsub.f32 %v54_v9, %v59_v13 }
 0x107   :  { %v95_v15 = vpop.eup %94  ;;  %v64_v16 = vmul.f32 1.442695, %v61_v14 }
 0x108   :  { %66 = vadd.xlane.f32.xlu1 %v95_v15 }
 0x109   :  { %96 = vpow2.f32 %v64_v16 }
 0x10f   :  { %v97_v17 = vpop.eup %96 }
 0x110   :  { %68 = vadd.xlane.f32.xlu1 %v97_v17 }
 0x17b   :  { %v67_v18 = vpop.xlane.xlu1 %66 }
 0x17c   :  { %98 = vlog2.f32 %v67_v18 }
 0x182   :  { %v99_v19 = vpop.eup %98 }
 0x183   :  { %v71_v20 = vmul.f32 0.6931472, %v99_v19  ;;  %v69_v21 = vpop.xlane.xlu1 %68 }
 0x184   :  { %100 = vlog2.f32 %v69_v21 }
 0x185   :  { %v74_v22 = vsub.f32 %v60_v11, %v71_v20 }
 0x187   :  { %76 = vst [vmem:[%s146_s3] sm:$0xff] %v74_v22 }
 0x18a   :  { %v101_v23 = vpop.eup %100 }
 0x18b   :  { %v73_v24 = vmul.f32 0.6931472, %v101_v23 }
 0x18d   :  { %v75_v25 = vsub.f32 %v61_v14, %v73_v24 }
 0x18f   :  { %77 = vst [vmem:[%s146_s3 + $0x8] sm:$0xff] %v75_v25 }

</bundles_post_ra>
